<compile_context>
chip_gen: v5e
topology: v5e:2x2
jax: 0.10.0
libtpu: 0.0.40
codegen_flags: <defaults>
</compile_context>

<pallas_src>
import numpy as np
import jax
import jax.numpy as jnp
from jax.experimental import pallas as pl
from jax.experimental.pallas import tpu as pltpu


def _adaptive_pool_matrix(in_size: int, out_size: int) -> np.ndarray:
    """Row-stochastic P with P[i, h] = 1/|window_i| over PyTorch's
    AdaptiveAvgPool window [floor(i*in/out), ceil((i+1)*in/out))."""
    P = np.zeros((out_size, in_size), dtype=np.float32)
    for i in range(out_size):
        start = (i * in_size) // out_size
        end = -((-(i + 1) * in_size) // out_size)  # ceil division
        P[i, start:end] = 1.0 / float(end - start)
    return P


def _tensorcores_per_chip() -> int:
    """Best-effort TC-per-chip detection (v7x has 2; v5e/v6e have 1)."""
    try:
        kind = jax.devices()[0].device_kind.lower()
    except Exception:
        return 2  # safe default: keep a parallel grid axis
    return 2 if "7" in kind else 1


def _encoder_kernel(x_ref, wT_ref, b_ref, pT_ref, o_ref, xpad_ref, patch_ref):
    # x_ref    : (bb, Cin, H, W)   f32   NCHW input block (bb images)
    # wT_ref   : (Cout, 9*Cin)     bf16  transposed im2col conv weights
    # b_ref    : (Cout, 1)         f32   conv bias (broadcast over lanes)
    # pT_ref   : (H*W, Fs*Fs)      f32   transposed kron(Ph, Pw) pool matrix
    # o_ref    : (bb, Cout, Fs*Fs) f32   pooled output (NHWC transpose outside)
    # xpad_ref : (Cin, H+2, W+2)   f32   scratch: channel-major padded image
    # patch_ref: (9*Cin, H*W)      bf16  scratch: transposed im2col patches
    bb, Cin, H, W = x_ref.shape

    # Zero only the 1-pixel border once per grid step; the interior is fully
    # overwritten for every image and the interior stores never touch the
    # border, so it stays zero across the batch loop.
    zrow = jnp.zeros((Cin, 1, W + 2), dtype=xpad_ref.dtype)
    zcol = jnp.zeros((Cin, H + 2, 1), dtype=xpad_ref.dtype)
    xpad_ref[:, 0:1, :] = zrow
    xpad_ref[:, H + 1:H + 2, :] = zrow
    xpad_ref[:, :, 0:1] = zcol
    xpad_ref[:, :, W + 1:W + 2] = zcol

    for b in range(bb):  # static unroll; bb is 1 (multi-TC) or B (single-TC)
        xpad_ref[:, 1:H + 1, 1:W + 1] = x_ref[b]

        # im2col: each 3x3 tap goes straight into its sublane-row block of
        # the (9*Cin, H*W) patch scratch (lane dim = H*W); single bf16 cast.
        for kh in range(3):
            for kw in range(3):
                tap = kh * 3 + kw
                patch_ref[pl.ds(tap * Cin, Cin), :] = (
                    xpad_ref[:, kh:kh + H, kw:kw + W]
                    .reshape(Cin, H * W).astype(jnp.bfloat16))

        # Whole conv as one MXU GEMM, lane-dense (N = H*W), f32 accumulation.
        acc = jnp.dot(wT_ref[...], patch_ref[...],
                      preferred_element_type=jnp.float32)      # (Cout, H*W)
        acc = jnp.maximum(acc + b_ref[...], 0.0)                # bias + ReLU

        # Fused adaptive average pool: one small f32 GEMM.
        o_ref[b] = jnp.dot(acc, pT_ref[...],
                           preferred_element_type=jnp.float32
                           ).astype(o_ref.dtype)                # (Cout, Fs*Fs)


def encoder_forward(x_nchw, w_hwio, bias, feature_size):
    """x_nchw: (B, Cin, H, W) f32.  Returns (B, Fs, Fs, Cout) f32, matching
    PyTorch's Encoder.forward (cnn -> adaptive pool -> permute to NHWC)."""
    B, Cin, H, W = x_nchw.shape
    Cout = w_hwio.shape[3]
    Fs = feature_size

    # Host-side operand prep (tiny, one-time): transposed im2col weights,
    # transposed fused pool matrix (kept f32), column bias.
    wT = jnp.transpose(jnp.reshape(w_hwio, (9 * Cin, Cout))).astype(jnp.bfloat16)
    pT = jnp.asarray(np.kron(_adaptive_pool_matrix(H, Fs),
                             _adaptive_pool_matrix(W, Fs)).T,
                     dtype=jnp.float32)                          # (H*W, Fs*Fs)
    bias2 = bias.reshape(Cout, 1).astype(jnp.float32)

    # v7x: one image per grid step so both TensorCores get work.
    # v5e/v6e (single TC): collapse the grid and loop the batch in-kernel.
    bb = 1 if _tensorcores_per_chip() >= 2 else B
    grid = (B // bb,)

    flops = B * (2 * H * W * (9 * Cin) * Cout + 2 * Fs * Fs * H * W * Cout)
    bytes_accessed = (B * Cin * H * W * 4 + 9 * Cin * Cout * 2
                      + H * W * Fs * Fs * 4 + Cout * 4
                      + B * Fs * Fs * Cout * 4)

    out = pl.pallas_call(
        _encoder_kernel,
        out_shape=jax.ShapeDtypeStruct((B, Cout, Fs * Fs), jnp.float32),
        grid_spec=pltpu.PrefetchScalarGridSpec(
            num_scalar_prefetch=0,
            grid=grid,
            in_specs=[
                pl.BlockSpec((bb, Cin, H, W), lambda g: (g, 0, 0, 0)),
                pl.BlockSpec((Cout, 9 * Cin), lambda g: (0, 0)),
                pl.BlockSpec((Cout, 1), lambda g: (0, 0)),
                pl.BlockSpec((H * W, Fs * Fs), lambda g: (0, 0)),
            ],
            out_specs=pl.BlockSpec((bb, Cout, Fs * Fs), lambda g: (g, 0, 0)),
            scratch_shapes=[
                pltpu.VMEM((Cin, H + 2, W + 2), jnp.float32),
                pltpu.VMEM((9 * Cin, H * W), jnp.bfloat16),
            ],
        ),
        compiler_params=pltpu.CompilerParams(
            dimension_semantics=("parallel",),
            vmem_limit_bytes=4 * 1024 * 1024),
        cost_estimate=pl.CostEstimate(
            flops=flops, transcendentals=0, bytes_accessed=bytes_accessed),
    )(x_nchw, wT, bias2, pT)

    # Tiny pooled slab: (B, Cout, Fs*Fs) -> (B, Fs, Fs, Cout) NHWC.
    return jnp.transpose(out.reshape(B, Cout, Fs, Fs), (0, 2, 3, 1))


def _reference(x_nchw, w_hwio, bias, feature_size):
    """Independent pure-JAX/numpy f32 reference of the same forward pass."""
    x_nhwc = jnp.transpose(x_nchw, (0, 2, 3, 1))
    y = jax.lax.conv_general_dilated(
        x_nhwc, w_hwio, window_strides=(1, 1), padding="SAME",
        dimension_numbers=("NHWC", "HWIO", "NHWC"))
    y = jnp.maximum(y + bias[None, None, None, :], 0.0)
    y = np.asarray(y)
    B, H, W, C = y.shape
    Fs = feature_size
    out = np.zeros((B, Fs, Fs, C), np.float32)
    for i in range(Fs):
        hs, he = (i * H) // Fs, -((-(i + 1) * H) // Fs)
        for j in range(Fs):
            ws, we = (j * W) // Fs, -((-(j + 1) * W) // Fs)
            out[:, i, j, :] = y[:, hs:he, ws:we, :].mean(axis=(1, 2))
    return out


if __name__ == "__main__":
    B, Cin, H, W = 2, 4, 16, 16
    Cout = 8
    feature_size = 5  # exercises PyTorch's non-uniform adaptive-pool windows

    key = jax.random.PRNGKey(0)
    kx, kw, kb = jax.random.split(key, 3)
    x = jax.random.normal(kx, (B, Cin, H, W), dtype=jnp.float32)         # NCHW
    w_oihw = jax.random.normal(kw, (Cout, Cin, 3, 3), dtype=jnp.float32) * 0.1
    bias = jax.random.normal(kb, (Cout,), dtype=jnp.float32) * 0.1
    w_hwio = jnp.transpose(w_oihw, (2, 3, 1, 0))                         # HWIO

    out = encoder_forward(x, w_hwio, bias, feature_size)
    out = jax.block_until_ready(out)

    ref = _reference(x, w_hwio, bias, feature_size)
    # bf16 conv operands (f32 accumulation, f32 pooling) -> loose tolerance.
    np.testing.assert_allclose(np.asarray(out), ref, rtol=2e-2, atol=2e-2)
    assert out.shape == (B, feature_size, feature_size, Cout)

    print("KERNEL_OK")
</pallas_src>

<mosaic_0001>
module attributes {stable_mosaic.version = 11 : i64} {
  func.func @_encoder_kernel(%arg0: i32, %arg1: memref<2x4x16x16xf32, #tpu.memory_space<vmem>>, %arg2: memref<8x36xbf16, #tpu.memory_space<vmem>>, %arg3: memref<8x1xf32, #tpu.memory_space<vmem>>, %arg4: memref<256x25xf32, #tpu.memory_space<vmem>>, %arg5: memref<2x8x25xf32, #tpu.memory_space<vmem>>, %arg6: memref<4x18x18xf32, #tpu.memory_space<vmem>>, %arg7: memref<36x256xbf16, #tpu.memory_space<vmem>>) attributes {dimension_semantics = [#tpu.dimension_semantics<parallel>], iteration_bounds = array<i64: 1>, scalar_prefetch = 0 : i64, scratch_operands = 2 : i64, tpu.core_type = #tpu.core_type<tc>, window_params = [{transform_indices = @transform_0, window_bounds = array<i64: 2, 4, 16, 16>}, {pipeline_mode = #tpu.pipeline_mode<synchronous>, transform_indices = @transform_1, window_bounds = array<i64: 8, 36>}, {pipeline_mode = #tpu.pipeline_mode<synchronous>, transform_indices = @transform_2, window_bounds = array<i64: 8, 1>}, {pipeline_mode = #tpu.pipeline_mode<synchronous>, transform_indices = @transform_3, window_bounds = array<i64: 256, 25>}, {transform_indices = @transform_4, window_bounds = array<i64: 2, 8, 25>}]} {
    %cst = arith.constant 0.000000e+00 : f32
    %0 = vector.broadcast %cst : f32 to vector<4x1x18xf32>
    %cst_0 = arith.constant 0.000000e+00 : f32
    %1 = vector.broadcast %cst_0 : f32 to vector<4x18x1xf32>
    %c0 = arith.constant 0 : index
    %c0_1 = arith.constant 0 : index
    %c0_2 = arith.constant 0 : index
    %2 = vector.load %arg6[%c0, %c0_1, %c0_2] : memref<4x18x18xf32, #tpu.memory_space<vmem>>, vector<4x1x18xf32>
    tpu.vector_store %arg6[%c0, %c0_1, %c0_2], %0 {strides = array<i32>} : memref<4x18x18xf32, #tpu.memory_space<vmem>>, vector<4x1x18xf32>,
    %c0_3 = arith.constant 0 : index
    %c17 = arith.constant 17 : index
    %c0_4 = arith.constant 0 : index
    %3 = vector.load %arg6[%c0_3, %c17, %c0_4] : memref<4x18x18xf32, #tpu.memory_space<vmem>>, vector<4x1x18xf32>
    tpu.vector_store %arg6[%c0_3, %c17, %c0_4], %0 {strides = array<i32>} : memref<4x18x18xf32, #tpu.memory_space<vmem>>, vector<4x1x18xf32>,
    %c0_5 = arith.constant 0 : index
    %c0_6 = arith.constant 0 : index
    %c0_7 = arith.constant 0 : index
    %4 = vector.load %arg6[%c0_5, %c0_6, %c0_7] : memref<4x18x18xf32, #tpu.memory_space<vmem>>, vector<4x18x1xf32>
    tpu.vector_store %arg6[%c0_5, %c0_6, %c0_7], %1 {strides = array<i32>} : memref<4x18x18xf32, #tpu.memory_space<vmem>>, vector<4x18x1xf32>,
    %c0_8 = arith.constant 0 : index
    %c0_9 = arith.constant 0 : index
    %c17_10 = arith.constant 17 : index
    %5 = vector.load %arg6[%c0_8, %c0_9, %c17_10] : memref<4x18x18xf32, #tpu.memory_space<vmem>>, vector<4x18x1xf32>
    tpu.vector_store %arg6[%c0_8, %c0_9, %c17_10], %1 {strides = array<i32>} : memref<4x18x18xf32, #tpu.memory_space<vmem>>, vector<4x18x1xf32>,
    %c0_11 = arith.constant 0 : index
    %c0_12 = arith.constant 0 : index
    %c0_13 = arith.constant 0 : index
    %c0_14 = arith.constant 0 : index
    %6 = vector.load %arg1[%c0_11, %c0_12, %c0_13, %c0_14] : memref<2x4x16x16xf32, #tpu.memory_space<vmem>>, vector<1x4x16x16xf32>
    %7 = vector.shape_cast %6 : vector<1x4x16x16xf32> to vector<4x16x16xf32>
    %c0_15 = arith.constant 0 : index
    %c1 = arith.constant 1 : index
    %c1_16 = arith.constant 1 : index
    %8 = vector.load %arg6[%c0_15, %c1, %c1_16] : memref<4x18x18xf32, #tpu.memory_space<vmem>>, vector<4x16x16xf32>
    tpu.vector_store %arg6[%c0_15, %c1, %c1_16], %7 {strides = array<i32>} : memref<4x18x18xf32, #tpu.memory_space<vmem>>, vector<4x16x16xf32>,
    %c0_17 = arith.constant 0 : index
    %c0_18 = arith.constant 0 : index
    %c0_19 = arith.constant 0 : index
    %9 = vector.load %arg6[%c0_17, %c0_18, %c0_19] : memref<4x18x18xf32, #tpu.memory_space<vmem>>, vector<4x16x16xf32>
    %10 = vector.shape_cast %9 : vector<4x16x16xf32> to vector<4x256xf32>
    %11 = arith.truncf %10 : vector<4x256xf32> to vector<4x256xbf16>
    %c0_20 = arith.constant 0 : index
    %c0_21 = arith.constant 0 : index
    %12 = vector.load %arg7[%c0_20, %c0_21] : memref<36x256xbf16, #tpu.memory_space<vmem>>, vector<4x256xbf16>
    tpu.vector_store %arg7[%c0_20, %c0_21], %11 {strides = array<i32>} : memref<36x256xbf16, #tpu.memory_space<vmem>>, vector<4x256xbf16>,
    %c0_22 = arith.constant 0 : index
    %c0_23 = arith.constant 0 : index
    %c1_24 = arith.constant 1 : index
    %13 = vector.load %arg6[%c0_22, %c0_23, %c1_24] : memref<4x18x18xf32, #tpu.memory_space<vmem>>, vector<4x16x16xf32>
    %14 = vector.shape_cast %13 : vector<4x16x16xf32> to vector<4x256xf32>
    %15 = arith.truncf %14 : vector<4x256xf32> to vector<4x256xbf16>
    %c4 = arith.constant 4 : index
    %c0_25 = arith.constant 0 : index
    %16 = vector.load %arg7[%c4, %c0_25] : memref<36x256xbf16, #tpu.memory_space<vmem>>, vector<4x256xbf16>
    tpu.vector_store %arg7[%c4, %c0_25], %15 {strides = array<i32>} : memref<36x256xbf16, #tpu.memory_space<vmem>>, vector<4x256xbf16>,
    %c0_26 = arith.constant 0 : index
    %c0_27 = arith.constant 0 : index
    %c2 = arith.constant 2 : index
    %17 = vector.load %arg6[%c0_26, %c0_27, %c2] : memref<4x18x18xf32, #tpu.memory_space<vmem>>, vector<4x16x16xf32>
    %18 = vector.shape_cast %17 : vector<4x16x16xf32> to vector<4x256xf32>
    %19 = arith.truncf %18 : vector<4x256xf32> to vector<4x256xbf16>
    %c8 = arith.constant 8 : index
    %c0_28 = arith.constant 0 : index
    %20 = vector.load %arg7[%c8, %c0_28] : memref<36x256xbf16, #tpu.memory_space<vmem>>, vector<4x256xbf16>
    tpu.vector_store %arg7[%c8, %c0_28], %19 {strides = array<i32>} : memref<36x256xbf16, #tpu.memory_space<vmem>>, vector<4x256xbf16>,
    %c0_29 = arith.constant 0 : index
    %c1_30 = arith.constant 1 : index
    %c0_31 = arith.constant 0 : index
    %21 = vector.load %arg6[%c0_29, %c1_30, %c0_31] : memref<4x18x18xf32, #tpu.memory_space<vmem>>, vector<4x16x16xf32>
    %22 = vector.shape_cast %21 : vector<4x16x16xf32> to vector<4x256xf32>
    %23 = arith.truncf %22 : vector<4x256xf32> to vector<4x256xbf16>
    %c12 = arith.constant 12 : index
    %c0_32 = arith.constant 0 : index
    %24 = vector.load %arg7[%c12, %c0_32] : memref<36x256xbf16, #tpu.memory_space<vmem>>, vector<4x256xbf16>
    tpu.vector_store %arg7[%c12, %c0_32], %23 {strides = array<i32>} : memref<36x256xbf16, #tpu.memory_space<vmem>>, vector<4x256xbf16>,
    %c0_33 = arith.constant 0 : index
    %c1_34 = arith.constant 1 : index
    %c1_35 = arith.constant 1 : index
    %25 = vector.load %arg6[%c0_33, %c1_34, %c1_35] : memref<4x18x18xf32, #tpu.memory_space<vmem>>, vector<4x16x16xf32>
    %26 = vector.shape_cast %25 : vector<4x16x16xf32> to vector<4x256xf32>
    %27 = arith.truncf %26 : vector<4x256xf32> to vector<4x256xbf16>
    %c16 = arith.constant 16 : index
    %c0_36 = arith.constant 0 : index
    %28 = vector.load %arg7[%c16, %c0_36] : memref<36x256xbf16, #tpu.memory_space<vmem>>, vector<4x256xbf16>
    tpu.vector_store %arg7[%c16, %c0_36], %27 {strides = array<i32>} : memref<36x256xbf16, #tpu.memory_space<vmem>>, vector<4x256xbf16>,
    %c0_37 = arith.constant 0 : index
    %c1_38 = arith.constant 1 : index
    %c2_39 = arith.constant 2 : index
    %29 = vector.load %arg6[%c0_37, %c1_38, %c2_39] : memref<4x18x18xf32, #tpu.memory_space<vmem>>, vector<4x16x16xf32>
    %30 = vector.shape_cast %29 : vector<4x16x16xf32> to vector<4x256xf32>
    %31 = arith.truncf %30 : vector<4x256xf32> to vector<4x256xbf16>
    %c20 = arith.constant 20 : index
    %c0_40 = arith.constant 0 : index
    %32 = vector.load %arg7[%c20, %c0_40] : memref<36x256xbf16, #tpu.memory_space<vmem>>, vector<4x256xbf16>
    tpu.vector_store %arg7[%c20, %c0_40], %31 {strides = array<i32>} : memref<36x256xbf16, #tpu.memory_space<vmem>>, vector<4x256xbf16>,
    %c0_41 = arith.constant 0 : index
    %c2_42 = arith.constant 2 : index
    %c0_43 = arith.constant 0 : index
    %33 = vector.load %arg6[%c0_41, %c2_42, %c0_43] : memref<4x18x18xf32, #tpu.memory_space<vmem>>, vector<4x16x16xf32>
    %34 = vector.shape_cast %33 : vector<4x16x16xf32> to vector<4x256xf32>
    %35 = arith.truncf %34 : vector<4x256xf32> to vector<4x256xbf16>
    %c24 = arith.constant 24 : index
    %c0_44 = arith.constant 0 : index
    %36 = vector.load %arg7[%c24, %c0_44] : memref<36x256xbf16, #tpu.memory_space<vmem>>, vector<4x256xbf16>
    tpu.vector_store %arg7[%c24, %c0_44], %35 {strides = array<i32>} : memref<36x256xbf16, #tpu.memory_space<vmem>>, vector<4x256xbf16>,
    %c0_45 = arith.constant 0 : index
    %c2_46 = arith.constant 2 : index
    %c1_47 = arith.constant 1 : index
    %37 = vector.load %arg6[%c0_45, %c2_46, %c1_47] : memref<4x18x18xf32, #tpu.memory_space<vmem>>, vector<4x16x16xf32>
    %38 = vector.shape_cast %37 : vector<4x16x16xf32> to vector<4x256xf32>
    %39 = arith.truncf %38 : vector<4x256xf32> to vector<4x256xbf16>
    %c28 = arith.constant 28 : index
    %c0_48 = arith.constant 0 : index
    %40 = vector.load %arg7[%c28, %c0_48] : memref<36x256xbf16, #tpu.memory_space<vmem>>, vector<4x256xbf16>
    tpu.vector_store %arg7[%c28, %c0_48], %39 {strides = array<i32>} : memref<36x256xbf16, #tpu.memory_space<vmem>>, vector<4x256xbf16>,
    %c0_49 = arith.constant 0 : index
    %c2_50 = arith.constant 2 : index
    %c2_51 = arith.constant 2 : index
    %41 = vector.load %arg6[%c0_49, %c2_50, %c2_51] : memref<4x18x18xf32, #tpu.memory_space<vmem>>, vector<4x16x16xf32>
    %42 = vector.shape_cast %41 : vector<4x16x16xf32> to vector<4x256xf32>
    %43 = arith.truncf %42 : vector<4x256xf32> to vector<4x256xbf16>
    %c32 = arith.constant 32 : index
    %c0_52 = arith.constant 0 : index
    %44 = vector.load %arg7[%c32, %c0_52] : memref<36x256xbf16, #tpu.memory_space<vmem>>, vector<4x256xbf16>
    tpu.vector_store %arg7[%c32, %c0_52], %43 {strides = array<i32>} : memref<36x256xbf16, #tpu.memory_space<vmem>>, vector<4x256xbf16>,
    %c0_53 = arith.constant 0 : index
    %c0_54 = arith.constant 0 : index
    %45 = vector.load %arg2[%c0_53, %c0_54] : memref<8x36xbf16, #tpu.memory_space<vmem>>, vector<8x36xbf16>
    %c0_55 = arith.constant 0 : index
    %c0_56 = arith.constant 0 : index
    %46 = vector.load %arg7[%c0_55, %c0_56] : memref<36x256xbf16, #tpu.memory_space<vmem>>, vector<36x256xbf16>
    %cst_57 = arith.constant dense<0.000000e+00> : vector<8x256xf32>
    %47 = tpu.matmul %45, %46, %cst_57 {dimension_numbers = #tpu.dot_dimension_numbers<[1], [0], [0], [1], [0, 0, 1, 1], [], []>} : vector<8x36xbf16>, vector<36x256xbf16>, vector<8x256xf32> -> vector<8x256xf32>
    %c0_58 = arith.constant 0 : index
    %c0_59 = arith.constant 0 : index
    %48 = vector.load %arg3[%c0_58, %c0_59] : memref<8x1xf32, #tpu.memory_space<vmem>>, vector<8x1xf32>
    %49 = vector.broadcast %48 : vector<8x1xf32> to vector<8x256xf32>
    %50 = arith.addf %47, %49 : vector<8x256xf32>
    %cst_60 = arith.constant 0.000000e+00 : f32
    %51 = vector.broadcast %cst_60 : f32 to vector<8x256xf32>
    %52 = arith.maximumf %50, %51 : vector<8x256xf32>
    %c0_61 = arith.constant 0 : index
    %c0_62 = arith.constant 0 : index
    %53 = vector.load %arg4[%c0_61, %c0_62] : memref<256x25xf32, #tpu.memory_space<vmem>>, vector<256x25xf32>
    %cst_63 = arith.constant dense<0.000000e+00> : vector<8x25xf32>
    %54 = tpu.matmul %52, %53, %cst_63 {dimension_numbers = #tpu.dot_dimension_numbers<[1], [0], [0], [1], [0, 0, 1, 1], [], []>} : vector<8x256xf32>, vector<256x25xf32>, vector<8x25xf32> -> vector<8x25xf32>
    %c0_64 = arith.constant 0 : index
    %c0_65 = arith.constant 0 : index
    %c0_66 = arith.constant 0 : index
    %55 = vector.load %arg5[%c0_64, %c0_65, %c0_66] : memref<2x8x25xf32, #tpu.memory_space<vmem>>, vector<1x8x25xf32>
    %56 = vector.shape_cast %55 : vector<1x8x25xf32> to vector<8x25xf32>
    %57 = vector.shape_cast %54 : vector<8x25xf32> to vector<1x8x25xf32>
    tpu.vector_store %arg5[%c0_64, %c0_65, %c0_66], %57 {strides = array<i32>} : memref<2x8x25xf32, #tpu.memory_space<vmem>>, vector<1x8x25xf32>,
    %c1_67 = arith.constant 1 : index
    %c0_68 = arith.constant 0 : index
    %c0_69 = arith.constant 0 : index
    %c0_70 = arith.constant 0 : index
    %58 = vector.load %arg1[%c1_67, %c0_68, %c0_69, %c0_70] : memref<2x4x16x16xf32, #tpu.memory_space<vmem>>, vector<1x4x16x16xf32>
    %59 = vector.shape_cast %58 : vector<1x4x16x16xf32> to vector<4x16x16xf32>
    %c0_71 = arith.constant 0 : index
    %c1_72 = arith.constant 1 : index
    %c1_73 = arith.constant 1 : index
    %60 = vector.load %arg6[%c0_71, %c1_72, %c1_73] : memref<4x18x18xf32, #tpu.memory_space<vmem>>, vector<4x16x16xf32>
    tpu.vector_store %arg6[%c0_71, %c1_72, %c1_73], %59 {strides = array<i32>} : memref<4x18x18xf32, #tpu.memory_space<vmem>>, vector<4x16x16xf32>,
    %c0_74 = arith.constant 0 : index
    %c0_75 = arith.constant 0 : index
    %c0_76 = arith.constant 0 : index
    %61 = vector.load %arg6[%c0_74, %c0_75, %c0_76] : memref<4x18x18xf32, #tpu.memory_space<vmem>>, vector<4x16x16xf32>
    %62 = vector.shape_cast %61 : vector<4x16x16xf32> to vector<4x256xf32>
    %63 = arith.truncf %62 : vector<4x256xf32> to vector<4x256xbf16>
    %c0_77 = arith.constant 0 : index
    %c0_78 = arith.constant 0 : index
    %64 = vector.load %arg7[%c0_77, %c0_78] : memref<36x256xbf16, #tpu.memory_space<vmem>>, vector<4x256xbf16>
    tpu.vector_store %arg7[%c0_77, %c0_78], %63 {strides = array<i32>} : memref<36x256xbf16, #tpu.memory_space<vmem>>, vector<4x256xbf16>,
    %c0_79 = arith.constant 0 : index
    %c0_80 = arith.constant 0 : index
    %c1_81 = arith.constant 1 : index
    %65 = vector.load %arg6[%c0_79, %c0_80, %c1_81] : memref<4x18x18xf32, #tpu.memory_space<vmem>>, vector<4x16x16xf32>
    %66 = vector.shape_cast %65 : vector<4x16x16xf32> to vector<4x256xf32>
    %67 = arith.truncf %66 : vector<4x256xf32> to vector<4x256xbf16>
    %c4_82 = arith.constant 4 : index
    %c0_83 = arith.constant 0 : index
    %68 = vector.load %arg7[%c4_82, %c0_83] : memref<36x256xbf16, #tpu.memory_space<vmem>>, vector<4x256xbf16>
    tpu.vector_store %arg7[%c4_82, %c0_83], %67 {strides = array<i32>} : memref<36x256xbf16, #tpu.memory_space<vmem>>, vector<4x256xbf16>,
    %c0_84 = arith.constant 0 : index
    %c0_85 = arith.constant 0 : index
    %c2_86 = arith.constant 2 : index
    %69 = vector.load %arg6[%c0_84, %c0_85, %c2_86] : memref<4x18x18xf32, #tpu.memory_space<vmem>>, vector<4x16x16xf32>
    %70 = vector.shape_cast %69 : vector<4x16x16xf32> to vector<4x256xf32>
    %71 = arith.truncf %70 : vector<4x256xf32> to vector<4x256xbf16>
    %c8_87 = arith.constant 8 : index
    %c0_88 = arith.constant 0 : index
    %72 = vector.load %arg7[%c8_87, %c0_88] : memref<36x256xbf16, #tpu.memory_space<vmem>>, vector<4x256xbf16>
    tpu.vector_store %arg7[%c8_87, %c0_88], %71 {strides = array<i32>} : memref<36x256xbf16, #tpu.memory_space<vmem>>, vector<4x256xbf16>,
    %c0_89 = arith.constant 0 : index
    %c1_90 = arith.constant 1 : index
    %c0_91 = arith.constant 0 : index
    %73 = vector.load %arg6[%c0_89, %c1_90, %c0_91] : memref<4x18x18xf32, #tpu.memory_space<vmem>>, vector<4x16x16xf32>
    %74 = vector.shape_cast %73 : vector<4x16x16xf32> to vector<4x256xf32>
    %75 = arith.truncf %74 : vector<4x256xf32> to vector<4x256xbf16>
    %c12_92 = arith.constant 12 : index
    %c0_93 = arith.constant 0 : index
    %76 = vector.load %arg7[%c12_92, %c0_93] : memref<36x256xbf16, #tpu.memory_space<vmem>>, vector<4x256xbf16>
    tpu.vector_store %arg7[%c12_92, %c0_93], %75 {strides = array<i32>} : memref<36x256xbf16, #tpu.memory_space<vmem>>, vector<4x256xbf16>,
    %c0_94 = arith.constant 0 : index
    %c1_95 = arith.constant 1 : index
    %c1_96 = arith.constant 1 : index
    %77 = vector.load %arg6[%c0_94, %c1_95, %c1_96] : memref<4x18x18xf32, #tpu.memory_space<vmem>>, vector<4x16x16xf32>
    %78 = vector.shape_cast %77 : vector<4x16x16xf32> to vector<4x256xf32>
    %79 = arith.truncf %78 : vector<4x256xf32> to vector<4x256xbf16>
    %c16_97 = arith.constant 16 : index
    %c0_98 = arith.constant 0 : index
    %80 = vector.load %arg7[%c16_97, %c0_98] : memref<36x256xbf16, #tpu.memory_space<vmem>>, vector<4x256xbf16>
    tpu.vector_store %arg7[%c16_97, %c0_98], %79 {strides = array<i32>} : memref<36x256xbf16, #tpu.memory_space<vmem>>, vector<4x256xbf16>,
    %c0_99 = arith.constant 0 : index
    %c1_100 = arith.constant 1 : index
    %c2_101 = arith.constant 2 : index
    %81 = vector.load %arg6[%c0_99, %c1_100, %c2_101] : memref<4x18x18xf32, #tpu.memory_space<vmem>>, vector<4x16x16xf32>
    %82 = vector.shape_cast %81 : vector<4x16x16xf32> to vector<4x256xf32>
    %83 = arith.truncf %82 : vector<4x256xf32> to vector<4x256xbf16>
    %c20_102 = arith.constant 20 : index
    %c0_103 = arith.constant 0 : index
    %84 = vector.load %arg7[%c20_102, %c0_103] : memref<36x256xbf16, #tpu.memory_space<vmem>>, vector<4x256xbf16>
    tpu.vector_store %arg7[%c20_102, %c0_103], %83 {strides = array<i32>} : memref<36x256xbf16, #tpu.memory_space<vmem>>, vector<4x256xbf16>,
    %c0_104 = arith.constant 0 : index
    %c2_105 = arith.constant 2 : index
    %c0_106 = arith.constant 0 : index
    %85 = vector.load %arg6[%c0_104, %c2_105, %c0_106] : memref<4x18x18xf32, #tpu.memory_space<vmem>>, vector<4x16x16xf32>
    %86 = vector.shape_cast %85 : vector<4x16x16xf32> to vector<4x256xf32>
    %87 = arith.truncf %86 : vector<4x256xf32> to vector<4x256xbf16>
    %c24_107 = arith.constant 24 : index
    %c0_108 = arith.constant 0 : index
    %88 = vector.load %arg7[%c24_107, %c0_108] : memref<36x256xbf16, #tpu.memory_space<vmem>>, vector<4x256xbf16>
    tpu.vector_store %arg7[%c24_107, %c0_108], %87 {strides = array<i32>} : memref<36x256xbf16, #tpu.memory_space<vmem>>, vector<4x256xbf16>,
    %c0_109 = arith.constant 0 : index
    %c2_110 = arith.constant 2 : index
    %c1_111 = arith.constant 1 : index
    %89 = vector.load %arg6[%c0_109, %c2_110, %c1_111] : memref<4x18x18xf32, #tpu.memory_space<vmem>>, vector<4x16x16xf32>
    %90 = vector.shape_cast %89 : vector<4x16x16xf32> to vector<4x256xf32>
    %91 = arith.truncf %90 : vector<4x256xf32> to vector<4x256xbf16>
    %c28_112 = arith.constant 28 : index
    %c0_113 = arith.constant 0 : index
    %92 = vector.load %arg7[%c28_112, %c0_113] : memref<36x256xbf16, #tpu.memory_space<vmem>>, vector<4x256xbf16>
    tpu.vector_store %arg7[%c28_112, %c0_113], %91 {strides = array<i32>} : memref<36x256xbf16, #tpu.memory_space<vmem>>, vector<4x256xbf16>,
    %c0_114 = arith.constant 0 : index
    %c2_115 = arith.constant 2 : index
    %c2_116 = arith.constant 2 : index
    %93 = vector.load %arg6[%c0_114, %c2_115, %c2_116] : memref<4x18x18xf32, #tpu.memory_space<vmem>>, vector<4x16x16xf32>
    %94 = vector.shape_cast %93 : vector<4x16x16xf32> to vector<4x256xf32>
    %95 = arith.truncf %94 : vector<4x256xf32> to vector<4x256xbf16>
    %c32_117 = arith.constant 32 : index
    %c0_118 = arith.constant 0 : index
    %96 = vector.load %arg7[%c32_117, %c0_118] : memref<36x256xbf16, #tpu.memory_space<vmem>>, vector<4x256xbf16>
    tpu.vector_store %arg7[%c32_117, %c0_118], %95 {strides = array<i32>} : memref<36x256xbf16, #tpu.memory_space<vmem>>, vector<4x256xbf16>,
    %c0_119 = arith.constant 0 : index
    %c0_120 = arith.constant 0 : index
    %97 = vector.load %arg2[%c0_119, %c0_120] : memref<8x36xbf16, #tpu.memory_space<vmem>>, vector<8x36xbf16>
    %c0_121 = arith.constant 0 : index
    %c0_122 = arith.constant 0 : index
    %98 = vector.load %arg7[%c0_121, %c0_122] : memref<36x256xbf16, #tpu.memory_space<vmem>>, vector<36x256xbf16>
    %cst_123 = arith.constant dense<0.000000e+00> : vector<8x256xf32>
    %99 = tpu.matmul %97, %98, %cst_123 {dimension_numbers = #tpu.dot_dimension_numbers<[1], [0], [0], [1], [0, 0, 1, 1], [], []>} : vector<8x36xbf16>, vector<36x256xbf16>, vector<8x256xf32> -> vector<8x256xf32>
    %c0_124 = arith.constant 0 : index
    %c0_125 = arith.constant 0 : index
    %100 = vector.load %arg3[%c0_124, %c0_125] : memref<8x1xf32, #tpu.memory_space<vmem>>, vector<8x1xf32>
    %101 = vector.broadcast %100 : vector<8x1xf32> to vector<8x256xf32>
    %102 = arith.addf %99, %101 : vector<8x256xf32>
    %cst_126 = arith.constant 0.000000e+00 : f32
    %103 = vector.broadcast %cst_126 : f32 to vector<8x256xf32>
    %104 = arith.maximumf %102, %103 : vector<8x256xf32>
    %c0_127 = arith.constant 0 : index
    %c0_128 = arith.constant 0 : index
    %105 = vector.load %arg4[%c0_127, %c0_128] : memref<256x25xf32, #tpu.memory_space<vmem>>, vector<256x25xf32>
    %cst_129 = arith.constant dense<0.000000e+00> : vector<8x25xf32>
    %106 = tpu.matmul %104, %105, %cst_129 {dimension_numbers = #tpu.dot_dimension_numbers<[1], [0], [0], [1], [0, 0, 1, 1], [], []>} : vector<8x256xf32>, vector<256x25xf32>, vector<8x25xf32> -> vector<8x25xf32>
    %c1_130 = arith.constant 1 : index
    %c0_131 = arith.constant 0 : index
    %c0_132 = arith.constant 0 : index
    %107 = vector.load %arg5[%c1_130, %c0_131, %c0_132] : memref<2x8x25xf32, #tpu.memory_space<vmem>>, vector<1x8x25xf32>
    %108 = vector.shape_cast %107 : vector<1x8x25xf32> to vector<8x25xf32>
    %109 = vector.shape_cast %106 : vector<8x25xf32> to vector<1x8x25xf32>
    tpu.vector_store %arg5[%c1_130, %c0_131, %c0_132], %109 {strides = array<i32>} : memref<2x8x25xf32, #tpu.memory_space<vmem>>, vector<1x8x25xf32>,
    return
  }
  func.func @transform_0(%arg0: i32) -> (i32, i32, i32, i32) {
    %c0_i32 = arith.constant 0 : i32
    %c0_i32_0 = arith.constant 0 : i32
    %c0_i32_1 = arith.constant 0 : i32
    %c0_i32_2 = arith.constant 0 : i32
    return %arg0, %c0_i32, %c0_i32_0, %c0_i32_1 : i32, i32, i32, i32
  }
  func.func @transform_1(%arg0: i32) -> (i32, i32) {
    %c0_i32 = arith.constant 0 : i32
    %c0_i32_0 = arith.constant 0 : i32
    %c0_i32_1 = arith.constant 0 : i32
    return %c0_i32, %c0_i32_0 : i32, i32
  }
  func.func @transform_2(%arg0: i32) -> (i32, i32) {
    %c0_i32 = arith.constant 0 : i32
    %c0_i32_0 = arith.constant 0 : i32
    %c0_i32_1 = arith.constant 0 : i32
    return %c0_i32, %c0_i32_0 : i32, i32
  }
  func.func @transform_3(%arg0: i32) -> (i32, i32) {
    %c0_i32 = arith.constant 0 : i32
    %c0_i32_0 = arith.constant 0 : i32
    %c0_i32_1 = arith.constant 0 : i32
    return %c0_i32, %c0_i32_0 : i32, i32
  }
  func.func @transform_4(%arg0: i32) -> (i32, i32, i32) {
    %c0_i32 = arith.constant 0 : i32
    %c0_i32_0 = arith.constant 0 : i32
    %c0_i32_1 = arith.constant 0 : i32
    return %arg0, %c0_i32, %c0_i32_0 : i32, i32, i32
  }
}

</mosaic_0001>

<bundles_post_ra>
// kernel: tpu_custom_call.1
= control target key start
LH: loop header
LB: loop body
LE: loop exit
PB: predicated region body
PF: predicated region fallthrough
CT: control target
= control target key end

     0   :  { %s5285_s19 = smov 1   ;;  %s8480_s0 = inlined_call_operand.vmem [shape: f32[2,4,16,16], index: 0, kind: input, shape index: {}]   ;;  %s8481_s1 = inlined_call_operand.vmem [shape: bf16[8,36], index: 1, kind: input, shape index: {}]   ;;  %s8482_s2 = inlined_call_operand.vmem [shape: f32[8,1], index: 2, kind: input, shape index: {}]   ;;  %s8483_s3 = inlined_call_operand.vmem [shape: f32[256,25], index: 3, kind: input, shape index: {}]   ;;  %s8484_s4 = inlined_call_operand.hbm [shape: f32[2,8,25], index: 4, kind: output, shape index: {}]  }
   0x1   :  { %v58_v0 = vld [vmem:[%s8480_s0 + $0x10] sm:$0xff]  ;;  %v56_v1 = vld [vmem:[%s8480_s0] sm:$0xff] }
   0x2   :  { %76 = vrot.lane.b32.xlu1 %v58_v0, %s5285_s19  ;;  %72 = vrot.lane.b32.xlu0 %v56_v1, %s5285_s19  ;;  %v60_v2 = vld [vmem:[%s8480_s0 + $0x20] sm:$0xff] }
   0x3   :  { %80 = vrot.lane.b32.xlu2 %v60_v2, %s5285_s19 }
   0x4   :  { %9 = vsyncpa [#allocation5], 0  ;;  %v59_v3 = vld [vmem:[%s8480_s0 + $0x18] sm:$0xff]  ;;  %v57_v4 = vld [vmem:[%s8480_s0 + $0x8] sm:$0xff]  ;;  %vm19_vm0 = vcmask 139264   ;;  %vm28_vm1 = vcmask 7168  }
   0x5   :  { %v61_v5 = vld [vmem:[%s8480_s0 + $0x28] sm:$0xff]  ;;  %v63_v6 = vld [vmem:[%s8480_s0 + $0x38] sm:$0xff]  ;;  %v62_v7 = vld [vmem:[%s8480_s0 + $0x30] sm:$0xff]  ;;  %v5286_v8 = vmov 0.0   ;;  %vm42_vm2 = vcmask 146568   ;;  %vm31_vm3 = vcmask 1024  }
   0x6   :  { %22 = vst.msk [vmem:[#allocation2 + $0x30] sm:$0x1] %vm19_vm0, %v5286_v8  ;;  %vm45_vm4 = vcmask 140424   ;;  %v5287_v9 = vmov 0   ;;  %v2051_v10 = vld [vmem:[%s8482_s2] sm:$0xff]  ;;  %vm96_vm5 = vcmask 138248  }
   0x7   :  { %36 = vst.msk [vmem:[#allocation2 + $0x30] sm:$0xff] %vm28_vm1, %v5286_v8  ;;  %4411 = vset.pattern.permute.xlu2 %v5287_v9  ;;  %5257 = vset.pattern.permute.xlu1 %v5287_v9  ;;  %s5288_s8 = smov 127   ;;  %s5289_s9 = smov 126   ;;  %v5290_v43 = vmov 1983009808   ;;  %vm114_vm6 = vcmask 1047556  }
   0x8   :  { %37 = vst.msk [vmem:[#allocation2 + $0x38] sm:$0xff] %vm28_vm1, %v5286_v8  ;;  %5258 = vset.pattern.permute.xlu0 %v5287_v9  ;;  %v119_v44 = vunpack.c.l.s4 %v5290_v43  ;;  %v5291_v59 = vmov 1934713408   ;;  %s5292_s10 = smov 64   ;;  %s5293_s11 = smov 96   ;;  %vm282_vm7 = vcmask 130048  }
   0x9   :  { %50 = vst.msk [vmem:[#allocation2 + $0x30] sm:$0xff] %vm42_vm2, %v5286_v8  ;;  %v143_v60 = vunpack.c.l.s4 %v5291_v59  ;;  %s5294_s12 = smov 32   ;;  %s5295_s13 = smov 16   ;;  %vm284_vm8 = vcmask 261120   ;;  %vm286_vm9 = vcmask 392192   ;;  %vm288_vm10 = vcmask 523264  }
   0xa   :  { %78 = vrot.lane.b32.xlu1 %v59_v3, %s5285_s19  ;;  %74 = vrot.lane.b32.xlu0 %v57_v4, %s5285_s19  ;;  %51 = vst.msk [vmem:[#allocation2 + $0x38] sm:$0xff] %vm42_vm2, %v5286_v8  ;;  %v5456_v51 = vunpack.c.0.s8 %v119_v44  ;;  %s5296_s14 = smov 48   ;;  %s5297_s15 = smov 80   ;;  %vm290_vm11 = vcmask 654336   ;;  %vm292_vm12 = vcmask 785408   ;;  %vm294_vm13 = vcmask 916480  }
   0xb   :  { %82 = vrot.lane.b32.xlu2 %v61_v5, %s5285_s19  ;;  %20 = vst.msk [vmem:[#allocation2] sm:$0x1] %vm19_vm0, %v5286_v8  ;;  %s5298_s16 = smov 112   ;;  %vm2086_vm14 = vcmask 1041408   ;;  %vm2082_vm15 = vcmask 293888   ;;  %s5299_s28 = smov [#allocation4]  }
   0xc   :  { %21 = vst.msk [vmem:[#allocation2 + $0x18] sm:$0x1] %vm19_vm0, %v5286_v8  ;;  %s4328_s29 = sshll.u32 %s5299_s28, 4  ;;  %s5300_s6 = smov 128   ;;  %s4329_s29 = int_to_ptr.vmem [resolvable:$true] %s4328_s29 }
   0xd   :  { %23 = vst.msk [vmem:[#allocation2 + $0x48] sm:$0x1] %vm19_vm0, %v5286_v8 }
   0xe   :  { %24 = vst.msk [vmem:[#allocation2 + $0x11] sm:$0x1] %vm19_vm0, %v5286_v8 }
   0xf   :  { %25 = vst.msk [vmem:[#allocation2 + $0x29] sm:$0x1] %vm19_vm0, %v5286_v8 }
  0x10   :  { %26 = vst.msk [vmem:[#allocation2 + $0x41] sm:$0x1] %vm19_vm0, %v5286_v8 }
  0x11   :  { %27 = vst.msk [vmem:[#allocation2 + $0x59] sm:$0x1] %vm19_vm0, %v5286_v8  ;;  %vm2193_vm0 = vcmask 203776  }
  0x12   :  { %86 = vrot.lane.b32.xlu1 %v63_v6, %s5285_s19  ;;  %84 = vrot.lane.b32.xlu0 %v62_v7, %s5285_s19  ;;  %30 = vst.msk [vmem:[#allocation2 + $0x8] sm:$0xff] %vm28_vm1, %v5286_v8 }
  0x13   :  { %34 = vst.msk [vmem:[#allocation2 + $0x20] sm:$0xff] %vm28_vm1, %v5286_v8  ;;  %2054 = vperm.xlu2 %4411, %v2051_v10   ;;  %v5495_v10 = vunpack.c.0.s8 %v143_v60 }
  0x14   :  { %40 = vst.msk [vmem:[#allocation2 + $0x50] sm:$0xff] %vm28_vm1, %v5286_v8 }
  0x15   :  { %38 = vst.msk [vmem:[#allocation2 + $0x40] sm:$0x3] %vm31_vm3, %v5286_v8 }
  0x16   :  { %52 = vst.msk [vmem:[#allocation2 + $0x40] sm:$0x3] %vm45_vm4, %v5286_v8 }
  0x17   :  { %29 = vst.msk [vmem:[#allocation2] sm:$0xff] %vm28_vm1, %v5286_v8 }
  0x18   :  { %32 = vst.msk [vmem:[#allocation2 + $0x10] sm:$0x3] %vm31_vm3, %v5286_v8 }
  0x19   :  { %33 = vst.msk [vmem:[#allocation2 + $0x18] sm:$0xff] %vm28_vm1, %v5286_v8 }
  0x1a   :  { %35 = vst.msk [vmem:[#allocation2 + $0x28] sm:$0x3] %vm31_vm3, %v5286_v8 }
  0x1b   :  { %39 = vst.msk [vmem:[#allocation2 + $0x48] sm:$0xff] %vm28_vm1, %v5286_v8 }
  0x1c   :  { %41 = vst.msk [vmem:[#allocation2 + $0x58] sm:$0x3] %vm31_vm3, %v5286_v8 }
  0x1d   :  { %44 = vst.msk [vmem:[#allocation2 + $0x8] sm:$0xff] %vm42_vm2, %v5286_v8 }
  0x1e   :  { %48 = vst.msk [vmem:[#allocation2 + $0x20] sm:$0xff] %vm42_vm2, %v5286_v8 }
  0x1f   :  { %54 = vst.msk [vmem:[#allocation2 + $0x50] sm:$0xff] %vm42_vm2, %v5286_v8 }
  0x20   :  { %47 = vst.msk [vmem:[#allocation2 + $0x18] sm:$0xff] %vm42_vm2, %v5286_v8 }
  0x21   :  { %43 = vst.msk [vmem:[#allocation2] sm:$0xff] %vm42_vm2, %v5286_v8 }
  0x22   :  { %46 = vst.msk [vmem:[#allocation2 + $0x10] sm:$0x3] %vm45_vm4, %v5286_v8 }
  0x23   :  { %49 = vst.msk [vmem:[#allocation2 + $0x28] sm:$0x3] %vm45_vm4, %v5286_v8 }
  0x24   :  { %53 = vst.msk [vmem:[#allocation2 + $0x48] sm:$0xff] %vm42_vm2, %v5286_v8 }
  0x25   :  { %55 = vst.msk [vmem:[#allocation2 + $0x58] sm:$0x3] %vm45_vm4, %v5286_v8 }
  0x26   :  { %8562 = vst [vmem:[#allocation7_spill] sm:$0xff] %v5456_v51 }
  0x5d   :  { %v81_v11 = vpop.permute.xlu2 %80 }
  0x5e   :  { %101 = vst.msk [vmem:[#allocation2 + $0x31] sm:$0xff] %vm96_vm5, %v81_v11 }
  0x65   :  { %v83_v12 = vpop.permute.xlu2 %82  ;;  %v5384_v13 = vld [vmem:[#allocation2 + $0x30] sm:$0xff] }
  0x66   :  { %102 = vst.msk [vmem:[#allocation2 + $0x39] sm:$0xff] %vm96_vm5, %v83_v12  ;;  %v955_v33 = vld [vmem:[#allocation2 + $0x31] sm:$0xff]  ;;  %v113_v46 = vrot.slane %v5384_v13, 4 }
  0x67   :  { %v764_v45 = vrot.slane %v955_v33, 4 }
  0x6d   :  { %v5386_v14 = vld [vmem:[#allocation2 + $0x38] sm:$0xff] }
  0x6e   :  { %v4422_v15 = vpack.i.bf16 %v5386_v14, %v5384_v13  ;;  %v5421_v31 = vld [vmem:[#allocation2 + $0x39] sm:$0xff]  ;;  %v170_v9 = vrot.slane %v5386_v14, 4 }
  0x6f   :  { %v4462_v34 = vpack.i.bf16 %v5421_v31, %v955_v33  ;;  %v5453_v49 = vld [vmem:[#allocation2 + $0x3a] sm:$0xff]  ;;  %v5465_v57 = vld [vmem:[#allocation2 + $0x32] sm:$0xff]  ;;  %v820_v62 = vrot.slane %v5421_v31, 4 }
  0x70   :  { %4423 = vrot.lane.b32.xlu2 %v4422_v15, %s5288_s8  ;;  %v4502_v0 = vpack.i.bf16 %v5453_v49, %v5465_v57 }
  0x74   :  { %v77_v16 = vpop.permute.xlu1 %76  ;;  %v73_v17 = vpop.permute.xlu0 %72 }
  0x75   :  { %99 = vst.msk [vmem:[#allocation2 + $0x19] sm:$0xff] %vm96_vm5, %v77_v16 }
  0x76   :  { %97 = vst.msk [vmem:[#allocation2 + $0x1] sm:$0xff] %vm96_vm5, %v73_v17 }
  0x7c   :  { %v79_v18 = vpop.permute.xlu1 %78  ;;  %v75_v19 = vpop.permute.xlu0 %74  ;;  %v5395_v22 = vld [vmem:[#allocation2 + $0x18] sm:$0xff] }
  0x7d   :  { %100 = vst.msk [vmem:[#allocation2 + $0x21] sm:$0xff] %vm96_vm5, %v79_v18  ;;  %v5402_v25 = vld [vmem:[#allocation2] sm:$0xff]  ;;  %v128_v52 = vrot.slane %v5395_v22, 4  ;;  %v1466_v18 = vrot.slane %v5453_v49, 4 }
  0x7e   :  { %98 = vst.msk [vmem:[#allocation2 + $0x9] sm:$0xff] %vm96_vm5, %v75_v19  ;;  %v951_v35 = vld [vmem:[#allocation2 + $0x1] sm:$0xff]  ;;  %v5436_v40 = vld [vmem:[#allocation2 + $0x19] sm:$0xff]  ;;  %v116_v50 = vrot.slane %v5402_v25, 4  ;;  %v115_v1 = vsel %vm114_vm6, %v113_v46, %v5402_v25 }
  0x7f   :  { %v765_v56 = vsel %vm114_vm6, %v764_v45, %v951_v35  ;;  %v766_v2 = vrot.slane %v951_v35, 4  ;;  %v5500_v12 = vperm.slane %v115_v1, %v5456_v51  ;;  %v778_v16 = vrot.slane %v5436_v40, 4 }
  0x80   :  { %v117_v4 = vsel %vm114_vm6, %v5384_v13, %v116_v50  ;;  %v5486_v6 = vperm.slane %v765_v56, %v5456_v51  ;;  %v1410_v13 = vrot.slane %v5465_v57, 4 }
  0x81   :  { %v767_v17 = vsel %vm114_vm6, %v955_v33, %v766_v2 }
  0x84   :  { %v87_v20 = vpop.permute.xlu1 %86  ;;  %v85_v21 = vpop.permute.xlu0 %84  ;;  %v5397_v23 = vld [vmem:[#allocation2 + $0x20] sm:$0xff] }
  0x85   :  { %104 = vst.msk [vmem:[#allocation2 + $0x51] sm:$0xff] %vm96_vm5, %v87_v20  ;;  %v4417_v24 = vpack.i.bf16 %v5397_v23, %v5395_v22  ;;  %v5404_v26 = vld [vmem:[#allocation2 + $0x8] sm:$0xff]  ;;  %v184_v53 = vrot.slane %v5397_v23, 4  ;;  %v5460_v54 = vld [vmem:[#allocation2 + $0x1a] sm:$0xff] }
  0x86   :  { %103 = vst.msk [vmem:[#allocation2 + $0x49] sm:$0xff] %vm96_vm5, %v85_v21  ;;  %v4432_v27 = vpack.i.bf16 %v5404_v26, %v5402_v25  ;;  %v5423_v32 = vld [vmem:[#allocation2 + $0x9] sm:$0xff]  ;;  %v5430_v37 = vld [vmem:[#allocation2 + $0x21] sm:$0xff]  ;;  %v172_v5 = vrot.slane %v5404_v26, 4  ;;  %v790_v21 = vrot.slane %v5486_v6, 4  ;;  %v1424_v59 = vrot.slane %v5460_v54, 4 }
  0x87   :  { %4418 = vrot.lane.b32.xlu1 %v4417_v24, %s5288_s8  ;;  %v4452_v36 = vpack.i.bf16 %v5423_v32, %v951_v35  ;;  %v4457_v42 = vpack.i.bf16 %v5430_v37, %v5436_v40  ;;  %v5449_v47 = vld [vmem:[#allocation2 + $0x2] sm:$0xff]  ;;  %v5451_v48 = vld [vmem:[#allocation2 + $0xa] sm:$0xff]  ;;  %v821_v11 = vsel %vm114_vm6, %v820_v62, %v5423_v32 }
  0x88   :  { %4433 = vrot.lane.b32.xlu2 %v4432_v27, %s5289_s9  ;;  %4413 = vrot.lane.b32.xlu0 %v4432_v27, %s5288_s8  ;;  %v5462_v55 = vld [vmem:[#allocation2 + $0x22] sm:$0xff]  ;;  %v4492_v63 = vpack.i.bf16 %v5451_v48, %v5449_v47  ;;  %v173_v19 = vsel %vm114_vm6, %v5386_v14, %v172_v5  ;;  %v1412_v45 = vrot.slane %v5449_v47, 4  ;;  %v1468_v60 = vrot.slane %v5451_v48, 4 }
  0x89   :  { %v5480_v3 = vpack.i.bf16 %v5462_v55, %v5460_v54  ;;  %v181_v44 = vperm.slane %v173_v19, %v5456_v51 }
  0x8b   :  { %v208_v2 = vrot.slane %v181_v44, 4 }
  0x8c   :  { %v5434_v39 = vld [vmem:[#allocation2 + $0x51] sm:$0xff] }
  0x8d   :  { %v5412_v28 = vld [vmem:[#allocation2 + $0x48] sm:$0xff]  ;;  %v5414_v29 = vld [vmem:[#allocation2 + $0x50] sm:$0xff] }
  0x8e   :  { %v4447_v30 = vpack.i.bf16 %v5414_v29, %v5412_v28  ;;  %v5432_v38 = vld [vmem:[#allocation2 + $0x49] sm:$0xff]  ;;  %v129_v58 = vsel %vm114_vm6, %v5412_v28, %v128_v52  ;;  %v185_v61 = vsel %vm114_vm6, %v5414_v29, %v184_v53  ;;  %v5519_v35 = vld [vmem:[#allocation2 + $0x52] sm:$0xff]  ;;  %v126_v14 = vrot.slane %v5412_v28, 4 }
  0x8f   :  { %4443 = vrot.lane.b32.xlu1 %v4422_v15, %s5289_s9  ;;  %v4467_v41 = vpack.i.bf16 %v5434_v39, %v5432_v38  ;;  %v137_v7 = vperm.slane %v129_v58, %v5456_v51  ;;  %v193_v8 = vperm.slane %v185_v61, %v5456_v51  ;;  %v125_v15 = vperm.slane %v117_v4, %v5456_v51  ;;  %v5517_v33 = vld [vmem:[#allocation2 + $0x4a] sm:$0xff] }
  0x90   :  { %4448 = vrot.lane.b32.xlu2 %v4447_v30, %s5289_s9  ;;  %4428 = vrot.lane.b32.xlu0 %v4447_v30, %s5288_s8  ;;  %v776_v20 = vrot.slane %v5432_v38, 4  ;;  %v5513_v30 = vperm.slane %v821_v11, %v5456_v51  ;;  %v4507_v43 = vpack.i.bf16 %v5519_v35, %v5517_v33  ;;  %v779_v1 = vsel %vm114_vm6, %v5432_v38, %v778_v16 }
  0x91   :  { %v150_v25 = vrot.slane %v137_v7, 4  ;;  %v206_v27 = vrot.slane %v193_v8, 4  ;;  %v152_v46 = vrot.slane %v125_v15, 4  ;;  %v209_v38 = vsel %vm114_vm6, %v193_v8, %v208_v2 }
  0x92   :  { %v777_v28 = vsel %vm114_vm6, %v776_v20, %v5436_v40  ;;  %v846_v56 = vrot.slane %v5513_v30, 4  ;;  %v127_v40 = vsel %vm114_vm6, %v126_v14, %v5395_v22  ;;  %v787_v20 = vperm.slane %v779_v1, %v5456_v51 }
  0x93   :  { %v151_v52 = vsel %vm114_vm6, %v150_v25, %v125_v15  ;;  %v207_v53 = vsel %vm114_vm6, %v206_v27, %v181_v44  ;;  %v5553_v61 = vperm.slane %v777_v28, %v5456_v51  ;;  %v5572_v4 = vperm.slane %v127_v40, %v5456_v51 }
  0x94   :  { %v5563_v22 = vperm.slane %v151_v52, %v5495_v10  ;;  %v5612_v14 = vperm.slane %v209_v38, %v5495_v10  ;;  %v800_v44 = vrot.slane %v787_v20, 4 }
  0x95   :  { %v791_v16 = vsel %vm114_vm6, %v5553_v61, %v790_v21 }
  0x97   :  { %4463 = vrot.lane.b32.xlu1 %v4462_v34, %s5288_s8 }
  0x98   :  { %4453 = vrot.lane.b32.xlu2 %v4452_v36, %s5288_s8  ;;  %4438 = vrot.lane.b32.xlu0 %v4417_v24, %s5289_s9  ;;  %v832_v24 = vrot.slane %v5434_v39, 4 }
  0x9a   :  { %v833_v50 = vsel %vm114_vm6, %v832_v24, %v5430_v37  ;;  %v1469_v24 = vsel %vm114_vm6, %v5453_v49, %v1468_v60 }
  0x9f   :  { %4473 = vrot.lane.b32.xlu1 %v4452_v36, %s5289_s9  ;;  %v140_v36 = vrot.slane %v5500_v12, 4 }
  0xa0   :  { %4468 = vrot.lane.b32.xlu2 %v4467_v41, %s5288_s8  ;;  %4458 = vrot.lane.b32.xlu0 %v4457_v42, %s5288_s8 }
  0xa1   :  { %v141_v21 = vsel %vm114_vm6, %v5572_v4, %v140_v36 }
  0xa7   :  { %4488 = vrot.lane.b32.xlu1 %v4467_v41, %s5289_s9  ;;  %v182_v41 = vrot.slane %v5414_v29, 4 }
  0xa8   :  { %4478 = vrot.lane.b32.xlu2 %v4457_v42, %s5289_s9  ;;  %4483 = vrot.lane.b32.xlu0 %v4462_v34, %s5289_s9  ;;  %v171_v34 = vsel %vm114_vm6, %v170_v9, %v5404_v26  ;;  %v5525_v42 = vperm.slane %v767_v17, %v5456_v51  ;;  %v822_v26 = vrot.slane %v5423_v32, 4  ;;  %v834_v32 = vrot.slane %v5430_v37, 4 }
  0xa9   :  { %v5537_v29 = vperm.slane %v171_v34, %v5456_v51  ;;  %v183_v58 = vsel %vm114_vm6, %v182_v41, %v5397_v23  ;;  %v5556_v37 = vperm.slane %v833_v50, %v5456_v51  ;;  %v5566_v23 = vperm.slane %v207_v53, %v5495_v10 }
  0xaa   :  { %v823_v62 = vsel %vm114_vm6, %v5421_v31, %v822_v26  ;;  %v5575_v31 = vperm.slane %v183_v58, %v5456_v51  ;;  %v835_v5 = vsel %vm114_vm6, %v5434_v39, %v834_v32  ;;  %v153_v9 = vsel %vm114_vm6, %v137_v7, %v152_v46 }
  0xab   :  { %v831_v11 = vperm.slane %v823_v62, %v5456_v51  ;;  %v1480_v17 = vrot.slane %v5462_v55, 4  ;;  %v847_v19 = vsel %vm114_vm6, %v5556_v37, %v846_v56  ;;  %v4537_v39 = vpack.i.bf16 %v5566_v23, %v5563_v22 }
  0xac   :  { %v843_v7 = vperm.slane %v835_v5, %v5456_v51  ;;  %v5601_v8 = vperm.slane %v153_v9, %v5495_v10  ;;  %v1425_v34 = vsel %vm114_vm6, %v5517_v33, %v1424_v59  ;;  %v5618_v41 = vperm.slane %v847_v19, %v5495_v10 }
  0xad   :  { %v1481_v25 = vsel %vm114_vm6, %v5519_v35, %v1480_v17  ;;  %v802_v36 = vrot.slane %v5525_v42, 4  ;;  %v1477_v26 = vperm.slane %v1469_v24, %v5456_v51  ;;  %v5631_v46 = vperm.slane %v141_v21, %v5495_v10 }
  0xae   :  { %v856_v50 = vrot.slane %v843_v7, 4  ;;  %v1433_v52 = vperm.slane %v1425_v34, %v5456_v51  ;;  %v194_v32 = vrot.slane %v5575_v31, 4  ;;  %v801_v56 = vsel %vm114_vm6, %v800_v44, %v5525_v42 }
  0xaf   :  { %4493 = vrot.lane.b32.xlu1 %v4492_v63, %s5288_s8  ;;  %v1504_v40 = vrot.slane %v1477_v26, 4  ;;  %v803_v58 = vsel %vm114_vm6, %v787_v20, %v802_v36  ;;  %v858_v59 = vrot.slane %v831_v11, 4  ;;  %v5674_v5 = vperm.slane %v801_v56, %v5495_v10 }
  0xb0   :  { %4498 = vrot.lane.b32.xlu2 %v5480_v3, %s5288_s8  ;;  %4503 = vrot.lane.b32.xlu0 %v4502_v0, %s5288_s8  ;;  %v5683_v9 = vperm.slane %v803_v58, %v5495_v10  ;;  %v1446_v38 = vrot.slane %v1433_v52, 4  ;;  %v164_v58 = vrot.slane %v5631_v46, 4 }
  0xb1   :  { %v859_v42 = vsel %vm114_vm6, %v843_v7, %v858_v59  ;;  %v224_v59 = vrot.slane %v5612_v14, 4 }
  0xb7   :  { %4508 = vrot.lane.b32.xlu1 %v4507_v43, %s5288_s8 }
  0xb8   :  { %4523 = vrot.lane.b32.xlu2 %v4502_v0, %s5289_s9  ;;  %4513 = vrot.lane.b32.xlu0 %v4492_v63, %s5289_s9  ;;  %v1413_v63 = vsel %vm114_vm6, %v5465_v57, %v1412_v45  ;;  %v196_v0 = vrot.slane %v5537_v29, 4  ;;  %v1467_v45 = vsel %vm114_vm6, %v1466_v18, %v5451_v48  ;;  %v1489_v57 = vperm.slane %v1481_v25, %v5456_v51 }
  0xb9   :  { %v5582_v15 = vperm.slane %v1413_v63, %v5456_v51  ;;  %v4542_v48 = vpack.i.bf16 %v5612_v14, %v5601_v8  ;;  %v138_v18 = vrot.slane %v5572_v4, 4  ;;  %v5667_v2 = vperm.slane %v1467_v45, %v5456_v51 }
  0xba   :  { %v197_v27 = vsel %vm114_vm6, %v5575_v31, %v196_v0  ;;  %v1505_v63 = vsel %vm114_vm6, %v1489_v57, %v1504_v40  ;;  %v195_v31 = vsel %vm114_vm6, %v194_v32, %v5537_v29  ;;  %v222_v32 = vrot.slane %v5566_v23, 4 }
  0xbb   :  { %v5634_v28 = vperm.slane %v197_v27, %v5495_v10  ;;  %v1448_v53 = vrot.slane %v5582_v15, 4  ;;  %v139_v4 = vsel %vm114_vm6, %v138_v18, %v5500_v12  ;;  %v5689_v12 = vperm.slane %v859_v42, %v5495_v10  ;;  %v5711_v27 = vpop.permute.xlu2 %2054 }
  0xbc   :  { %v5698_v19 = vperm.slane %v139_v4, %v5495_v10  ;;  %v5701_v20 = vperm.slane %v195_v31, %v5495_v10  ;;  %v1492_v7 = vrot.slane %v5667_v2, 4  ;;  %8563 = vst [vmem:[#allocation8_spill] sm:$0xff] %v5711_v27  ;;  %v1447_v44 = vsel %vm114_vm6, %v1446_v38, %v5582_v15 }
  0xbd   :  { %v1449_v60 = vsel %vm114_vm6, %v1433_v52, %v1448_v53  ;;  %v4557_v21 = vpack.i.bf16 %v5689_v12, %v5683_v9  ;;  %v166_v18 = vrot.slane %v5563_v22, 4  ;;  %v870_v38 = vrot.slane %v5618_v41, 4 }
  0xbe   :  { %v162_v45 = vrot.slane %v5698_v19, 4 }
  0xbf   :  { %4518 = vrot.lane.b32.xlu1 %v5480_v3, %s5289_s9  ;;  %v5615_v3 = vperm.slane %v791_v16, %v5495_v10  ;;  %v1502_v16 = vrot.slane %v1489_v57, 4  ;;  %v5732_v57 = vperm.slane %v1447_v44, %v5495_v10 }
  0xc0   :  { %4528 = vrot.lane.b32.xlu0 %v4507_v43, %s5289_s9  ;;  %4538 = vrot.lane.b32.xlu2 %v4537_v39, %s5292_s10  ;;  %v1411_v43 = vsel %vm114_vm6, %v1410_v13, %v5449_v47  ;;  %v1422_v47 = vrot.slane %v5517_v33, 4  ;;  %v1478_v13 = vrot.slane %v5519_v35, 4  ;;  %v4532_v33 = vpack.i.bf16 %v5634_v28, %v5631_v46 }
  0xc1   :  { %v4547_v49 = vpack.i.bf16 %v5618_v41, %v5615_v3  ;;  %v857_v35 = vsel %vm114_vm6, %v856_v50, %v831_v11  ;;  %v5655_v62 = vperm.slane %v1411_v43, %v5456_v51  ;;  %v5686_v11 = vperm.slane %v1505_v63, %v5495_v10 }
  0xc2   :  { %v1423_v0 = vsel %vm114_vm6, %v1422_v47, %v5460_v54  ;;  %v1479_v1 = vsel %vm114_vm6, %v1478_v13, %v5462_v55  ;;  %v5677_v54 = vperm.slane %v857_v35, %v5495_v10  ;;  %v5680_v55 = vperm.slane %v1449_v60, %v5495_v10 }
  0xc3   :  { %v5692_v29 = vperm.slane %v1423_v0, %v5456_v51  ;;  %v5695_v17 = vperm.slane %v1479_v1, %v5456_v51  ;;  %v1436_v39 = vrot.slane %v5655_v62, 4  ;;  %v1503_v43 = vsel %vm114_vm6, %v1502_v16, %v1477_v26 }
  0xc4   :  { %v4552_v24 = vpack.i.bf16 %v5677_v54, %v5674_v5  ;;  %v4572_v25 = vpack.i.bf16 %v5686_v11, %v5680_v55  ;;  %v218_v50 = vrot.slane %v5701_v20, 4  ;;  %v5735_v15 = vperm.slane %v1503_v43, %v5495_v10 }
  0xc5   :  { %v1437_v34 = vsel %vm114_vm6, %v5692_v29, %v1436_v39  ;;  %v1493_v36 = vsel %vm114_vm6, %v5695_v17, %v1492_v7  ;;  %v788_v26 = vrot.slane %v5553_v61, 4  ;;  %v844_v47 = vrot.slane %v5556_v37, 4 }
  0xc6   :  { %v5726_v52 = vperm.slane %v1437_v34, %v5495_v10  ;;  %v5729_v53 = vperm.slane %v1493_v36, %v5495_v10  ;;  %v163_v13 = vsel %vm114_vm6, 0.0, %v162_v45  ;;  %v4567_v56 = vpack.i.bf16 %v5735_v15, %v5732_v57 }
  0xc7   :  { %4543 = vrot.lane.b32.xlu1 %v4542_v48, %s5293_s11  ;;  %v219_v48 = vsel %vm114_vm6, 0.0, %v218_v50  ;;  %v220_v61 = vrot.slane %v5634_v28, 4  ;;  %v168_v37 = vrot.slane %v5601_v8, 4  ;;  %v845_v22 = vsel %vm114_vm6, %v844_v47, %v5513_v30 }
  0xc8   :  { %4548 = vrot.lane.b32.xlu2 %v4547_v49, %s5294_s12  ;;  %4533 = vrot.lane.b32.xlu0 %v4532_v33, %s5294_s12  ;;  %v4562_v49 = vpack.i.bf16 %v5729_v53, %v5726_v52  ;;  %v4577_v40 = vpack.i.bf16 %v219_v48, %v163_v13  ;;  %v789_v33 = vsel %vm114_vm6, %v788_v26, %v5486_v6  ;;  %v167_v46 = vsel %vm114_vm6, 0.0, %v166_v18 }
  0xc9   :  { %v223_v28 = vsel %vm114_vm6, 0.0, %v222_v32  ;;  %v165_v8 = vsel %vm114_vm6, 0.0, %v164_v58  ;;  %v221_v14 = vsel %vm114_vm6, 0.0, %v220_v61  ;;  %v5765_v6 = vperm.slane %v789_v33, %v5495_v10 }
  0xca   :  { %v5758_v23 = vpop.permute.xlu2 %4423  ;;  %v5768_v30 = vperm.slane %v845_v22, %v5495_v10  ;;  %v169_v35 = vsel %vm114_vm6, 0.0, %v168_v37  ;;  %v225_v60 = vsel %vm114_vm6, 0.0, %v224_v59  ;;  %v1434_v63 = vrot.slane %v5692_v29, 4 }
  0xcb   :  { %8564 = vst [vmem:[#allocation9_spill] sm:$0xff] %v5765_v6  ;;  %v1490_v42 = vrot.slane %v5695_v17, 4  ;;  %v4587_v0 = vpack.i.bf16 %v223_v28, %v167_v46  ;;  %v4582_v1 = vpack.i.bf16 %v221_v14, %v165_v8  ;;  %v814_v4 = vrot.slane %v5615_v3, 4 }
  0xcc   :  { %8565 = vst [vmem:[#allocation10_spill] sm:$0xff] %v5768_v30  ;;  %v4592_v31 = vpack.i.bf16 %v225_v60, %v169_v35  ;;  %v812_v16 = vrot.slane %v5765_v6, 4  ;;  %v868_v39 = vrot.slane %v5768_v30, 4  ;;  %v816_v7 = vrot.slane %v5674_v5, 4 }
  0xcd   :  { %v872_v29 = vrot.slane %v5677_v54, 4  ;;  %v1435_v3 = vsel %vm114_vm6, %v1434_v63, %v5655_v62  ;;  %v1491_v41 = vsel %vm114_vm6, %v1490_v42, %v5667_v2  ;;  %v871_v5 = vsel %vm114_vm6, 0.0, %v870_v38 }
  0xce   :  { %v813_v54 = vsel %vm114_vm6, 0.0, %v812_v16  ;;  %v5796_v36 = vperm.slane %v1435_v3, %v5495_v10  ;;  %v5799_v62 = vperm.slane %v1491_v41, %v5495_v10  ;;  %v818_v45 = vrot.slane %v5683_v9, 4 }
  0xcf   :  { %4553 = vrot.lane.b32.xlu1 %v4552_v24, %s5292_s10  ;;  %v815_v24 = vsel %vm114_vm6, 0.0, %v814_v4  ;;  %v873_v34 = vsel %vm114_vm6, 0.0, %v872_v29  ;;  %v874_v50 = vrot.slane %v5689_v12, 4  ;;  %v1460_v13 = vrot.slane %v5726_v52, 4 }
  0xd0   :  { %4573 = vrot.lane.b32.xlu2 %v4572_v25, %s5293_s11  ;;  %4558 = vrot.lane.b32.xlu0 %v4557_v21, %s5293_s11  ;;  %v869_v25 = vsel %vm114_vm6, 0.0, %v868_v39  ;;  %v817_v21 = vsel %vm114_vm6, 0.0, %v816_v7  ;;  %8566 = vst [vmem:[#allocation11_spill] sm:$0xff] %v5796_v36  ;;  %v4602_v44 = vpack.i.bf16 %v871_v5, %v815_v24  ;;  %v1458_v26 = vrot.slane %v5796_v36, 4 }
  0xd1   :  { %8567 = vst [vmem:[#allocation12_spill] sm:$0xff] %v5799_v62  ;;  %v4597_v2 = vpack.i.bf16 %v869_v25, %v813_v54  ;;  %v4607_v43 = vpack.i.bf16 %v873_v34, %v817_v21  ;;  %v1514_v47 = vrot.slane %v5799_v62, 4  ;;  %v1516_v48 = vrot.slane %v5729_v53, 4 }
  0xd2   :  { %v819_v9 = vsel %vm114_vm6, 0.0, %v818_v45  ;;  %v875_v12 = vsel %vm114_vm6, 0.0, %v874_v50  ;;  %v1459_v18 = vsel %vm114_vm6, 0.0, %v1458_v26  ;;  %v1462_v61 = vrot.slane %v5732_v57, 4 }
  0xd3   :  { %v1515_v32 = vsel %vm114_vm6, 0.0, %v1514_v47  ;;  %v1517_v52 = vsel %vm114_vm6, 0.0, %v1516_v48  ;;  %v1518_v37 = vrot.slane %v5735_v15, 4  ;;  %v1464_v59 = vrot.slane %v5680_v55, 4 }
  0xd4   :  { %v4617_v53 = vpack.i.bf16 %v1515_v32, %v1459_v18  ;;  %v1520_v33 = vrot.slane %v5686_v11, 4  ;;  %v1463_v46 = vsel %vm114_vm6, 0.0, %v1462_v61  ;;  %v4426_v55 = vunpack.i.h.bf16 %v5758_v23 }
  0xd5   :  { %v1519_v28 = vsel %vm114_vm6, 0.0, %v1518_v37  ;;  %v1465_v57 = vsel %vm114_vm6, 0.0, %v1464_v59  ;;  %v4425_v11 = vunpack.i.l.bf16 %v5758_v23 }
  0xd6   :  { %v1521_v15 = vsel %vm114_vm6, 0.0, %v1520_v33  ;;  %v4627_v8 = vpack.i.bf16 %v1519_v28, %v1463_v46  ;;  %v401_v38 = vrot.slane %v4426_v55, 4 }
  0xd7   :  { %4563 = vrot.lane.b32.xlu1 %v4562_v49, %s5294_s12  ;;  %v4632_v14 = vpack.i.bf16 %v1521_v15, %v1465_v57  ;;  %v345_v7 = vrot.slane %v4425_v11, 4 }
  0xd8   :  { %4568 = vrot.lane.b32.xlu0 %v4567_v56, %s5292_s10  ;;  %4578 = vrot.lane.b32.xlu2 %v4577_v40, %s5295_s13  ;;  %v1461_v56 = vsel %vm114_vm6, 0.0, %v1460_v13  ;;  %v4612_v40 = vpack.i.bf16 %v875_v12, %v819_v9 }
  0xd9   :  { %v4622_v58 = vpack.i.bf16 %v1517_v52, %v1461_v56 }
  0xdf   :  { %4583 = vrot.lane.b32.xlu1 %v4582_v1, %s5296_s14 }
  0xe0   :  { %4588 = vrot.lane.b32.xlu0 %v4587_v0, %s5297_s15  ;;  %4593 = vrot.lane.b32.xlu2 %v4592_v31, %s5298_s16 }
  0xe2   :  { %v5787_v17 = vpop.permute.xlu2 %4433 }
  0xe3   :  { %v4436_v60 = vunpack.i.h.bf16 %v5787_v17  ;;  %v4435_v0 = vunpack.i.l.bf16 %v5787_v17 }
  0xe5   :  { %v630_v24 = vrot.slane %v4436_v60, 4  ;;  %v574_v25 = vrot.slane %v4435_v0, 4 }
  0xe7   :  { %4598 = vrot.lane.b32.xlu1 %v4597_v2, %s5295_s13 }
  0xe8   :  { %4603 = vrot.lane.b32.xlu0 %v4602_v44, %s5296_s14  ;;  %4608 = vrot.lane.b32.xlu2 %v4607_v43, %s5297_s15 }
  0xea   :  { %v5810_v49 = vpop.permute.xlu2 %4448 }
  0xeb   :  { %v4451_v1 = vunpack.i.h.bf16 %v5810_v49  ;;  %v4450_v16 = vunpack.i.l.bf16 %v5810_v49 }
  0xed   :  { %v5852_v21 = vrot.slane %v4451_v1, 4  ;;  %v5858_v44 = vrot.slane %v4450_v16, 4 }
  0xef   :  { %4613 = vrot.lane.b32.xlu1 %v4612_v40, %s5298_s16 }
  0xf0   :  { %4618 = vrot.lane.b32.xlu0 %v4617_v53, %s5295_s13  ;;  %4623 = vrot.lane.b32.xlu2 %v4622_v58, %s5296_s14 }
  0xf2   :  { %v5825_v22 = vpop.permute.xlu2 %4453 }
  0xf3   :  { %v4456_v39 = vunpack.i.h.bf16 %v5825_v22  ;;  %v4455_v23 = vunpack.i.l.bf16 %v5825_v22 }
  0xf5   :  { %v1049_v43 = vrot.slane %v4456_v39, 4  ;;  %v993_v45 = vrot.slane %v4455_v23, 4 }
  0xf7   :  { %4628 = vrot.lane.b32.xlu1 %v4627_v8, %s5297_s15 }
  0xf8   :  { %4633 = vrot.lane.b32.xlu0 %v4632_v14, %s5298_s16 }
  0xf9   :  { %v5835_v35 = vpop.permute.xlu1 %4418 }
  0xfa   :  { %v5838_v63 = vpop.permute.xlu2 %4468  ;;  %v4414_v42 = vpop.permute.xlu0 %4413  ;;  %v4421_v29 = vunpack.i.h.bf16 %v5835_v35  ;;  %v4420_v3 = vunpack.i.l.bf16 %v5835_v35 }
  0xfb   :  { %v4416_v4 = vunpack.i.h.bf16 %v4414_v42  ;;  %v4415_v31 = vunpack.i.l.bf16 %v4414_v42  ;;  %v4471_v34 = vunpack.i.h.bf16 %v5838_v63  ;;  %v4470_v13 = vunpack.i.l.bf16 %v5838_v63 }
  0xfc   :  { %v415_v26 = vrot.slane %v4421_v29, 4  ;;  %v359_v47 = vrot.slane %v4420_v3, 4 }
  0xfd   :  { %v403_v41 = vrot.slane %v4416_v4, 4  ;;  %v402_v5 = vsel %vm114_vm6, %v401_v38, %v4416_v4  ;;  %v347_v54 = vrot.slane %v4415_v31, 4  ;;  %v346_v2 = vsel %vm114_vm6, %v345_v7, %v4415_v31 }
  0xfe   :  { %v5867_v48 = vperm.slane %v402_v5, %v5456_v51  ;;  %v5871_v18 = vperm.slane %v346_v2, %v5456_v51  ;;  %v5877_v53 = vrot.slane %v4471_v34, 4  ;;  %v5887_v57 = vrot.slane %v4470_v13, 4 }
  0xff   :  { %v404_v50 = vsel %vm114_vm6, %v4426_v55, %v403_v41  ;;  %v348_v12 = vsel %vm114_vm6, %v4425_v11, %v347_v54 }
 0x100   :  { %v5880_v58 = vperm.slane %v404_v50, %v5456_v51  ;;  %v427_v15 = vrot.slane %v5867_v48, 4  ;;  %v356_v8 = vperm.slane %v348_v12, %v5456_v51  ;;  %v371_v55 = vrot.slane %v5871_v18, 4 }
 0x101   :  { %v4444_v9 = vpop.permute.xlu1 %4443 }
 0x102   :  { %v4446_v32 = vunpack.i.h.bf16 %v4444_v9  ;;  %v4445_v56 = vunpack.i.l.bf16 %v4444_v9  ;;  %v5873_v52 = vpop.permute.xlu2 %4478  ;;  %v4429_v40 = vpop.permute.xlu0 %4428  ;;  %v439_v7 = vrot.slane %v5880_v58, 4 }
 0x103   :  { %v8487_v61 = vunpack.i.h.bf16 %v5873_v52  ;;  %v4431_v37 = vunpack.i.h.bf16 %v4429_v40  ;;  %v4430_v28 = vunpack.i.l.bf16 %v4429_v40  ;;  %v8486_v38 = vunpack.i.l.bf16 %v5873_v52 }
 0x104   :  { %v572_v59 = vrot.slane %v4445_v56, 4  ;;  %v575_v33 = vsel %vm114_vm6, %v4445_v56, %v574_v25  ;;  %v631_v46 = vsel %vm114_vm6, %v4446_v32, %v630_v24  ;;  %v628_v14 = vrot.slane %v4446_v32, 4 }
 0x105   :  { %v413_v35 = vrot.slane %v4431_v37, 4  ;;  %v416_v42 = vsel %vm114_vm6, %v4431_v37, %v415_v26  ;;  %v5895_v4 = vperm.slane %v575_v33, %v5456_v51  ;;  %v5898_v31 = vperm.slane %v631_v46, %v5456_v51 }
 0x106   :  { %v573_v11 = vsel %vm114_vm6, %v572_v59, %v4435_v0  ;;  %v5904_v41 = vrot.slane %v8487_v61, 4  ;;  %v357_v0 = vrot.slane %v4430_v28, 4  ;;  %v360_v5 = vsel %vm114_vm6, %v4430_v28, %v359_v47 }
 0x107   :  { %v414_v24 = vsel %vm114_vm6, %v413_v35, %v4421_v29  ;;  %v5909_v54 = vperm.slane %v573_v11, %v5456_v51  ;;  %v629_v25 = vsel %vm114_vm6, %v628_v14, %v4436_v60  ;;  %v424_v2 = vperm.slane %v416_v42, %v5456_v51 }
 0x108   :  { %v368_v50 = vperm.slane %v360_v5, %v5456_v51  ;;  %v5917_v9 = vperm.slane %v414_v24, %v5456_v51  ;;  %v358_v29 = vsel %vm114_vm6, %v357_v0, %v4420_v3  ;;  %v610_v40 = vrot.slane %v5895_v4, 4 }
 0x109   :  { %v4464_v26 = vpop.permute.xlu1 %4463  ;;  %v5925_v17 = vrot.slane %v8486_v38, 4  ;;  %v5928_v60 = vperm.slane %v358_v29, %v5456_v51  ;;  %v5932_v59 = vperm.slane %v629_v25, %v5456_v51  ;;  %v666_v28 = vrot.slane %v5898_v31, 4 }
 0x10a   :  { %v4466_v12 = vunpack.i.h.bf16 %v4464_v26  ;;  %v4465_v32 = vunpack.i.l.bf16 %v4464_v26  ;;  %v5920_v47 = vpop.permute.xlu2 %4498  ;;  %v4439_v56 = vpop.permute.xlu0 %4438  ;;  %v381_v14 = vrot.slane %v368_v50, 4  ;;  %v383_v35 = vrot.slane %v356_v8, 4 }
 0x10b   :  { %v8485_v37 = vunpack.i.h.bf16 %v5920_v47  ;;  %v437_v24 = vrot.slane %v424_v2, 4  ;;  %v4441_v0 = vunpack.i.h.bf16 %v4439_v56  ;;  %v598_v5 = vrot.slane %v5909_v54, 4 }
 0x10c   :  { %v991_v3 = vrot.slane %v4465_v32, 4  ;;  %v994_v33 = vsel %vm114_vm6, %v4465_v32, %v993_v45  ;;  %v1050_v46 = vsel %vm114_vm6, %v4466_v12, %v1049_v43  ;;  %v1047_v11 = vrot.slane %v4466_v12, 4 }
 0x10d   :  { %v5941_v25 = vperm.slane %v994_v33, %v5456_v51  ;;  %v5944_v45 = vperm.slane %v1050_v46, %v5456_v51  ;;  %v5948_v43 = vrot.slane %v8485_v37, 4  ;;  %v641_v12 = vsel %vm114_vm6, %v5852_v21, %v4441_v0 }
 0x10e   :  { %v992_v29 = vsel %vm114_vm6, %v991_v3, %v4455_v23  ;;  %v642_v32 = vrot.slane %v4441_v0, 4  ;;  %v4440_v42 = vunpack.i.l.bf16 %v4439_v56  ;;  %v1048_v33 = vsel %vm114_vm6, %v1047_v11, %v4456_v39 }
 0x10f   :  { %v384_v46 = vsel %vm114_vm6, %v368_v50, %v383_v35  ;;  %v440_v26 = vsel %vm114_vm6, %v424_v2, %v439_v7  ;;  %v382_v37 = vsel %vm114_vm6, %v381_v14, %v356_v8  ;;  %v8488_v61 = vunpack.i.l.bf16 %v5920_v47 }
 0x110   :  { %v585_v23 = vsel %vm114_vm6, %v5858_v44, %v4440_v42  ;;  %v586_v21 = vrot.slane %v4440_v42, 4  ;;  %v5967_v56 = vperm.slane %v384_v46, %v5495_v10  ;;  %v5970_v39 = vperm.slane %v992_v29, %v5456_v51 }
 0x111   :  { %v5961_v38 = vpop.permute.xlu1 %4473  ;;  %v5974_v7 = vperm.slane %v641_v12, %v5456_v51  ;;  %v5977_v8 = vperm.slane %v440_v26, %v5495_v10  ;;  %v643_v44 = vsel %vm114_vm6, %v4451_v1, %v642_v32  ;;  %v5983_v2 = vperm.slane %v382_v37, %v5495_v10 }
 0x112   :  { %v4459_v22 = vpop.permute.xlu0 %4458  ;;  %8568 = vst [vmem:[#allocation13_spill] sm:$0xff] %v5970_v39  ;;  %v438_v3 = vsel %vm114_vm6, %v437_v24, %v5880_v58  ;;  %v372_v14 = vsel %vm114_vm6, %v5928_v60, %v371_v55  ;;  %v587_v11 = vsel %vm114_vm6, %v4450_v16, %v586_v21  ;;  %v5995_v35 = vperm.slane %v585_v23, %v5456_v51  ;;  %v6024_v29 = vpop.permute.xlu2 %4523 }
 0x113   :  { %v4647_v1 = vpack.i.bf16 %v5977_v8, %v5967_v56  ;;  %v6000_v37 = vperm.slane %v438_v3, %v5495_v10  ;;  %v6003_v58 = vperm.slane %v1048_v33, %v5456_v51  ;;  %v6007_v55 = vperm.slane %v372_v14, %v5495_v10 }
 0x114   :  { %v428_v49 = vsel %vm114_vm6, %v5917_v9, %v427_v15  ;;  %v6015_v16 = vrot.slane %v8488_v61, 4  ;;  %v8489_v26 = vunpack.i.h.bf16 %v5961_v38  ;;  %v651_v12 = vperm.slane %v643_v44, %v5456_v51 }
 0x115   :  { %8569 = vst [vmem:[#allocation14_spill] sm:$0xff] %v6003_v58  ;;  %4648 = vrot.lane.b32.xlu0 %v4647_v1, %s5293_s11  ;;  %v4642_v24 = vpack.i.bf16 %v6000_v37, %v5983_v2  ;;  %v6021_v0 = vperm.slane %v428_v49, %v5495_v10  ;;  %v595_v15 = vperm.slane %v587_v11, %v5456_v51  ;;  %v4461_v32 = vunpack.i.h.bf16 %v4459_v22 }
 0x116   :  { %v4460_v33 = vunpack.i.l.bf16 %v4459_v22  ;;  %v599_v3 = vsel %vm114_vm6, %v5995_v35, %v598_v5  ;;  %v4475_v46 = vunpack.i.l.bf16 %v5961_v38  ;;  %v8581_v6 = vrot.slane %v5941_v25, 4 }
 0x117   :  { %4643 = vrot.lane.b32.xlu1 %v4642_v24, %s5292_s10  ;;  %v4637_v21 = vpack.i.bf16 %v6021_v0, %v6007_v55  ;;  %v1060_v44 = vsel %vm114_vm6, %v5877_v53, %v4461_v32  ;;  %v1061_v1 = vrot.slane %v4461_v32, 4  ;;  %v1273_v24 = vrot.slane %v8489_v26, 4 }
 0x118   :  { %v1004_v22 = vsel %vm114_vm6, %v5887_v57, %v4460_v33  ;;  %v1005_v11 = vrot.slane %v4460_v33, 4  ;;  %v6046_v61 = vperm.slane %v1060_v44, %v5456_v51  ;;  %v654_v53 = vrot.slane %v5932_v59, 4 }
 0x119   :  { %v4489_v14 = vpop.permute.xlu1 %4488  ;;  %4638 = vrot.lane.b32.xlu2 %v4637_v21, %s5294_s12  ;;  %v611_v57 = vsel %vm114_vm6, %v595_v15, %v610_v40  ;;  %v667_v32 = vsel %vm114_vm6, %v651_v12, %v666_v28  ;;  %v1062_v33 = vsel %vm114_vm6, %v4471_v34, %v1061_v1  ;;  %v6062_v44 = vperm.slane %v1004_v22, %v5456_v51 }
 0x11a   :  { %v4484_v49 = vpop.permute.xlu0 %4483  ;;  %8570 = vst [vmem:[#allocation15_spill] sm:$0xff] %v6046_v61  ;;  %v1006_v21 = vsel %vm114_vm6, %v4470_v13, %v1005_v11  ;;  %v6065_v42 = vperm.slane %v599_v3, %v5495_v10  ;;  %v655_v40 = vsel %vm114_vm6, %v5974_v7, %v654_v53  ;;  %v6070_v50 = vperm.slane %v611_v57, %v5495_v10 }
 0x11b   :  { %8571 = vst [vmem:[#allocation16_spill] sm:$0xff] %v6062_v44  ;;  %v6073_v28 = vperm.slane %v667_v32, %v5495_v10  ;;  %v608_v34 = vrot.slane %v595_v15, 4  ;;  %v6076_v63 = vperm.slane %v655_v40, %v5495_v10  ;;  %v664_v13 = vrot.slane %v651_v12, 4  ;;  %v6089_v40 = vpop.permute.xlu2 %4538 }
 0x11c   :  { %v4491_v1 = vunpack.i.h.bf16 %v4489_v14  ;;  %v4490_v22 = vunpack.i.l.bf16 %v4489_v14  ;;  %v4486_v53 = vunpack.i.h.bf16 %v4484_v49  ;;  %v4485_v26 = vunpack.i.l.bf16 %v4484_v49 }
 0x11d   :  { %v4662_v3 = vpack.i.bf16 %v6073_v28, %v6070_v50  ;;  %v609_v11 = vsel %vm114_vm6, %v608_v34, %v5895_v4  ;;  %v4652_v57 = vpack.i.bf16 %v6076_v63, %v6065_v42  ;;  %v665_v15 = vsel %vm114_vm6, %v664_v13, %v5898_v31 }
 0x11e   :  { %v6085_v32 = vperm.slane %v609_v11, %v5495_v10  ;;  %v1283_v12 = vrot.slane %v4491_v1, 4  ;;  %v6094_v5 = vperm.slane %v665_v15, %v5495_v10  ;;  %v1227_v4 = vrot.slane %v4490_v22, 4 }
 0x11f   :  { %v1230_v49 = vsel %vm114_vm6, %v4490_v22, %v5925_v17  ;;  %v1286_v34 = vsel %vm114_vm6, %v4491_v1, %v5904_v41  ;;  %v1217_v23 = vrot.slane %v4475_v46, 4  ;;  %4653 = vrot.lane.b32.xlu1 %v4652_v57, %s5294_s12  ;;  %v8574_v13 = vunpack.i.h.bf16 %v5873_v52 }
 0x120   :  { %8572 = vst [vmem:[#allocation17_spill] sm:$0xff] %v6085_v32  ;;  %v6105_v31 = vperm.slane %v1230_v49, %v5456_v51  ;;  %v6111_v27 = vperm.slane %v1286_v34, %v5456_v51  ;;  %v8575_v17 = vunpack.i.h.bf16 %v6024_v29  ;;  %v4657_v1 = vpack.i.bf16 %v6094_v5, %v6085_v32 }
 0x121   :  { %v6091_v14 = vpop.permute.xlu1 %4493  ;;  %8573 = vst [vmem:[#allocation18_spill] sm:$0xff] %v6094_v5  ;;  %4663 = vrot.lane.b32.xlu2 %v4662_v3, %s5293_s11  ;;  %v1284_v15 = vsel %vm114_vm6, %v1283_v12, %v8574_v13  ;;  %v8576_v22 = vunpack.i.l.bf16 %v5873_v52  ;;  %v1271_v57 = vrot.slane %v4486_v53, 4  ;;  %v8577_v49 = vunpack.i.l.bf16 %v6024_v29 }
 0x122   :  { %v6100_v11 = vpop.permute.xlu0 %4503  ;;  %v6115_v41 = vrot.slane %v8575_v17, 4  ;;  %v1070_v12 = vperm.slane %v1062_v33, %v5456_v51  ;;  %v1014_v34 = vperm.slane %v1006_v21, %v5456_v51  ;;  %v1274_v13 = vsel %vm114_vm6, %v4486_v53, %v1273_v24  ;;  %4658 = vrot.lane.b32.xlu0 %v4657_v1, %s5292_s10 }
 0x123   :  { %v1228_v3 = vsel %vm114_vm6, %v1227_v4, %v8576_v22  ;;  %v6124_v36 = vrot.slane %v8577_v49, 4  ;;  %v6133_v52 = vperm.slane %v1284_v15, %v5456_v51  ;;  %v1215_v4 = vrot.slane %v4485_v26, 4 }
 0x124   :  { %v6136_v22 = vperm.slane %v1228_v3, %v5456_v51  ;;  %v1251_v49 = vrot.slane %v6105_v31, 4  ;;  %v1307_v33 = vrot.slane %v6111_v27, 4  ;;  %v1218_v21 = vsel %vm114_vm6, %v4485_v26, %v1217_v23 }
 0x125   :  { %8578 = vst [vmem:[#allocation19_spill] sm:$0xff] %v6133_v52  ;;  %v8580_v24 = vunpack.i.h.bf16 %v5961_v38  ;;  %v1282_v17 = vperm.slane %v1274_v13, %v5456_v51  ;;  %v1226_v1 = vperm.slane %v1218_v21, %v5456_v51  ;;  %v1017_v15 = vrot.slane %v5970_v39, 4  ;;  %v6172_v39 = vpop.permute.xlu2 %4548 }
 0x126   :  { %8579 = vst [vmem:[#allocation20_spill] sm:$0xff] %v6136_v22  ;;  %v1216_v62 = vsel %vm114_vm6, %v1215_v4, %v4475_v46  ;;  %v1073_v3 = vrot.slane %v6003_v58, 4  ;;  %v1030_v30 = vsel %vm114_vm6, %v1014_v34, %v8581_v6  ;;  %v8582_v26 = vrot.slane %v5944_v45, 4 }
 0x127   :  { %v1272_v53 = vsel %vm114_vm6, %v1271_v57, %v8580_v24  ;;  %v1253_v57 = vrot.slane %v1226_v1, 4  ;;  %v1018_v13 = vsel %vm114_vm6, %v6062_v44, %v1017_v15  ;;  %v6160_v21 = vperm.slane %v1030_v30, %v5495_v10  ;;  %8585 = vst [vmem:[#allocation23_spill] sm:$0xff] %v6172_v39 }
 0x128   :  { %v1086_v38 = vsel %vm114_vm6, %v1070_v12, %v8582_v26  ;;  %v6168_v6 = vperm.slane %v1018_v13, %v5495_v10  ;;  %v1074_v24 = vsel %vm114_vm6, %v6046_v61, %v1073_v3  ;;  %v1027_v26 = vrot.slane %v1014_v34, 4 }
 0x129   :  { %v6155_v23 = vpop.permute.xlu1 %4508  ;;  %8583 = vst [vmem:[#allocation21_spill] sm:$0xff] %v6160_v21  ;;  %v6163_v46 = vperm.slane %v1086_v38, %v5495_v10  ;;  %v1083_v58 = vrot.slane %v1070_v12, 4  ;;  %v6175_v15 = vperm.slane %v1074_v24, %v5495_v10  ;;  %v4496_v38 = vunpack.i.h.bf16 %v6091_v14 }
 0x12a   :  { %v6165_v4 = vpop.permute.xlu0 %4513  ;;  %v4495_v44 = vunpack.i.l.bf16 %v6091_v14  ;;  %v1028_v13 = vsel %vm114_vm6, %v1027_v26, %v5941_v25  ;;  %v4506_v12 = vunpack.i.h.bf16 %v6100_v11  ;;  %v4505_v34 = vunpack.i.l.bf16 %v6100_v11 }
 0x12b   :  { %8584 = vst [vmem:[#allocation22_spill] sm:$0xff] %v6163_v46  ;;  %v4677_v30 = vpack.i.bf16 %v6163_v46, %v6160_v21  ;;  %v1084_v3 = vsel %vm114_vm6, %v1083_v58, %v5944_v45  ;;  %v4667_v24 = vpack.i.bf16 %v6175_v15, %v6168_v6  ;;  %v6191_v46 = vperm.slane %v1028_v13, %v5495_v10 }
 0x12c   :  { %8586 = vst [vmem:[#allocation24_spill] sm:$0xff] %v6175_v15  ;;  %v6194_v14 = vperm.slane %v1084_v3, %v5495_v10  ;;  %v1692_v21 = vrot.slane %v4496_v38, 4  ;;  %v1309_v25 = vrot.slane %v1282_v17, 4  ;;  %v1636_v26 = vrot.slane %v4495_v44, 4 }
 0x12d   :  { %4678 = vrot.lane.b32.xlu2 %v4677_v30, %s5293_s11  ;;  %8587 = vst [vmem:[#allocation25_spill] sm:$0xff] %v6191_v46  ;;  %v1690_v61 = vrot.slane %v4506_v12, 4  ;;  %v1634_v45 = vrot.slane %v4505_v34, 4  ;;  %4668 = vrot.lane.b32.xlu1 %v4667_v24, %s5294_s12  ;;  %v1254_v13 = vsel %vm114_vm6, %v6105_v31, %v1253_v57  ;;  %v6205_v5 = vperm.slane %v1272_v53, %v5456_v51 }
 0x12e   :  { %8588 = vst [vmem:[#allocation26_spill] sm:$0xff] %v6194_v14  ;;  %v4672_v11 = vpack.i.bf16 %v6194_v14, %v6191_v46  ;;  %v1693_v30 = vsel %vm114_vm6, %v4506_v12, %v1692_v21  ;;  %v6208_v32 = vperm.slane %v1216_v62, %v5456_v51  ;;  %v1637_v58 = vsel %vm114_vm6, %v4505_v34, %v1636_v26 }
 0x12f   :  { %8589 = vst [vmem:[#allocation27_spill] sm:$0xff] %v6205_v5  ;;  %v1691_v21 = vsel %vm114_vm6, %v1690_v61, %v4496_v38  ;;  %v6217_v31 = vperm.slane %v1693_v30, %v5456_v51  ;;  %v6220_v57 = vperm.slane %v1254_v13, %v5495_v10  ;;  %v1635_v62 = vsel %vm114_vm6, %v1634_v45, %v4495_v44 }
 0x130   :  { %4673 = vrot.lane.b32.xlu0 %v4672_v11, %s5292_s10  ;;  %v1310_v12 = vsel %vm114_vm6, %v6111_v27, %v1309_v25  ;;  %v1252_v34 = vsel %vm114_vm6, %v1251_v49, %v1226_v1  ;;  %v1308_v26 = vsel %vm114_vm6, %v1307_v33, %v1282_v17  ;;  %v6230_v11 = vperm.slane %v1637_v58, %v5456_v51  ;;  %v6245_v33 = vpop.permute.xlu2 %4573 }
 0x131   :  { %v6211_v15 = vpop.permute.xlu1 %4518  ;;  %8590 = vst [vmem:[#allocation28_spill] sm:$0xff] %v6220_v57  ;;  %v6233_v61 = vperm.slane %v1310_v12, %v5495_v10  ;;  %v6236_v38 = vperm.slane %v1252_v34, %v5495_v10  ;;  %v6239_v30 = vperm.slane %v1308_v26, %v5495_v10  ;;  %v1241_v44 = vrot.slane %v6208_v32, 4 }
 0x132   :  { %v6222_v53 = vpop.permute.xlu0 %4528  ;;  %v1297_v27 = vrot.slane %v6205_v5, 4  ;;  %v4511_v49 = vunpack.i.h.bf16 %v6155_v23  ;;  %v4510_v17 = vunpack.i.l.bf16 %v6155_v23  ;;  %v4516_v45 = vunpack.i.h.bf16 %v6165_v4 }
 0x133   :  { %8591 = vst [vmem:[#allocation29_spill] sm:$0xff] %v6233_v61  ;;  %v4692_v1 = vpack.i.bf16 %v6233_v61, %v6220_v57  ;;  %v4687_v25 = vpack.i.bf16 %v6239_v30, %v6236_v38  ;;  %v4515_v58 = vunpack.i.l.bf16 %v6165_v4  ;;  %v1242_v13 = vsel %vm114_vm6, %v6136_v22, %v1241_v44 }
 0x134   :  { %8592 = vst [vmem:[#allocation30_spill] sm:$0xff] %v6236_v38  ;;  %v1298_v12 = vsel %vm114_vm6, %v6133_v52, %v1297_v27  ;;  %v1702_v34 = vrot.slane %v4511_v49, 4  ;;  %v1646_v23 = vrot.slane %v4510_v17, 4  ;;  %v6260_v26 = vperm.slane %v1242_v13, %v5495_v10 }
 0x135   :  { %8593 = vst [vmem:[#allocation31_spill] sm:$0xff] %v6239_v30  ;;  %4693 = vrot.lane.b32.xlu1 %v4692_v1, %s5293_s11  ;;  %4688 = vrot.lane.b32.xlu2 %v4687_v25, %s5292_s10  ;;  %v6263_v3 = vperm.slane %v1298_v12, %v5495_v10  ;;  %v1649_v4 = vsel %vm114_vm6, %v4510_v17, %v6015_v16  ;;  %v1919_v24 = vrot.slane %v4516_v45, 4  ;;  %v8596_v44 = vunpack.i.l.bf16 %v5920_v47 }
 0x136   :  { %8594 = vst [vmem:[#allocation32_spill] sm:$0xff] %v6260_v26  ;;  %v6271_v30 = vperm.slane %v1649_v4, %v5456_v51  ;;  %v8597_v1 = vunpack.i.h.bf16 %v5920_v47  ;;  %v1705_v13 = vsel %vm114_vm6, %v4511_v49, %v5948_v43  ;;  %v6290_v47 = vperm.slane %v1691_v21, %v5456_v51 }
 0x137   :  { %8595 = vst [vmem:[#allocation33_spill] sm:$0xff] %v6263_v3  ;;  %v1647_v27 = vsel %vm114_vm6, %v1646_v23, %v8596_v44  ;;  %v4682_v17 = vpack.i.bf16 %v6263_v3, %v6260_v26  ;;  %v1918_v49 = vsel %vm114_vm6, %v6115_v41, %v4516_v45  ;;  %v1728_v44 = vrot.slane %v6217_v31, 4 }
 0x138   :  { %v1703_v25 = vsel %vm114_vm6, %v1702_v34, %v8597_v1  ;;  %v6285_v23 = vperm.slane %v1647_v27, %v5456_v51  ;;  %v6300_v1 = vperm.slane %v1635_v62, %v5456_v51  ;;  %v1713_v27 = vperm.slane %v1705_v13, %v5456_v51 }
 0x139   :  { %v6278_v12 = vpop.permute.xlu1 %4543  ;;  %v6294_v43 = vperm.slane %v1703_v25, %v5456_v51  ;;  %4683 = vrot.lane.b32.xlu0 %v4682_v17, %s5294_s12  ;;  %v1862_v21 = vsel %vm114_vm6, %v6124_v36, %v4515_v58  ;;  %v1672_v34 = vrot.slane %v6230_v11, 4  ;;  %v1670_v25 = vrot.slane %v6271_v30, 4 }
 0x13a   :  { %v6287_v4 = vpop.permute.xlu0 %4533  ;;  %v8598_v16 = vunpack.i.h.bf16 %v6024_v29  ;;  %v1863_v45 = vrot.slane %v4515_v58, 4  ;;  %v6313_v62 = vperm.slane %v1918_v49, %v5456_v51  ;;  %v4521_v17 = vunpack.i.h.bf16 %v6211_v15 }
 0x13b   :  { %v4520_v13 = vunpack.i.l.bf16 %v6211_v15  ;;  %v6319_v3 = vperm.slane %v1862_v21, %v5456_v51  ;;  %v4531_v26 = vunpack.i.h.bf16 %v6222_v53  ;;  %v4530_v61 = vunpack.i.l.bf16 %v6222_v53 }
 0x13c   :  { %v1920_v41 = vsel %vm114_vm6, %v8598_v16, %v1919_v24  ;;  %8599 = vst [vmem:[#allocation34_spill] sm:$0xff] %v6313_v62  ;;  %v4579_v24 = vpop.permute.xlu2 %4578  ;;  %v1726_v58 = vrot.slane %v1713_v27, 4  ;;  %v1931_v49 = vrot.slane %v4521_v17, 4  ;;  %v8600_v57 = vunpack.i.l.bf16 %v6024_v29 }
 0x13d   :  { %v6324_v16 = vperm.slane %v1920_v41, %v5456_v51  ;;  %v1875_v38 = vrot.slane %v4520_v13, 4  ;;  %v1929_v14 = vrot.slane %v4531_v26, 4  ;;  %v1873_v21 = vrot.slane %v4530_v61, 4 }
 0x13e   :  { %v1864_v15 = vsel %vm114_vm6, %v8600_v57, %v1863_v45  ;;  %v1943_v39 = vrot.slane %v6313_v62, 4  ;;  %v1932_v53 = vsel %vm114_vm6, %v4531_v26, %v1931_v49  ;;  %v1673_v41 = vsel %vm114_vm6, %v6271_v30, %v1672_v34 }
 0x13f   :  { %v1729_v52 = vsel %vm114_vm6, %v1713_v27, %v1728_v44  ;;  %v1887_v29 = vrot.slane %v6319_v3, 4  ;;  %v1930_v45 = vsel %vm114_vm6, %v1929_v14, %v4521_v17  ;;  %v1876_v36 = vsel %vm114_vm6, %v4530_v61, %v1875_v38 }
 0x140   :  { %v1872_v22 = vperm.slane %v1864_v15, %v5456_v51  ;;  %v1874_v62 = vsel %vm114_vm6, %v1873_v21, %v4520_v13  ;;  %v4581_v26 = vunpack.i.h.bf16 %v4579_v24  ;;  %v1940_v30 = vperm.slane %v1932_v53, %v5456_v51 }
 0x141   :  { %v6330_v46 = vpop.permute.xlu1 %4553  ;;  %v4580_v34 = vunpack.i.l.bf16 %v4579_v24  ;;  %v6347_v44 = vperm.slane %v1673_v41, %v5495_v10  ;;  %v6350_v27 = vperm.slane %v1729_v52, %v5495_v10  ;;  %v6353_v49 = vperm.slane %v1930_v45, %v5456_v51 }
 0x142   :  { %v6337_v5 = vpop.permute.xlu0 %4558  ;;  %v1884_v14 = vperm.slane %v1876_v36, %v5456_v51  ;;  %v1660_v61 = vrot.slane %v6300_v1, 4  ;;  %v1716_v38 = vrot.slane %v6290_v47, 4  ;;  %v6359_v17 = vperm.slane %v1874_v62, %v5456_v51 }
 0x143   :  { %v4707_v13 = vpack.i.bf16 %v6350_v27, %v6347_v44  ;;  %v1671_v24 = vsel %vm114_vm6, %v1670_v25, %v6230_v11  ;;  %v1727_v52 = vsel %vm114_vm6, %v1726_v58, %v6217_v31  ;;  %v296_v53 = vsel %vm282_vm7, %v5701_v20, %v4581_v26 }
 0x144   :  { %v1661_v15 = vsel %vm114_vm6, %v6285_v23, %v1660_v61  ;;  %v1717_v36 = vsel %vm114_vm6, %v6294_v43, %v1716_v38  ;;  %v6372_v21 = vperm.slane %v1671_v24, %v5495_v10  ;;  %v6375_v62 = vperm.slane %v1727_v52, %v5495_v10  ;;  %v6388_v58 = vpop.permute.xlu2 %4593 }
 0x145   :  { %v283_v11 = vsel %vm282_vm7, %v5698_v19, %v4580_v34  ;;  %4708 = vrot.lane.b32.xlu1 %v4707_v13, %s5293_s11  ;;  %v6383_v31 = vperm.slane %v1661_v15, %v5495_v10  ;;  %v6386_v25 = vperm.slane %v1717_v36, %v5495_v10  ;;  %v1953_v41 = vrot.slane %v1940_v30, 4 }
 0x146   :  { %v1897_v45 = vrot.slane %v1884_v14, 4  ;;  %v4702_v61 = vpack.i.bf16 %v6375_v62, %v6372_v21  ;;  %v1899_v26 = vrot.slane %v1872_v22, 4  ;;  %v1955_v34 = vrot.slane %v6324_v16, 4 }
 0x147   :  { %v4697_v19 = vpack.i.bf16 %v6386_v25, %v6383_v31  ;;  %v4536_v24 = vunpack.i.h.bf16 %v6287_v4  ;;  %v4535_v52 = vunpack.i.l.bf16 %v6287_v4  ;;  %v1888_v15 = vsel %vm114_vm6, %v6359_v17, %v1887_v29 }
 0x148   :  { %4703 = vrot.lane.b32.xlu2 %v4702_v61, %s5292_s10  ;;  %v1944_v36 = vsel %vm114_vm6, %v6353_v49, %v1943_v39  ;;  %v1900_v57 = vsel %vm114_vm6, %v1884_v14, %v1899_v26  ;;  %v1956_v20 = vsel %vm114_vm6, %v1940_v30, %v1955_v34  ;;  %v6411_v51 = vperm.slane %v1888_v15, %v5495_v10 }
 0x149   :  { %v6396_v38 = vpop.permute.xlu1 %4563  ;;  %4698 = vrot.lane.b32.xlu0 %v4697_v19, %s5294_s12  ;;  %v6414_v61 = vperm.slane %v1944_v36, %v5495_v10  ;;  %v6417_v4 = vperm.slane %v1900_v57, %v5495_v10  ;;  %v6420_v29 = vperm.slane %v1956_v20, %v5495_v10  ;;  %v1898_v39 = vsel %vm114_vm6, %v1897_v45, %v1872_v22 }
 0x14a   :  { %v6398_v13 = vpop.permute.xlu0 %4568  ;;  %v1954_v19 = vsel %vm114_vm6, %v1953_v41, %v6324_v16  ;;  %v4545_v14 = vunpack.i.l.bf16 %v6278_v12  ;;  %v6428_v26 = vperm.slane %v1898_v39, %v5495_v10  ;;  %v6434_v57 = vsel %vm284_vm8, %v283_v11, %v4535_v52 }
 0x14b   :  { %v6431_v34 = vperm.slane %v1954_v19, %v5495_v10  ;;  %v6437_v20 = vsel %vm284_vm8, %v296_v53, %v4536_v24  ;;  %v4595_v22 = vunpack.i.l.bf16 %v6388_v58  ;;  %v4712_v16 = vpack.i.bf16 %v6414_v61, %v6411_v51 }
 0x14c   :  { %v4722_v41 = vpack.i.bf16 %v6420_v29, %v6417_v4  ;;  %v395_v36 = vrot.slane %v6007_v55, 4  ;;  %v451_v11 = vrot.slane %v6021_v0, 4  ;;  %v397_v53 = vrot.slane %v5983_v2, 4  ;;  %v6457_v30 = vpop.permute.xlu2 %4608 }
 0x14d   :  { %v4717_v45 = vpack.i.bf16 %v6431_v34, %v6428_v26  ;;  %v453_v24 = vrot.slane %v6000_v37, 4  ;;  %v8601_v52 = vrot.slane %v5928_v60, 4  ;;  %v4555_v19 = vunpack.i.l.bf16 %v6330_v46 }
 0x14e   :  { %v396_v15 = vsel %vm114_vm6, 0.0, %v395_v36  ;;  %v8602_v2 = vrot.slane %v5917_v9, 4  ;;  %v398_v60 = vsel %vm114_vm6, 0.0, %v397_v53 }
 0x14f   :  { %v370_v39 = vsel %vm114_vm6, %v8601_v52, %v5871_v18  ;;  %4718 = vrot.lane.b32.xlu1 %v4717_v45, %s5292_s10  ;;  %v452_v18 = vsel %vm114_vm6, 0.0, %v451_v11  ;;  %v454_v0 = vsel %vm114_vm6, 0.0, %v453_v24 }
 0x150   :  { %v6461_v55 = vperm.slane %v370_v39, %v5495_v10  ;;  %v426_v37 = vsel %vm114_vm6, %v8602_v2, %v5867_v48  ;;  %4713 = vrot.lane.b32.xlu2 %v4712_v16, %s5294_s12  ;;  %v4732_v52 = vpack.i.bf16 %v452_v18, %v396_v15  ;;  %v4737_v39 = vpack.i.bf16 %v454_v0, %v398_v60 }
 0x151   :  { %v6472_v45 = vperm.slane %v426_v37, %v5495_v10  ;;  %4723 = vrot.lane.b32.xlu0 %v4722_v41, %s5293_s11  ;;  %v4584_v2 = vpop.permute.xlu1 %4583  ;;  %v8603_v15 = vrot.slane %v5995_v35, 4  ;;  %v8604_v60 = vrot.slane %v5974_v7, 4  ;;  %v678_v35 = vrot.slane %v6076_v63, 4 }
 0x152   :  { %v393_v9 = vrot.slane %v6461_v55, 4  ;;  %v4589_v48 = vpop.permute.xlu0 %4588 }
 0x153   :  { %v449_v24 = vrot.slane %v6472_v45, 4  ;;  %v597_v18 = vsel %vm114_vm6, %v8603_v15, %v5909_v54  ;;  %v653_v0 = vsel %vm114_vm6, %v8604_v60, %v5932_v59  ;;  %v399_v54 = vrot.slane %v5967_v56, 4 }
 0x154   :  { %v394_v37 = vsel %vm114_vm6, 0.0, %v393_v9  ;;  %v6493_v16 = vperm.slane %v597_v18, %v5495_v10  ;;  %v6496_v11 = vperm.slane %v653_v0, %v5495_v10  ;;  %v622_v9 = vrot.slane %v6065_v42, 4 }
 0x155   :  { %v450_v36 = vsel %vm114_vm6, 0.0, %v449_v24  ;;  %v455_v15 = vrot.slane %v5977_v8, 4  ;;  %v4591_v18 = vunpack.i.h.bf16 %v4589_v48  ;;  %v679_v60 = vsel %vm114_vm6, 0.0, %v678_v35 }
 0x156   :  { %v4727_v41 = vpack.i.bf16 %v450_v36, %v394_v37  ;;  %v620_v7 = vrot.slane %v6493_v16, 4  ;;  %v676_v59 = vrot.slane %v6496_v11, 4  ;;  %v623_v24 = vsel %vm114_vm6, 0.0, %v622_v9 }
 0x157   :  { %v400_v42 = vsel %vm114_vm6, 0.0, %v399_v54  ;;  %v456_v36 = vsel %vm114_vm6, 0.0, %v455_v15  ;;  %v4590_v63 = vunpack.i.l.bf16 %v4589_v48  ;;  %v4752_v37 = vpack.i.bf16 %v679_v60, %v623_v24  ;;  %v8605_v15 = vld [vmem:[#allocation24_spill] sm:$0xff] }
 0x158   :  { %4728 = vrot.lane.b32.xlu1 %v4727_v41, %s5295_s13  ;;  %4738 = vrot.lane.b32.xlu2 %v4737_v39, %s5297_s15  ;;  %v621_v56 = vsel %vm114_vm6, 0.0, %v620_v7  ;;  %v677_v8 = vsel %vm114_vm6, 0.0, %v676_v59  ;;  %v4742_v0 = vpack.i.bf16 %v456_v36, %v400_v42  ;;  %v4586_v41 = vunpack.i.h.bf16 %v4584_v2  ;;  %v8606_v42 = vld [vmem:[#allocation17_spill] sm:$0xff] }
 0x159   :  { %4733 = vrot.lane.b32.xlu0 %v4732_v52, %s5296_s14  ;;  %v4747_v9 = vpack.i.bf16 %v677_v8, %v621_v56  ;;  %v4585_v35 = vunpack.i.l.bf16 %v4584_v2  ;;  %v626_v48 = vrot.slane %v6070_v50, 4  ;;  %v682_v39 = vrot.slane %v6073_v28, 4  ;;  %v4599_v24 = vpop.permute.xlu1 %4598  ;;  %v8607_v56 = vld [vmem:[#allocation18_spill] sm:$0xff] }
 0x15a   :  { %v1041_v54 = vrot.slane %v6168_v6, 4  ;;  %v1097_v7 = vrot.slane %v8605_v15, 4  ;;  %v4604_v59 = vpop.permute.xlu0 %4603  ;;  %v298_v60 = vsel %vm286_vm9, %v6437_v20, %v4586_v41  ;;  %v624_v36 = vrot.slane %v8606_v42, 4 }
 0x15b   :  { %v287_v52 = vsel %vm286_vm9, %v6434_v57, %v4585_v35  ;;  %v680_v2 = vrot.slane %v8607_v56, 4  ;;  %v8608_v50 = vunpack.i.l.bf16 %v6089_v40  ;;  %v8609_v6 = vunpack.i.h.bf16 %v6089_v40 }
 0x15c   :  { %v627_v15 = vsel %vm114_vm6, 0.0, %v626_v48  ;;  %v683_v53 = vsel %vm114_vm6, 0.0, %v682_v39  ;;  %v1042_v35 = vsel %vm114_vm6, 0.0, %v1041_v54  ;;  %v8610_v40 = vunpack.i.h.bf16 %v6278_v12 }
 0x15d   :  { %v289_v28 = vsel %vm288_vm10, %v287_v52, %v8608_v50  ;;  %v299_v8 = vsel %vm288_vm10, %v298_v60, %v8609_v6  ;;  %v4762_v41 = vpack.i.bf16 %v683_v53, %v627_v15  ;;  %v1098_v48 = vsel %vm114_vm6, 0.0, %v1097_v7  ;;  %v8613_v50 = vld [vmem:[#allocation16_spill] sm:$0xff]  ;;  %v8615_v6 = vld [vmem:[#allocation14_spill] sm:$0xff] }
 0x15e   :  { %v291_v57 = vsel %vm290_vm11, %v289_v28, %v4590_v63  ;;  %v300_v20 = vsel %vm290_vm11, %v299_v8, %v4591_v18  ;;  %v625_v39 = vsel %vm114_vm6, 0.0, %v624_v36  ;;  %v4565_v63 = vunpack.i.l.bf16 %v6396_v38 }
 0x15f   :  { %v293_v52 = vsel %vm292_vm12, %v291_v57, %v4545_v14  ;;  %v301_v60 = vsel %vm292_vm12, %v300_v20, %v8610_v40  ;;  %v8611_v18 = vunpack.i.h.bf16 %v6388_v58  ;;  %v681_v12 = vsel %vm114_vm6, 0.0, %v680_v2  ;;  %v8616_v58 = vld [vmem:[#allocation15_spill] sm:$0xff]  ;;  %v8618_v57 = vld [vmem:[#allocation20_spill] sm:$0xff] }
 0x160   :  { %4743 = vrot.lane.b32.xlu1 %v4742_v0, %s5298_s16  ;;  %4753 = vrot.lane.b32.xlu2 %v4752_v37, %s5296_s14  ;;  %v295_v53 = vsel %vm294_vm13, %v293_v52, %v4595_v22  ;;  %v4571_v0 = vunpack.i.h.bf16 %v6398_v13  ;;  %v4772_v7 = vpack.i.bf16 %v1098_v48, %v1042_v35  ;;  %v4757_v42 = vpack.i.bf16 %v681_v12, %v625_v39  ;;  %v8612_v37 = vld [vmem:[#allocation13_spill] sm:$0xff]  ;;  %v8620_v35 = vld [vmem:[#allocation27_spill] sm:$0xff]  ;;  %v8623_v48 = vld [vmem:[#allocation10_spill] sm:$0xff] }
 0x161   :  { %v302_v14 = vsel %vm294_vm13, %v301_v60, %v8611_v18  ;;  %4748 = vrot.lane.b32.xlu0 %v4747_v9, %s5295_s13  ;;  %v4601_v36 = vunpack.i.h.bf16 %v4599_v24  ;;  %v4600_v56 = vunpack.i.l.bf16 %v4599_v24  ;;  %v8614_v28 = vrot.slane %v8613_v50, 4  ;;  %v8621_v52 = vld [vmem:[#allocation19_spill] sm:$0xff] }
 0x162   :  { %v303_v54 = vpack.c.bf16 %v302_v14, %v295_v53  ;;  %v8617_v8 = vrot.slane %v8616_v58, 4  ;;  %v8619_v24 = vrot.slane %v8618_v57, 4  ;;  %v8622_v40 = vrot.slane %v8621_v52, 4  ;;  %v8624_v53 = vld [vmem:[#allocation9_spill] sm:$0xff]  ;;  %v4614_v58 = vpop.permute.xlu1 %4613 }
 0x163   :  { %v1016_v22 = vsel %vm114_vm6, %v8614_v28, %v8612_v37  ;;  %v939_v39 = vsel %vm282_vm7, %v8623_v48, %v4601_v36  ;;  %v932_v18 = vsel %vm282_vm7, %v8624_v53, %v4600_v56  ;;  %v4605_v37 = vunpack.i.l.bf16 %v4604_v59  ;;  %v4619_v36 = vpop.permute.xlu0 %4618 }
 0x164   :  { %v1072_v15 = vsel %vm114_vm6, %v8617_v8, %v8615_v6  ;;  %304 = vst [vmem:[#allocation3] sm:$0x33] %v303_v54  ;;  %v6563_v2 = vperm.slane %v1016_v22, %v5495_v10  ;;  %v1240_v20 = vsel %vm114_vm6, %v8619_v24, %v6208_v32  ;;  %v1296_v60 = vsel %vm114_vm6, %v8622_v40, %v8620_v35  ;;  %v8625_v32 = vld [vmem:[#allocation23_spill] sm:$0xff]  ;;  %v6592_v8 = vpop.permute.xlu2 %4623  ;;  %v8628_v35 = vld [vmem:[#allocation25_spill] sm:$0xff]  ;;  %v8629_v40 = vld [vmem:[#allocation26_spill] sm:$0xff] }
 0x165   :  { %v6566_v9 = vperm.slane %v1072_v15, %v5495_v10  ;;  %v6581_v14 = vperm.slane %v1240_v20, %v5495_v10  ;;  %v6584_v12 = vperm.slane %v1296_v60, %v5495_v10  ;;  %v4606_v54 = vunpack.i.h.bf16 %v4604_v59 }
 0x166   :  { %v8626_v50 = vunpack.i.h.bf16 %v8625_v32  ;;  %v8627_v22 = vunpack.i.l.bf16 %v8625_v32  ;;  %v1039_v56 = vrot.slane %v6563_v2, 4  ;;  %v4570_v24 = vunpack.i.l.bf16 %v6398_v13 }
 0x167   :  { %v1095_v15 = vrot.slane %v6566_v9, 4  ;;  %v1263_v57 = vrot.slane %v6581_v14, 4  ;;  %v1319_v59 = vrot.slane %v6584_v12, 4  ;;  %v1043_v52 = vrot.slane %v8628_v35, 4 }
 0x168   :  { %v940_v28 = vsel %vm284_vm8, %v939_v39, %v8626_v50  ;;  %v933_v6 = vsel %vm284_vm8, %v932_v18, %v8627_v22  ;;  %4758 = vrot.lane.b32.xlu1 %v4757_v42, %s5297_s15  ;;  %v1099_v60 = vrot.slane %v8629_v40, 4  ;;  %4773 = vrot.lane.b32.xlu2 %v4772_v7, %s5296_s14  ;;  %v4621_v18 = vunpack.i.h.bf16 %v4619_v36 }
 0x169   :  { %v941_v20 = vsel %vm286_vm9, %v940_v28, %v4606_v54  ;;  %v934_v48 = vsel %vm286_vm9, %v933_v6, %v4605_v37  ;;  %v1264_v39 = vsel %vm114_vm6, 0.0, %v1263_v57  ;;  %v1320_v53 = vsel %vm114_vm6, 0.0, %v1319_v59  ;;  %4763 = vrot.lane.b32.xlu0 %v4762_v41, %s5298_s16 }
 0x16a   :  { %v4626_v32 = vunpack.i.h.bf16 %v6592_v8  ;;  %v1044_v42 = vsel %vm114_vm6, 0.0, %v1043_v52  ;;  %v1100_v54 = vsel %vm114_vm6, 0.0, %v1099_v60  ;;  %v4620_v50 = vunpack.i.l.bf16 %v4619_v36  ;;  %v8631_v52 = vld [vmem:[#allocation12_spill] sm:$0xff]  ;;  %v8632_v36 = vld [vmem:[#allocation11_spill] sm:$0xff] }
 0x16b   :  { %v1040_v28 = vsel %vm114_vm6, 0.0, %v1039_v56  ;;  %v1096_v7 = vsel %vm114_vm6, 0.0, %v1095_v15  ;;  %v4616_v22 = vunpack.i.h.bf16 %v4614_v58  ;;  %v4615_v37 = vunpack.i.l.bf16 %v4614_v58 }
 0x16c   :  { %v4787_v6 = vpack.i.bf16 %v1320_v53, %v1264_v39  ;;  %v4777_v57 = vpack.i.bf16 %v1100_v54, %v1044_v42  ;;  %v935_v59 = vsel %vm288_vm10, %v934_v48, %v4555_v19  ;;  %v8630_v35 = vunpack.i.h.bf16 %v6330_v46  ;;  %v8637_v53 = vld [vmem:[#allocation21_spill] sm:$0xff]  ;;  %v8638_v42 = vld [vmem:[#allocation28_spill] sm:$0xff] }
 0x16d   :  { %v1585_v40 = vsel %vm282_vm7, %v8631_v52, %v4621_v18  ;;  %v1578_v56 = vsel %vm282_vm7, %v8632_v36, %v4620_v50  ;;  %v8633_v15 = vunpack.i.l.bf16 %v6457_v30  ;;  %v8634_v60 = vunpack.i.h.bf16 %v6457_v30  ;;  %v8640_v52 = vld [vmem:[#allocation29_spill] sm:$0xff] }
 0x16e   :  { %v942_v41 = vsel %vm288_vm10, %v941_v20, %v8630_v35  ;;  %v8635_v19 = vunpack.i.l.bf16 %v6337_v5  ;;  %v8636_v20 = vunpack.i.h.bf16 %v6337_v5  ;;  %v1045_v18 = vrot.slane %v8637_v53, 4  ;;  %v8639_v35 = vld [vmem:[#allocation22_spill] sm:$0xff] }
 0x16f   :  { %v936_v58 = vsel %vm290_vm11, %v935_v59, %v8633_v15  ;;  %v943_v39 = vsel %vm290_vm11, %v942_v41, %v8634_v60  ;;  %v1269_v54 = vrot.slane %v8638_v42, 4  ;;  %v1101_v30 = vrot.slane %v8639_v35, 4 }
 0x170   :  { %v937_v46 = vsel %vm292_vm12, %v936_v58, %v8635_v19  ;;  %v944_v48 = vsel %vm292_vm12, %v943_v39, %v8636_v20  ;;  %v1325_v41 = vrot.slane %v8640_v52, 4  ;;  %v4767_v36 = vpack.i.bf16 %v1096_v7, %v1040_v28  ;;  %4778 = vrot.lane.b32.xlu1 %v4777_v57, %s5297_s15  ;;  %v8641_v58 = vld [vmem:[#allocation32_spill] sm:$0xff]  ;;  %v4629_v39 = vpop.permute.xlu1 %4628  ;;  %4788 = vrot.lane.b32.xlu2 %v4787_v6, %s5295_s13  ;;  %v8643_v7 = vld [vmem:[#allocation33_spill] sm:$0xff] }
 0x171   :  { %v938_v50 = vsel %vm294_vm13, %v937_v46, %v4615_v37  ;;  %v945_v59 = vsel %vm294_vm13, %v944_v48, %v4616_v22  ;;  %v1270_v5 = vsel %vm114_vm6, 0.0, %v1269_v54  ;;  %v1265_v60 = vrot.slane %v8641_v58, 4  ;;  %v4634_v46 = vpop.permute.xlu0 %4633 }
 0x172   :  { %v946_v15 = vpack.c.bf16 %v945_v59, %v938_v50  ;;  %v8642_v19 = vunpack.i.h.bf16 %v6396_v38  ;;  %v1579_v22 = vsel %vm284_vm8, %v1578_v56, %v4565_v63  ;;  %v1326_v28 = vsel %vm114_vm6, 0.0, %v1325_v41  ;;  %4768 = vrot.lane.b32.xlu0 %v4767_v36, %s5295_s13 }
 0x173   :  { %v1321_v57 = vrot.slane %v8643_v7, 4  ;;  %v4625_v20 = vunpack.i.l.bf16 %v6592_v8  ;;  %v4802_v53 = vpack.i.bf16 %v1326_v28, %v1270_v5  ;;  %v1266_v6 = vsel %vm114_vm6, 0.0, %v1265_v60 }
 0x174   :  { %v1586_v37 = vsel %vm284_vm8, %v1585_v40, %v8642_v19  ;;  %v948_v48 = vrot.slane %v946_v15, 6  ;;  %v1046_v42 = vsel %vm114_vm6, 0.0, %v1045_v18  ;;  %v1102_v40 = vsel %vm114_vm6, 0.0, %v1101_v30 }
 0x175   :  { %v1322_v38 = vsel %vm114_vm6, 0.0, %v1321_v57  ;;  %v4631_v63 = vunpack.i.h.bf16 %v4629_v39  ;;  %v4636_v56 = vunpack.i.h.bf16 %v4634_v46  ;;  %v4630_v54 = vunpack.i.l.bf16 %v4629_v39  ;;  %v8648_v39 = vld [vmem:[#allocation30_spill] sm:$0xff] }
 0x176   :  { %950 = vst [vmem:[#allocation3 + $0x8] sm:$0xcc] %v948_v48  ;;  %v1580_v50 = vsel %vm286_vm9, %v1579_v22, %v4625_v20  ;;  %v1587_v8 = vsel %vm286_vm9, %v1586_v37, %v4626_v32  ;;  %v4792_v59 = vpack.i.bf16 %v1322_v38, %v1266_v6  ;;  %v4635_v35 = vunpack.i.l.bf16 %v4634_v46 }
 0x177   :  { %v1581_v52 = vsel %vm288_vm10, %v1580_v50, %v4570_v24  ;;  %v1588_v18 = vsel %vm288_vm10, %v1587_v8, %v4571_v0  ;;  %v8644_v36 = vrot.slane %v6285_v23, 4  ;;  %v8645_v32 = vrot.slane %v6294_v43, 4  ;;  %v8649_v43 = vld [vmem:[#allocation31_spill] sm:$0xff] }
 0x178   :  { %v1582_v30 = vsel %vm290_vm11, %v1581_v52, %v4630_v54  ;;  %v1589_v41 = vsel %vm290_vm11, %v1588_v18, %v4631_v63  ;;  %v4782_v58 = vpack.i.bf16 %v1102_v40, %v1046_v42  ;;  %v8646_v24 = vunpack.i.l.bf16 %v6245_v33  ;;  %4793 = vrot.lane.b32.xlu1 %v4792_v59, %s5296_s14  ;;  %4803 = vrot.lane.b32.xlu2 %v4802_v53, %s5298_s16  ;;  %v8650_v54 = vld [vmem:[#allocation34_spill] sm:$0xff] }
 0x179   :  { %v1659_v15 = vsel %vm114_vm6, %v8644_v36, %v6300_v1  ;;  %v1715_v5 = vsel %vm114_vm6, %v8645_v32, %v6290_v47  ;;  %v8647_v0 = vunpack.i.h.bf16 %v6245_v33  ;;  %v1267_v19 = vrot.slane %v8648_v39, 4 }
 0x17a   :  { %v1583_v13 = vsel %vm292_vm12, %v1582_v30, %v8646_v24  ;;  %v1323_v37 = vrot.slane %v8649_v43, 4  ;;  %v6689_v47 = vperm.slane %v1659_v15, %v5495_v10  ;;  %v6693_v33 = vperm.slane %v1715_v5, %v5495_v10  ;;  %4783 = vrot.lane.b32.xlu0 %v4782_v58, %s5298_s16 }
 0x17b   :  { %v1590_v60 = vsel %vm292_vm12, %v1589_v41, %v8647_v0  ;;  %v1584_v23 = vsel %vm294_vm13, %v1583_v13, %v4635_v35  ;;  %v1684_v28 = vrot.slane %v6383_v31, 4  ;;  %v1740_v7 = vrot.slane %v6386_v25, 4 }
 0x17c   :  { %v1591_v1 = vsel %vm294_vm13, %v1590_v60, %v4636_v56  ;;  %v1941_v57 = vrot.slane %v6353_v49, 4  ;;  %v1885_v46 = vrot.slane %v6359_v17, 4  ;;  %v1682_v20 = vrot.slane %v6689_v47, 4  ;;  %v6707_v49 = vpop.permute.xlu2 %4638 }
 0x17d   :  { %v1592_v22 = vpack.c.bf16 %v1591_v1, %v1584_v23  ;;  %v1688_v48 = vrot.slane %v6347_v44, 4  ;;  %v1738_v53 = vrot.slane %v6693_v33, 4  ;;  %v1685_v6 = vsel %vm114_vm6, 0.0, %v1684_v28 }
 0x17e   :  { %v1741_v42 = vsel %vm114_vm6, 0.0, %v1740_v7  ;;  %v1268_v31 = vsel %vm114_vm6, 0.0, %v1267_v19  ;;  %v1683_v25 = vsel %vm114_vm6, 0.0, %v1682_v20  ;;  %v1324_v17 = vsel %vm114_vm6, 0.0, %v1323_v37  ;;  %v4361_v7 = vld [vmem:[%s8480_s0 + $0x48] sm:$0xff] }
 0x17f   :  { %1593 = vst [vmem:[#allocation3 + $0x18] sm:$0x33] %v1592_v22  ;;  %v1739_v40 = vsel %vm114_vm6, 0.0, %v1738_v53  ;;  %v1689_v38 = vsel %vm114_vm6, 0.0, %v1688_v48  ;;  %v1744_v44 = vrot.slane %v6350_v27, 4  ;;  %v4812_v63 = vpack.i.bf16 %v1741_v42, %v1685_v6  ;;  %v4364_v53 = vld [vmem:[%s8480_s0 + $0x60] sm:$0xff] }
 0x180   :  { %v1886_v56 = vsel %vm114_vm6, %v1885_v46, %v6319_v3  ;;  %v1942_v50 = vsel %vm114_vm6, %v1941_v57, %v8650_v54  ;;  %v4807_v8 = vpack.i.bf16 %v1739_v40, %v1683_v25  ;;  %v4797_v18 = vpack.i.bf16 %v1324_v17, %v1268_v31  ;;  %v4362_v57 = vld [vmem:[%s8480_s0 + $0x50] sm:$0xff]  ;;  %v4360_v46 = vld [vmem:[%s8480_s0 + $0x40] sm:$0xff]  ;;  %v4365_v42 = vld [vmem:[%s8480_s0 + $0x68] sm:$0xff] }
 0x181   :  { %v1745_v59 = vsel %vm114_vm6, 0.0, %v1744_v44  ;;  %v6719_v35 = vperm.slane %v1886_v56, %v5495_v10  ;;  %v6722_v52 = vperm.slane %v1942_v50, %v5495_v10  ;;  %4813 = vrot.lane.b32.xlu1 %v4812_v63, %s5296_s14  ;;  %v1686_v3 = vrot.slane %v6372_v21, 4  ;;  %v4363_v31 = vld [vmem:[%s8480_s0 + $0x58] sm:$0xff] }
 0x182   :  { %v4822_v27 = vpack.i.bf16 %v1745_v59, %v1689_v38  ;;  %4808 = vrot.lane.b32.xlu2 %v4807_v8, %s5295_s13  ;;  %v1742_v30 = vrot.slane %v6375_v62, 4  ;;  %4798 = vrot.lane.b32.xlu0 %v4797_v18, %s5297_s15  ;;  %v1915_v21 = vrot.slane %v6417_v4, 4  ;;  %v1971_v62 = vrot.slane %v6420_v29, 4  ;;  %v4367_v40 = vld [vmem:[%s8480_s0 + $0x78] sm:$0xff]  ;;  %v4366_v38 = vld [vmem:[%s8480_s0 + $0x70] sm:$0xff] }
 0x183   :  { %v1909_v41 = vrot.slane %v6719_v35, 4  ;;  %v1965_v36 = vrot.slane %v6722_v52, 4  ;;  %v1687_v5 = vsel %vm114_vm6, 0.0, %v1686_v3  ;;  %v1913_v60 = vrot.slane %v6428_v26, 4 }
 0x184   :  { %v1743_v58 = vsel %vm114_vm6, 0.0, %v1742_v30  ;;  %v6735_v13 = vpop.permute.xlu2 %4663  ;;  %v1969_v39 = vrot.slane %v6431_v34, 4  ;;  %v1911_v19 = vrot.slane %v6411_v51, 4  ;;  %v1967_v23 = vrot.slane %v6414_v61, 4 }
 0x185   :  { %v1910_v15 = vsel %vm114_vm6, 0.0, %v1909_v41  ;;  %v1966_v32 = vsel %vm114_vm6, 0.0, %v1965_v36  ;;  %v4817_v0 = vpack.i.bf16 %v1743_v58, %v1687_v5  ;;  %v1916_v1 = vsel %vm114_vm6, 0.0, %v1915_v21 }
 0x186   :  { %v4827_v24 = vpack.i.bf16 %v1966_v32, %v1910_v15  ;;  %v1972_v4 = vsel %vm114_vm6, 0.0, %v1971_v62  ;;  %v1914_v29 = vsel %vm114_vm6, 0.0, %v1913_v60  ;;  %v1970_v43 = vsel %vm114_vm6, 0.0, %v1969_v39 }
 0x187   :  { %v1912_v26 = vsel %vm114_vm6, 0.0, %v1911_v19  ;;  %v1968_v34 = vsel %vm114_vm6, 0.0, %v1967_v23  ;;  %v4842_v37 = vpack.i.bf16 %v1972_v4, %v1916_v1  ;;  %v4837_v22 = vpack.i.bf16 %v1970_v43, %v1914_v29  ;;  %v6766_v20 = vpop.permute.xlu0 %4648 }
 0x188   :  { %v4832_v28 = vpack.i.bf16 %v1968_v34, %v1912_v26  ;;  %v4641_v58 = vunpack.i.h.bf16 %v6707_v49 }
 0x189   :  { %4828 = vrot.lane.b32.xlu1 %v4827_v24, %s5295_s13  ;;  %v4644_v61 = vpop.permute.xlu1 %4643  ;;  %v4640_v24 = vunpack.i.l.bf16 %v6707_v49 }
 0x18a   :  { %4823 = vrot.lane.b32.xlu2 %v4822_v27, %s5298_s16  ;;  %4818 = vrot.lane.b32.xlu0 %v4817_v0, %s5297_s15  ;;  %v4646_v19 = vunpack.i.h.bf16 %v4644_v61  ;;  %v4645_v23 = vunpack.i.l.bf16 %v4644_v61 }
 0x18c   :  { %v6753_v51 = vpop.permute.xlu2 %4678 }
 0x191   :  { %4843 = vrot.lane.b32.xlu1 %v4842_v37, %s5298_s16  ;;  %v6776_v6 = vpop.permute.xlu1 %4653 }
 0x192   :  { %4838 = vrot.lane.b32.xlu2 %v4837_v22, %s5297_s15  ;;  %4833 = vrot.lane.b32.xlu0 %v4832_v28, %s5296_s14  ;;  %v4651_v22 = vunpack.i.h.bf16 %v6766_v20  ;;  %v4650_v28 = vunpack.i.l.bf16 %v6766_v20  ;;  %v4655_v20 = vunpack.i.l.bf16 %v6776_v6 }
 0x194   :  { %v6771_v48 = vpop.permute.xlu2 %4688  ;;  %v6784_v25 = vpop.permute.xlu0 %4658 }
 0x199   :  { %2214 = vrot.lane.b32.xlu1 %v4361_v7, %s5285_s19 }
 0x19a   :  { %2216 = vrot.lane.b32.xlu2 %v4362_v57, %s5285_s19  ;;  %2212 = vrot.lane.b32.xlu0 %v4360_v46, %s5285_s19 }
 0x19f   :  { %v6797_v44 = vpop.permute.xlu1 %4668 }
 0x1a1   :  { %2220 = vrot.lane.b32.xlu1 %v4364_v53, %s5285_s19 }
 0x1a2   :  { %2222 = vrot.lane.b32.xlu2 %v4365_v42, %s5285_s19  ;;  %2218 = vrot.lane.b32.xlu0 %v4363_v31, %s5285_s19  ;;  %v6789_v17 = vpop.permute.xlu2 %4703  ;;  %v6800_v63 = vpop.permute.xlu0 %4673 }
 0x1a7   :  { %v6805_v54 = vpop.permute.xlu1 %4693 }
 0x1a9   :  { %2226 = vrot.lane.b32.xlu1 %v4367_v40, %s5285_s19 }
 0x1aa   :  { %2224 = vrot.lane.b32.xlu0 %v4366_v38, %s5285_s19  ;;  %v6803_v56 = vpop.permute.xlu2 %4713 }
 0x1ab   :  { %v6807_v8 = vpop.permute.xlu0 %4683 }
 0x1b2   :  { %v4739_v50 = vpop.permute.xlu2 %4738 }
 0x1b3   :  { %v4741_v29 = vunpack.i.h.bf16 %v4739_v50  ;;  %v4740_v43 = vunpack.i.l.bf16 %v4739_v50 }
 0x1b7   :  { %v6809_v59 = vpop.permute.xlu1 %4708 }
 0x1ba   :  { %v4754_v18 = vpop.permute.xlu2 %4753 }
 0x1bb   :  { %v6811_v27 = vpop.permute.xlu0 %4698 }
 0x1c1   :  { %v6813_v3 = vpop.permute.xlu1 %4718 }
 0x1c2   :  { %v6815_v30 = vpop.permute.xlu2 %4773 }
 0x1c3   :  { %v6817_v41 = vpop.permute.xlu0 %4723 }
 0x1ca   :  { %v4729_v36 = vpop.permute.xlu1 %4728  ;;  %v6819_v15 = vpop.permute.xlu2 %4788 }
 0x1cb   :  { %v4731_v32 = vunpack.i.h.bf16 %v4729_v36  ;;  %v4730_v5 = vunpack.i.l.bf16 %v4729_v36  ;;  %v4734_v21 = vpop.permute.xlu0 %4733 }
 0x1cc   :  { %v4736_v62 = vunpack.i.h.bf16 %v4734_v21  ;;  %v4735_v0 = vunpack.i.l.bf16 %v4734_v21 }
 0x1cd   :  { %v520_v60 = vsel %vm282_vm7, %v6472_v45, %v4731_v32  ;;  %v513_v39 = vsel %vm282_vm7, %v6461_v55, %v4730_v5  ;;  %v4656_v32 = vunpack.i.h.bf16 %v6776_v6  ;;  %v4661_v6 = vunpack.i.h.bf16 %v6784_v25 }
 0x1ce   :  { %v514_v1 = vsel %vm284_vm8, %v513_v39, %v4640_v24  ;;  %v521_v4 = vsel %vm284_vm8, %v520_v60, %v4641_v58  ;;  %v4756_v58 = vunpack.i.h.bf16 %v4754_v18  ;;  %v4755_v24 = vunpack.i.l.bf16 %v4754_v18 }
 0x1cf   :  { %v515_v26 = vsel %vm286_vm9, %v514_v1, %v4735_v0  ;;  %v522_v49 = vsel %vm286_vm9, %v521_v4, %v4736_v62  ;;  %v4660_v1 = vunpack.i.l.bf16 %v6784_v25 }
 0x1d0   :  { %v516_v34 = vsel %vm288_vm10, %v515_v26, %v4645_v23  ;;  %v523_v37 = vsel %vm288_vm10, %v522_v49, %v4646_v19 }
 0x1d1   :  { %v517_v45 = vsel %vm290_vm11, %v516_v34, %v4740_v43  ;;  %v524_v55 = vsel %vm290_vm11, %v523_v37, %v4741_v29  ;;  %v4665_v43 = vunpack.i.l.bf16 %v6735_v13 }
 0x1d2   :  { %v4744_v61 = vpop.permute.xlu1 %4743  ;;  %v6837_v7 = vpop.permute.xlu2 %4803  ;;  %v518_v42 = vsel %vm292_vm12, %v517_v45, %v4650_v28  ;;  %v525_v31 = vsel %vm292_vm12, %v524_v55, %v4651_v22 }
 0x1d3   :  { %v4746_v57 = vunpack.i.h.bf16 %v4744_v61  ;;  %v4745_v46 = vunpack.i.l.bf16 %v4744_v61  ;;  %v4749_v53 = vpop.permute.xlu0 %4748 }
 0x1d4   :  { %v4751_v40 = vunpack.i.h.bf16 %v4749_v53  ;;  %v4750_v38 = vunpack.i.l.bf16 %v4749_v53 }
 0x1d5   :  { %v519_v50 = vsel %vm294_vm13, %v518_v42, %v4745_v46  ;;  %v526_v36 = vsel %vm294_vm13, %v525_v31, %v4746_v57 }
 0x1d6   :  { %v527_v5 = vpack.c.bf16 %v526_v36, %v519_v50  ;;  %v747_v21 = vsel %vm282_vm7, %v6496_v11, %v4751_v40  ;;  %v740_v62 = vsel %vm282_vm7, %v6493_v16, %v4750_v38  ;;  %v4666_v16 = vunpack.i.h.bf16 %v6735_v13 }
 0x1d7   :  { %v741_v0 = vsel %vm284_vm8, %v740_v62, %v4655_v20  ;;  %v748_v60 = vsel %vm284_vm8, %v747_v21, %v4656_v32  ;;  %v4671_v38 = vunpack.i.h.bf16 %v6797_v44  ;;  %v4670_v50 = vunpack.i.l.bf16 %v6797_v44 }
 0x1d8   :  { %v529_v39 = vrot.slane %v527_v5, 6  ;;  %v742_v19 = vsel %vm286_vm9, %v741_v0, %v4755_v24  ;;  %v749_v23 = vsel %vm286_vm9, %v748_v60, %v4756_v58  ;;  %v4776_v36 = vunpack.i.h.bf16 %v6815_v30 }
 0x1d9   :  { %v743_v49 = vsel %vm288_vm10, %v742_v19, %v4660_v1  ;;  %v750_v34 = vsel %vm288_vm10, %v749_v23, %v4661_v6  ;;  %v4775_v32 = vunpack.i.l.bf16 %v6815_v30  ;;  %v4676_v58 = vunpack.i.h.bf16 %v6800_v63 }
 0x1da   :  { %531 = vst [vmem:[#allocation3] sm:$0xcc] %v529_v39  ;;  %v4759_v18 = vpop.permute.xlu1 %4758  ;;  %v4675_v24 = vunpack.i.l.bf16 %v6800_v63  ;;  %v4791_v39 = vunpack.i.h.bf16 %v6819_v15 }
 0x1db   :  { %v4761_v11 = vunpack.i.h.bf16 %v4759_v18  ;;  %v4760_v29 = vunpack.i.l.bf16 %v4759_v18  ;;  %v4764_v26 = vpop.permute.xlu0 %4763  ;;  %v4681_v18 = vunpack.i.h.bf16 %v6753_v51 }
 0x1dc   :  { %v6855_v4 = vpop.permute.xlu2 %4808  ;;  %v4766_v37 = vunpack.i.h.bf16 %v4764_v26  ;;  %v4765_v45 = vunpack.i.l.bf16 %v4764_v26 }
 0x1dd   :  { %v744_v55 = vsel %vm290_vm11, %v743_v49, %v4760_v29  ;;  %v751_v25 = vsel %vm290_vm11, %v750_v34, %v4761_v11  ;;  %v4680_v11 = vunpack.i.l.bf16 %v6753_v51  ;;  %v4686_v51 = vunpack.i.h.bf16 %v6807_v8 }
 0x1de   :  { %v745_v22 = vsel %vm292_vm12, %v744_v55, %v4665_v43  ;;  %v752_v28 = vsel %vm292_vm12, %v751_v25, %v4666_v16 }
 0x1df   :  { %v746_v61 = vsel %vm294_vm13, %v745_v22, %v4765_v45  ;;  %v753_v57 = vsel %vm294_vm13, %v752_v28, %v4766_v37  ;;  %v4685_v22 = vunpack.i.l.bf16 %v6807_v8  ;;  %v4690_v8 = vunpack.i.l.bf16 %v6771_v48 }
 0x1e0   :  { %v754_v13 = vpack.c.bf16 %v753_v57, %v746_v61  ;;  %v4810_v61 = vunpack.i.l.bf16 %v6855_v4 }
 0x1e2   :  { %755 = vst [vmem:[#allocation3 + $0x8] sm:$0x33] %v754_v13  ;;  %v4779_v46 = vpop.permute.xlu1 %4778 }
 0x1e3   :  { %v4781_v0 = vunpack.i.h.bf16 %v4779_v46  ;;  %v4780_v44 = vunpack.i.l.bf16 %v4779_v46 }
 0x1e4   :  { %v6867_v53 = vpop.permute.xlu2 %4823  ;;  %v4769_v42 = vpop.permute.xlu0 %4768 }
 0x1e5   :  { %v4771_v31 = vunpack.i.h.bf16 %v4769_v42  ;;  %v4770_v40 = vunpack.i.l.bf16 %v4769_v42 }
 0x1e7   :  { %v1166_v20 = vsel %vm282_vm7, %v6566_v9, %v4771_v31  ;;  %v1159_v5 = vsel %vm282_vm7, %v6563_v2, %v4770_v40  ;;  %v4790_v9 = vunpack.i.l.bf16 %v6819_v15  ;;  %v1390_v15 = vsel %vm282_vm7, %v6584_v12, %v4791_v39 }
 0x1e8   :  { %v1160_v21 = vsel %vm284_vm8, %v1159_v5, %v4670_v50  ;;  %v1167_v62 = vsel %vm284_vm8, %v1166_v20, %v4671_v38  ;;  %v4811_v12 = vunpack.i.h.bf16 %v6855_v4  ;;  %v1391_v57 = vsel %vm284_vm8, %v1390_v15, %v4686_v51 }
 0x1e9   :  { %v1161_v60 = vsel %vm286_vm9, %v1160_v21, %v4775_v32  ;;  %v1168_v30 = vsel %vm286_vm9, %v1167_v62, %v4776_v36  ;;  %v1383_v26 = vsel %vm282_vm7, %v6581_v14, %v4790_v9  ;;  %v4691_v40 = vunpack.i.h.bf16 %v6771_v48 }
 0x1ea   :  { %v1162_v2 = vsel %vm288_vm10, %v1161_v60, %v4675_v24  ;;  %v1169_v19 = vsel %vm288_vm10, %v1168_v30, %v4676_v58  ;;  %v4794_v23 = vpop.permute.xlu1 %4793  ;;  %v1384_v14 = vsel %vm284_vm8, %v1383_v26, %v4685_v22  ;;  %v4696_v38 = vunpack.i.h.bf16 %v6805_v54 }
 0x1eb   :  { %v1163_v63 = vsel %vm290_vm11, %v1162_v2, %v4780_v44  ;;  %v1170_v6 = vsel %vm290_vm11, %v1169_v19, %v4781_v0  ;;  %v4796_v55 = vunpack.i.h.bf16 %v4794_v23  ;;  %v4795_v25 = vunpack.i.l.bf16 %v4794_v23 }
 0x1ec   :  { %v6889_v1 = vpop.permute.xlu2 %4838  ;;  %v4784_v29 = vpop.permute.xlu0 %4783  ;;  %v1164_v49 = vsel %vm292_vm12, %v1163_v63, %v4680_v11  ;;  %v1171_v34 = vsel %vm292_vm12, %v1170_v6, %v4681_v18  ;;  %v4695_v50 = vunpack.i.l.bf16 %v6805_v54  ;;  %v4806_v36 = vunpack.i.h.bf16 %v6837_v7 }
 0x1ed   :  { %v4786_v16 = vunpack.i.h.bf16 %v4784_v29  ;;  %v4785_v43 = vunpack.i.l.bf16 %v4784_v29  ;;  %v1385_v46 = vsel %vm286_vm9, %v1384_v14, %v4795_v25  ;;  %v1392_v42 = vsel %vm286_vm9, %v1391_v57, %v4796_v55 }
 0x1ee   :  { %v4805_v32 = vunpack.i.l.bf16 %v6837_v7  ;;  %v1809_v58 = vsel %vm282_vm7, %v6693_v33, %v4811_v12  ;;  %v1802_v24 = vsel %vm282_vm7, %v6689_v47, %v4810_v61  ;;  %v1386_v48 = vsel %vm288_vm10, %v1385_v46, %v4690_v8 }
 0x1ef   :  { %v1165_v37 = vsel %vm294_vm13, %v1164_v49, %v4785_v43  ;;  %v1172_v45 = vsel %vm294_vm13, %v1171_v34, %v4786_v16  ;;  %v1393_v21 = vsel %vm288_vm10, %v1392_v42, %v4691_v40  ;;  %v4701_v7 = vunpack.i.h.bf16 %v6811_v27 }
 0x1f0   :  { %v1173_v28 = vpack.c.bf16 %v1172_v45, %v1165_v37  ;;  %v4700_v60 = vunpack.i.l.bf16 %v6811_v27  ;;  %v4706_v27 = vunpack.i.h.bf16 %v6789_v17  ;;  %v4705_v11 = vunpack.i.l.bf16 %v6789_v17 }
 0x1f1   :  { %v1810_v19 = vsel %vm284_vm8, %v1809_v58, %v4701_v7  ;;  %v4711_v43 = vunpack.i.h.bf16 %v6809_v59  ;;  %v4710_v15 = vunpack.i.l.bf16 %v6809_v59  ;;  %v4826_v34 = vunpack.i.h.bf16 %v6867_v53 }
 0x1f2   :  { %1174 = vst [vmem:[#allocation3 + $0x10] sm:$0x33] %v1173_v28  ;;  %v1803_v2 = vsel %vm284_vm8, %v1802_v24, %v4700_v60  ;;  %v4825_v37 = vunpack.i.l.bf16 %v6867_v53  ;;  %v4716_v46 = vunpack.i.h.bf16 %v6803_v56  ;;  %v4715_v42 = vunpack.i.l.bf16 %v6803_v56 }
 0x1f3   :  { %v4814_v13 = vpop.permute.xlu1 %4813  ;;  %v4725_v58 = vunpack.i.l.bf16 %v6817_v41 }
 0x1f4   :  { %v2217_v31 = vpop.permute.xlu2 %2216  ;;  %v4799_v4 = vpop.permute.xlu0 %4798  ;;  %v4816_v0 = vunpack.i.h.bf16 %v4814_v13  ;;  %v4815_v44 = vunpack.i.l.bf16 %v4814_v13 }
 0x1f5   :  { %2238 = vst.msk [vmem:[#allocation2 + $0x19] sm:$0xff] %vm96_vm5, %v2217_v31  ;;  %v4801_v20 = vunpack.i.h.bf16 %v4799_v4  ;;  %v4800_v5 = vunpack.i.l.bf16 %v4799_v4  ;;  %v4720_v4 = vunpack.i.l.bf16 %v6813_v3 }
 0x1f6   :  { %v1804_v63 = vsel %vm286_vm9, %v1803_v2, %v4815_v44  ;;  %v1811_v6 = vsel %vm286_vm9, %v1810_v19, %v4816_v0 }
 0x1f7   :  { %v1387_v54 = vsel %vm290_vm11, %v1386_v48, %v4800_v5  ;;  %v1394_v62 = vsel %vm290_vm11, %v1393_v21, %v4801_v20  ;;  %v1805_v45 = vsel %vm288_vm10, %v1804_v63, %v4705_v11  ;;  %v1812_v55 = vsel %vm288_vm10, %v1811_v6, %v4706_v27 }
 0x1f8   :  { %v1388_v30 = vsel %vm292_vm12, %v1387_v54, %v4695_v50  ;;  %v1395_v33 = vsel %vm292_vm12, %v1394_v62, %v4696_v38  ;;  %v4721_v50 = vunpack.i.h.bf16 %v6813_v3  ;;  %v4726_v5 = vunpack.i.h.bf16 %v6817_v41 }
 0x1f9   :  { %v1389_v47 = vsel %vm294_vm13, %v1388_v30, %v4805_v32  ;;  %v1396_v39 = vsel %vm294_vm13, %v1395_v33, %v4806_v36  ;;  %v4841_v32 = vunpack.i.h.bf16 %v6889_v1 }
 0x1fa   :  { %v1397_v9 = vpack.c.bf16 %v1396_v39, %v1389_v47 }
 0x1fb   :  { %v4829_v23 = vpop.permute.xlu1 %4828 }
 0x1fc   :  { %v2223_v18 = vpop.permute.xlu2 %2222  ;;  %v1399_v29 = vrot.slane %v1397_v9, 6  ;;  %v4819_v16 = vpop.permute.xlu0 %4818  ;;  %v4831_v51 = vunpack.i.h.bf16 %v4829_v23  ;;  %v4830_v22 = vunpack.i.l.bf16 %v4829_v23 }
 0x1fd   :  { %2241 = vst.msk [vmem:[#allocation2 + $0x39] sm:$0xff] %vm96_vm5, %v2223_v18  ;;  %v4821_v26 = vunpack.i.h.bf16 %v4819_v16  ;;  %v4820_v49 = vunpack.i.l.bf16 %v4819_v16 }
 0x1fe   :  { %1401 = vst [vmem:[#allocation3 + $0x10] sm:$0xcc] %v1399_v29  ;;  %v2036_v57 = vsel %vm282_vm7, %v6722_v52, %v4831_v51  ;;  %v2029_v13 = vsel %vm282_vm7, %v6719_v35, %v4830_v22  ;;  %v4840_v35 = vunpack.i.l.bf16 %v6889_v1 }
 0x1ff   :  { %v1806_v17 = vsel %vm290_vm11, %v1805_v45, %v4820_v49  ;;  %v1813_v25 = vsel %vm290_vm11, %v1812_v55, %v4821_v26  ;;  %v2030_v36 = vsel %vm284_vm8, %v2029_v13, %v4715_v42  ;;  %v2037_v52 = vsel %vm284_vm8, %v2036_v57, %v4716_v46  ;;  %v4387_v55 = vld [vmem:[#allocation3 + $0x4] sm:$0xf0]  ;;  %v2045_v46 = vld [vmem:[%s8481_s1] sm:$0xf]  ;;  %v8651_v42 = vld [vmem:[#allocation7_spill] sm:$0xff] }
 0x200   :  { %v1807_v28 = vsel %vm292_vm12, %v1806_v17, %v4710_v15  ;;  %v1814_v59 = vsel %vm292_vm12, %v1813_v25, %v4711_v43  ;;  %v4346_v17 = vld [vmem:[#allocation3 + $0x8] sm:$0xf0]  ;;  %v4344_v25 = vld [vmem:[#allocation3] sm:$0xf] }
 0x201   :  { %v1808_v12 = vsel %vm294_vm13, %v1807_v28, %v4825_v37  ;;  %v1815_v61 = vsel %vm294_vm13, %v1814_v59, %v4826_v34  ;;  %v4386_v28 = vld [vmem:[#allocation3 + $0x4] sm:$0xf]  ;;  %v6991_v59 = vld [vmem:[#allocation2 + $0x18] sm:$0xff] }
 0x202   :  { %v1816_v53 = vpack.c.bf16 %v1815_v61, %v1808_v12  ;;  %v4349_v57 = vor.u32 %v4386_v28, %v4346_v17 }
 0x203   :  { %v4844_v14 = vpop.permute.xlu1 %4843 }
 0x204   :  { %v1818_v31 = vrot.slane %v1816_v53, 6  ;;  %v4834_v40 = vpop.permute.xlu0 %4833  ;;  %v4846_v48 = vunpack.i.h.bf16 %v4844_v14  ;;  %v4845_v21 = vunpack.i.l.bf16 %v4844_v14  ;;  %v4345_v14 = vor.u32 %v4387_v55, %v4344_v25 }
 0x205   :  { %v4836_v8 = vunpack.i.h.bf16 %v4834_v40  ;;  %v4835_v38 = vunpack.i.l.bf16 %v4834_v40  ;;  %v4352_v15 = vld [vmem:[#allocation3 + $0x10] sm:$0xf]  ;;  %v4388_v26 = vld [vmem:[#allocation3 + $0x14] sm:$0xf]  ;;  %v2266_v40 = vrot.slane %v6991_v59, 4 }
 0x206   :  { %1820 = vst [vmem:[#allocation3 + $0x18] sm:$0xcc] %v1818_v31 }
 0x207   :  { %v2031_v20 = vsel %vm286_vm9, %v2030_v36, %v4835_v38  ;;  %v2038_v56 = vsel %vm286_vm9, %v2037_v52, %v4836_v8 }
 0x208   :  { %v2032_v24 = vsel %vm288_vm10, %v2031_v20, %v4720_v4  ;;  %v2039_v3 = vsel %vm288_vm10, %v2038_v56, %v4721_v50 }
 0x209   :  { %v2033_v54 = vsel %vm290_vm11, %v2032_v24, %v4840_v35  ;;  %v2040_v62 = vsel %vm290_vm11, %v2039_v3, %v4841_v32 }
 0x20a   :  { %v2034_v1 = vsel %vm292_vm12, %v2033_v54, %v4725_v58  ;;  %v2041_v0 = vsel %vm292_vm12, %v2040_v62, %v4726_v5 }
 0x20b   :  { %v2215_v44 = vpop.permute.xlu1 %2214  ;;  %v2035_v7 = vsel %vm294_vm13, %v2034_v1, %v4845_v21  ;;  %v2042_v60 = vsel %vm294_vm13, %v2041_v0, %v4846_v48 }
 0x20c   :  { %2237 = vst.msk [vmem:[#allocation2 + $0x9] sm:$0xff] %vm96_vm5, %v2215_v44  ;;  %v2043_v41 = vpack.c.bf16 %v2042_v60, %v2035_v7  ;;  %v2213_v30 = vpop.permute.xlu0 %2212 }
 0x20d   :  { %2236 = vst.msk [vmem:[#allocation2 + $0x1] sm:$0xff] %vm96_vm5, %v2213_v30  ;;  %v4389_v63 = vld [vmem:[#allocation3 + $0x14] sm:$0xf0]  ;;  %v4354_v11 = vld [vmem:[#allocation3 + $0x18] sm:$0xf0] }
 0x20e   :  { %2044 = vst [vmem:[#allocation3 + $0x20] sm:$0x33] %v2043_v41  ;;  %v4353_v37 = vor.u32 %v4389_v63, %v4352_v15  ;;  %v4357_v45 = vor.u32 %v4388_v26, %v4354_v11  ;;  %v2136_v26 = vld [vmem:[%s8483_s3 + $0x78] sm:$0xff] }
 0x213   :  { %v2221_v33 = vpop.permute.xlu1 %2220 }
 0x214   :  { %2240 = vst.msk [vmem:[#allocation2 + $0x31] sm:$0xff] %vm96_vm5, %v2221_v33  ;;  %v2219_v47 = vpop.permute.xlu0 %2218  ;;  %v6987_v51 = vld [vmem:[#allocation2] sm:$0xff]  ;;  %v6989_v22 = vld [vmem:[#allocation2 + $0x8] sm:$0xff] }
 0x215   :  { %2239 = vst.msk [vmem:[#allocation2 + $0x21] sm:$0xff] %vm96_vm5, %v2219_v47  ;;  %v2050_v39 = vld [vmem:[#allocation3 + $0x20] sm:$0x33]  ;;  %v2254_v13 = vrot.slane %v6987_v51, 4  ;;  %v2310_v36 = vrot.slane %v6989_v22, 4 }
 0x216   :  { %v2070_v9 = vunpack.c.l.b16 %v2050_v39  ;;  %v2071_v2 = vunpack.c.h.b16 %v2050_v39 }
 0x218   :  { %v2076_v19 = vpack.c.b16 %v2070_v9, %v2070_v9  ;;  %v2077_v23 = vpack.c.b16 %v2071_v2, %v2071_v2 }
 0x21a   :  { %v2088_v6 = vsel %vm2086_vm14, %v2076_v19, 0  ;;  %v2091_v18 = vsel %vm2086_vm14, %v2077_v23, 0 }
 0x21b   :  { %v2227_v27 = vpop.permute.xlu1 %2226  ;;  %v6979_v29 = vld [vmem:[#allocation2 + $0x30] sm:$0xff]  ;;  %v6981_v16 = vld [vmem:[#allocation2 + $0x38] sm:$0xff]  ;;  %2098 = vmatpush.bf16.msra.mxu2 %v2088_v6  ;;  %2111 = vmatpush.bf16.msra.mxu3 %v2091_v18 }
 0x21c   :  { %2243 = vst.msk [vmem:[#allocation2 + $0x51] sm:$0xff] %vm96_vm5, %v2227_v27  ;;  %v2225_v43 = vpop.permute.xlu0 %2224  ;;  %v2252_v49 = vrot.slane %v6979_v29, 4  ;;  %v2308_v34 = vrot.slane %v6981_v16, 4  ;;  %v6993_v12 = vld [vmem:[#allocation2 + $0x20] sm:$0xff]  ;;  %v2255_v52 = vsel %vm114_vm6, %v6979_v29, %v2254_v13  ;;  %v2311_v58 = vsel %vm114_vm6, %v6981_v16, %v2310_v36 }
 0x21d   :  { %2242 = vst.msk [vmem:[#allocation2 + $0x49] sm:$0xff] %vm96_vm5, %v2225_v43  ;;  %v2322_v38 = vrot.slane %v6993_v12, 4  ;;  %v2263_v7 = vperm.slane %v2255_v52, %v8651_v42  ;;  %v2319_v60 = vperm.slane %v2311_v58, %v8651_v42 }
 0x21e   :  { %v2253_v61 = vsel %vm114_vm6, %v2252_v49, %v6987_v51  ;;  %v2309_v53 = vsel %vm114_vm6, %v2308_v34, %v6989_v22  ;;  %v2152_v49 = vld [vmem:[%s8483_s3 + $0xf8] sm:$0xff] }
 0x21f   :  { %2099 = vmatpush.bf16.msra.mxu2 %v4353_v37  ;;  %2112 = vmatpush.bf16.msra.mxu3 %v4357_v45  ;;  %v2259_v31 = vperm.slane %v2253_v61, %v8651_v42  ;;  %v2315_v8 = vperm.slane %v2309_v53, %v8651_v42  ;;  %v2346_v25 = vrot.slane %v2319_v60, 4 }
 0x221   :  { %v2278_v48 = vrot.slane %v2259_v31, 4  ;;  %v2334_v54 = vrot.slane %v2315_v8, 4 }
 0x223   :  { %2100 = vmatpush.bf16.msra.mxu2 %v4345_v14  ;;  %2113 = vmatpush.bf16.msra.mxu3 %v4349_v57  ;;  %v2290_v14 = vrot.slane %v2263_v7, 4 }
 0x224   :  { %v7007_v50 = vld [vmem:[#allocation2 + $0x48] sm:$0xff]  ;;  %v7009_v4 = vld [vmem:[#allocation2 + $0x50] sm:$0xff] }
 0x225   :  { %v2264_v32 = vrot.slane %v7007_v50, 4  ;;  %v2320_v35 = vrot.slane %v7009_v4, 4  ;;  %v2267_v20 = vsel %vm114_vm6, %v7007_v50, %v2266_v40  ;;  %v2323_v56 = vsel %vm114_vm6, %v7009_v4, %v2322_v38  ;;  %v7066_v40 = vld [vmem:[#allocation2 + $0x3a] sm:$0xff] }
 0x226   :  { %4358 = vmatmul.msk.bf16.vlgmr.msra.gmra.mxu2 %vm2082_vm15, %v2045_v46  ;;  %4359 = vmatmul.msk.bf16.vlgmr.msra.gmra.mxu3 %vm2082_vm15, %v2045_v46  ;;  %v2275_v5 = vperm.slane %v2267_v20, %v8651_v42  ;;  %v2331_v24 = vperm.slane %v2323_v56, %v8651_v42  ;;  %v3597_v52 = vrot.slane %v7066_v40, 4  ;;  %v7075_v56 = vld [vmem:[#allocation2 + $0xa] sm:$0xff] }
 0x227   :  { %v2265_v3 = vsel %vm114_vm6, %v2264_v32, %v6991_v59  ;;  %v2321_v21 = vsel %vm114_vm6, %v2320_v35, %v6993_v12  ;;  %2153 = vmatpush.msrb.mxu2 %v2136_v26  ;;  %2173 = vmatpush.msrb.mxu3 %v2152_v49 }
 0x228   :  { %v2271_v62 = vperm.slane %v2265_v3, %v8651_v42  ;;  %v2327_v1 = vperm.slane %v2321_v21, %v8651_v42  ;;  %v2288_v0 = vrot.slane %v2275_v5, 4  ;;  %v2344_v44 = vrot.slane %v2331_v24, 4 }
 0x229   :  { %v2347_v57 = vsel %vm114_vm6, %v2331_v24, %v2346_v25  ;;  %v2291_v36 = vsel %vm114_vm6, %v2275_v5, %v2290_v14  ;;  %v7078_v24 = vld [vmem:[#allocation2 + $0x9] sm:$0xff]  ;;  %v3598_v3 = vsel %vm114_vm6, %v3597_v52, %v7075_v56 }
 0x22a   :  { %v2276_v41 = vrot.slane %v2271_v62, 4  ;;  %v2279_v30 = vsel %vm114_vm6, %v2271_v62, %v2278_v48  ;;  %v2332_v33 = vrot.slane %v2327_v1, 4  ;;  %v2335_v47 = vsel %vm114_vm6, %v2327_v1, %v2334_v54 }
 0x22b   :  { %v2287_v39 = vperm.slane %v2279_v30, %v5495_v10  ;;  %v2343_v9 = vperm.slane %v2335_v47, %v5495_v10  ;;  %v2289_v2 = vsel %vm114_vm6, %v2288_v0, %v2263_v7  ;;  %v2345_v19 = vsel %vm114_vm6, %v2344_v44, %v2319_v60  ;;  %v7092_v0 = vld [vmem:[#allocation2 + $0x2] sm:$0xff]  ;;  %v7101_v30 = vld [vmem:[#allocation2 + $0x32] sm:$0xff] }
 0x22c   :  { %v2277_v23 = vsel %vm114_vm6, %v2276_v41, %v2259_v31  ;;  %v2333_v63 = vsel %vm114_vm6, %v2332_v33, %v2315_v8  ;;  %v2295_v6 = vperm.slane %v2289_v2, %v5495_v10  ;;  %v2351_v18 = vperm.slane %v2345_v19, %v5495_v10  ;;  %v7068_v8 = vld [vmem:[#allocation2 + $0x39] sm:$0xff]  ;;  %v7094_v44 = vld [vmem:[#allocation2 + $0x1] sm:$0xff]  ;;  %v7103_v33 = vld [vmem:[#allocation2 + $0x31] sm:$0xff] }
 0x22d   :  { %v4852_v27 = vpack.i.bf16 %v2343_v9, %v2287_v39  ;;  %v2302_v11 = vrot.slane %v2287_v39, 4  ;;  %v2358_v43 = vrot.slane %v2343_v9, 4  ;;  %v7045_v15 = vperm.slane %v2277_v23, %v5495_v10 }
 0x22e   :  { %v7054_v34 = vperm.slane %v2333_v63, %v5495_v10  ;;  %v2360_v37 = vrot.slane %v2351_v18, 4  ;;  %v2304_v53 = vrot.slane %v2295_v6, 4  ;;  %v2951_v32 = vrot.slane %v7068_v8, 4  ;;  %v7114_v63 = vld [vmem:[#allocation2 + $0x19] sm:$0xff] }
 0x22f   :  { %4853 = vrot.lane.b32.xlu0 %v4852_v27, %s5294_s12  ;;  %v2303_v45 = vsel %vm114_vm6, 0.0, %v2302_v11  ;;  %v2359_v55 = vsel %vm114_vm6, 0.0, %v2358_v43  ;;  %v2300_v17 = vrot.slane %v7045_v15, 4  ;;  %v2355_v20 = vperm.slane %v2347_v57, %v5495_v10  ;;  %v7135_v43 = vld [vmem:[#allocation2 + $0x1a] sm:$0xff] }
 0x230   :  { %v4857_v28 = vpack.i.bf16 %v2359_v55, %v2303_v45  ;;  %v2356_v61 = vrot.slane %v7054_v34, 4  ;;  %v2361_v31 = vsel %vm114_vm6, 0.0, %v2360_v37  ;;  %v2305_v35 = vsel %vm114_vm6, 0.0, %v2304_v53  ;;  %v7146_v55 = vld [vmem:[#allocation2 + $0x49] sm:$0xff] }
 0x231   :  { %v2301_v13 = vsel %vm114_vm6, 0.0, %v2300_v17  ;;  %v4867_v58 = vpack.i.bf16 %v2361_v31, %v2305_v35  ;;  %v2299_v5 = vperm.slane %v2291_v36, %v5495_v10  ;;  %v2952_v48 = vsel %vm114_vm6, %v2951_v32, %v7078_v24  ;;  %v7158_v53 = vld [vmem:[#allocation2 + $0x4a] sm:$0xff]  ;;  %v7180_v35 = vld [vmem:[#allocation2 + $0x21] sm:$0xff] }
 0x232   :  { %4858 = vrot.lane.b32.xlu1 %v4857_v28, %s5296_s14  ;;  %v2357_v46 = vsel %vm114_vm6, 0.0, %v2356_v61  ;;  %v2953_v21 = vrot.slane %v7078_v24, 4  ;;  %v3599_v54 = vrot.slane %v7075_v56, 4  ;;  %v4862_v60 = vpack.i.bf16 %v2351_v18, %v2295_v6 }
 0x233   :  { %v4847_v38 = vpack.i.bf16 %v2357_v46, %v2301_v13  ;;  %v4872_v62 = vpack.i.bf16 %v2355_v20, %v2299_v5  ;;  %v2362_v41 = vrot.slane %v2355_v20, 4  ;;  %v2897_v47 = vrot.slane %v7094_v44, 4 }
 0x234   :  { %v7090_v1 = vsel %vm114_vm6, %v7068_v8, %v2953_v21  ;;  %v7098_v7 = vsel %vm114_vm6, %v7066_v40, %v3599_v54  ;;  %v3543_v39 = vrot.slane %v7092_v0, 4  ;;  %v7110_v9 = vpack.i.bf16 %v6989_v22, %v6987_v51 }
 0x235   :  { %4848 = vrot.lane.b32.xlu2 %v4847_v38, %s5295_s13  ;;  %v3541_v2 = vrot.slane %v7101_v30, 4  ;;  %v2895_v19 = vrot.slane %v7103_v33, 4  ;;  %v2306_v23 = vrot.slane %v2299_v5, 4  ;;  %v7122_v18 = vsel %vm114_vm6, %v7103_v33, %v2897_v47 }
 0x236   :  { %v7118_v6 = vsel %vm114_vm6, %v7101_v30, %v3543_v39  ;;  %v7132_v27 = vpack.i.bf16 %v6993_v12, %v6991_v59  ;;  %v2363_v11 = vsel %vm114_vm6, 0.0, %v2362_v41  ;;  %v3604_v26 = vperm.slane %v3598_v3, %v8651_v42  ;;  %v7148_v12 = vld [vmem:[#allocation2 + $0x22] sm:$0xff] }
 0x237   :  { %4868 = vrot.lane.b32.xlu0 %v4867_v58, %s5297_s15  ;;  %v3542_v51 = vsel %vm114_vm6, %v3541_v2, %v7092_v0  ;;  %v2896_v22 = vsel %vm114_vm6, %v2895_v19, %v7094_v44  ;;  %v2909_v49 = vrot.slane %v7114_v63, 4  ;;  %v2307_v37 = vsel %vm114_vm6, 0.0, %v2306_v23 }
 0x238   :  { %v7144_v45 = vpack.i.bf16 %v7009_v4, %v7007_v50  ;;  %v4877_v59 = vpack.i.bf16 %v2363_v11, %v2307_v37  ;;  %v2902_v17 = vperm.slane %v2896_v22, %v8651_v42  ;;  %v2907_v25 = vrot.slane %v7146_v55, 4  ;;  %v7160_v50 = vld [vmem:[#allocation2 + $0x52] sm:$0xff] }
 0x239   :  { %v2910_v28 = vsel %vm114_vm6, %v7146_v55, %v2909_v49  ;;  %v7156_v61 = vpack.i.bf16 %v6981_v16, %v6979_v29  ;;  %v7162_v4 = vld [vmem:[#allocation2 + $0x51] sm:$0xff]  ;;  %v3548_v14 = vperm.slane %v3542_v51, %v8651_v42  ;;  %v3555_v57 = vrot.slane %v7135_v43, 4 }
 0x23a   :  { %4873 = vrot.lane.b32.xlu1 %v4872_v62, %s5293_s11  ;;  %v3611_v13 = vrot.slane %v7148_v12, 4  ;;  %v3553_v46 = vrot.slane %v7158_v53, 4  ;;  %v3609_v31 = vrot.slane %v7160_v50, 4  ;;  %v2958_v29 = vperm.slane %v2952_v48, %v8651_v42 }
 0x23b   :  { %v3623_v16 = vrot.slane %v3604_v26, 4  ;;  %v2908_v38 = vsel %vm114_vm6, %v2907_v25, %v7114_v63  ;;  %v2963_v36 = vrot.slane %v7162_v4, 4  ;;  %v3556_v52 = vsel %vm114_vm6, %v7158_v53, %v3555_v57 }
 0x23c   :  { %v3612_v32 = vsel %vm114_vm6, %v7160_v50, %v3611_v13  ;;  %v3554_v20 = vsel %vm114_vm6, %v3553_v46, %v7135_v43  ;;  %v3610_v58 = vsel %vm114_vm6, %v3609_v31, %v7148_v12  ;;  %v2914_v3 = vperm.slane %v2908_v38, %v8651_v42 }
 0x23d   :  { %4863 = vrot.lane.b32.xlu2 %v4862_v60, %s5292_s10  ;;  %v2921_v5 = vrot.slane %v2902_v17, 4  ;;  %v3560_v48 = vperm.slane %v3554_v20, %v8651_v42  ;;  %v3616_v21 = vperm.slane %v3610_v58, %v8651_v42  ;;  %v2964_v54 = vsel %vm114_vm6, %v2963_v36, %v7180_v35 }
 0x23e   :  { %v3567_v62 = vrot.slane %v3548_v14, 4  ;;  %v2919_v60 = vrot.slane %v2914_v3, 4  ;;  %v2970_v41 = vperm.slane %v2964_v54, %v8651_v42  ;;  %v3564_v39 = vperm.slane %v3556_v52, %v8651_v42 }
 0x23f   :  { %4883 = vrot.lane.b32.xlu0 %v7110_v9, %s5288_s8  ;;  %v2922_v47 = vsel %vm114_vm6, %v2914_v3, %v2921_v5  ;;  %v3565_v2 = vrot.slane %v3560_v48, 4  ;;  %v3621_v19 = vrot.slane %v3616_v21, 4  ;;  %v3624_v51 = vsel %vm114_vm6, %v3616_v21, %v3623_v16 }
 0x240   :  { %v3568_v23 = vsel %vm114_vm6, %v3560_v48, %v3567_v62  ;;  %v7197_v22 = vsel %vm114_vm6, %v2919_v60, %v2902_v17  ;;  %v2975_v11 = vrot.slane %v2970_v41, 4  ;;  %v7203_v37 = vperm.slane %v3624_v51, %v5495_v10 }
 0x241   :  { %v7200_v49 = vperm.slane %v3568_v23, %v5495_v10  ;;  %v7209_v25 = vsel %vm114_vm6, %v3621_v19, %v3604_v26  ;;  %v2977_v57 = vrot.slane %v2958_v29, 4  ;;  %v2962_v13 = vperm.slane %v7090_v1, %v8651_v42 }
 0x242   :  { %4888 = vrot.lane.b32.xlu1 %v7132_v27, %s5288_s8  ;;  %v7216_v17 = vsel %vm114_vm6, %v2975_v11, %v2958_v29  ;;  %v3577_v31 = vrot.slane %v3564_v39, 4  ;;  %v3647_v16 = vrot.slane %v7203_v37, 4  ;;  %v3552_v1 = vperm.slane %v7118_v6, %v8651_v42 }
 0x243   :  { %v3591_v46 = vrot.slane %v7200_v49, 4  ;;  %v2906_v38 = vperm.slane %v7122_v18, %v8651_v42  ;;  %v7232_v36 = vperm.slane %v2922_v47, %v5495_v10  ;;  %v2978_v52 = vsel %vm114_vm6, %v2970_v41, %v2977_v57 }
 0x244   :  { %v7237_v20 = vsel %vm114_vm6, 0.0, %v3647_v16  ;;  %v7240_v58 = vperm.slane %v2978_v52, %v5495_v10  ;;  %v2918_v6 = vperm.slane %v2910_v28, %v8651_v42  ;;  %v3578_v3 = vsel %vm114_vm6, %v3577_v31, %v3552_v1 }
 0x245   :  { %4878 = vrot.lane.b32.xlu2 %v4877_v59, %s5298_s16  ;;  %v7206_v59 = vsel %vm114_vm6, %v3565_v2, %v3548_v14  ;;  %v3608_v14 = vperm.slane %v7098_v7, %v8651_v42  ;;  %v7229_v29 = vsel %vm114_vm6, 0.0, %v3591_v46  ;;  %v3620_v7 = vperm.slane %v3612_v32, %v8651_v42 }
 0x246   :  { %v2989_v5 = vrot.slane %v2962_v13, 4  ;;  %v2965_v21 = vrot.slane %v7180_v35, 4  ;;  %v7250_v54 = vperm.slane %v3578_v3, %v5495_v10  ;;  %v2933_v62 = vrot.slane %v2906_v38, 4 }
 0x247   :  { %4898 = vrot.lane.b32.xlu0 %v7144_v45, %s5288_s8  ;;  %v3635_v48 = vrot.slane %v3608_v14, 4  ;;  %v3633_v60 = vrot.slane %v3620_v7, 4  ;;  %v2945_v41 = vrot.slane %v7232_v36, 4  ;;  %v3001_v28 = vrot.slane %v7240_v58, 4 }
 0x248   :  { %v3579_v47 = vrot.slane %v3552_v1, 4  ;;  %v3593_v2 = vrot.slane %v7250_v54, 4  ;;  %v2931_v19 = vrot.slane %v2918_v6, 4  ;;  %v2966_v23 = vsel %vm114_vm6, %v7162_v4, %v2965_v21  ;;  %v2147_v1 = vld [vmem:[%s8483_s3 + $0xd0] sm:$0xff] }
 0x249   :  { %v2934_v51 = vsel %vm114_vm6, %v2918_v6, %v2933_v62  ;;  %v3634_v11 = vsel %vm114_vm6, %v3633_v60, %v3608_v14  ;;  %v7260_v57 = vsel %vm114_vm6, 0.0, %v2945_v41  ;;  %v7263_v46 = vsel %vm114_vm6, 0.0, %v3001_v28 }
 0x24a   :  { %v2974_v31 = vperm.slane %v2966_v23, %v8651_v42  ;;  %v7267_v16 = vperm.slane %v3634_v11, %v5495_v10  ;;  %v7272_v52 = vsel %vm114_vm6, 0.0, %v3593_v2  ;;  %v2932_v6 = vsel %vm114_vm6, %v2931_v19, %v2906_v38 }
 0x24b   :  { %8652 = vst [vmem:[#allocation24_spill] sm:$0xff] %v7272_v52  ;;  %v7276_v14 = vperm.slane %v2932_v6, %v5495_v10  ;;  %v7279_v21 = vperm.slane %v2934_v51, %v5495_v10  ;;  %v3580_v2 = vsel %vm114_vm6, %v3564_v39, %v3579_v47  ;;  %v3636_v6 = vsel %vm114_vm6, %v3620_v7, %v3635_v48  ;;  %v2149_v48 = vld [vmem:[%s8483_s3 + $0xe0] sm:$0xff]  ;;  %v2132_v7 = vld [vmem:[%s8483_s3 + $0x58] sm:$0xff] }
 0x24c   :  { %v2987_v3 = vrot.slane %v2974_v31, 4  ;;  %v2990_v62 = vsel %vm114_vm6, %v2974_v31, %v2989_v5  ;;  %v3649_v41 = vrot.slane %v7267_v16, 4  ;;  %v7293_v51 = vperm.slane %v3580_v2, %v5495_v10 }
 0x24d   :  { %4893 = vrot.lane.b32.xlu2 %v7156_v61, %s5288_s8  ;;  %8653 = vst [vmem:[#allocation17_spill] sm:$0xff] %v7276_v14  ;;  %v7286_v28 = vperm.slane %v2990_v62, %v5495_v10  ;;  %v2947_v38 = vrot.slane %v7276_v14, 4  ;;  %v2949_v23 = vrot.slane %v7279_v21, 4  ;;  %v7309_v47 = vperm.slane %v3636_v6, %v5495_v10 }
 0x24e   :  { %8654 = vst [vmem:[#allocation18_spill] sm:$0xff] %v7279_v21  ;;  %v2988_v19 = vsel %vm114_vm6, %v2987_v3, %v2962_v13  ;;  %v7296_v5 = vsel %vm114_vm6, 0.0, %v3649_v41  ;;  %v3595_v2 = vrot.slane %v7293_v51, 4 }
 0x24f   :  { %8655 = vst [vmem:[#allocation13_spill] sm:$0xff] %v7286_v28  ;;  %v7299_v11 = vperm.slane %v2988_v19, %v5495_v10  ;;  %v3005_v31 = vrot.slane %v7286_v28, 4  ;;  %v7306_v13 = vsel %vm114_vm6, 0.0, %v2949_v23  ;;  %v3651_v19 = vrot.slane %v7309_v47, 4  ;;  %v2133_v23 = vld [vmem:[%s8483_s3 + $0x60] sm:$0xff] }
 0x250   :  { %8656 = vst [vmem:[#allocation16_spill] sm:$0xff] %v7293_v51  ;;  %v7326_v6 = vsel %vm114_vm6, 0.0, %v2947_v38  ;;  %v2135_v38 = vld [vmem:[%s8483_s3 + $0x70] sm:$0xff]  ;;  %v8665_v51 = vld [vmem:[#allocation8_spill] sm:$0xff] }
 0x251   :  { %8657 = vst [vmem:[#allocation14_spill] sm:$0xff] %v7299_v11  ;;  %v3003_v3 = vrot.slane %v7299_v11, 4  ;;  %v7315_v41 = vsel %vm114_vm6, 0.0, %v3005_v31  ;;  %v7332_v31 = vsel %vm114_vm6, 0.0, %v3595_v2  ;;  %v7337_v39 = vsel %vm114_vm6, 0.0, %v3651_v19  ;;  %v2134_v2 = vld [vmem:[%s8483_s3 + $0x68] sm:$0xff]  ;;  %2154 = vmatpush.msrb.mxu2 %v2135_v38 }
 0x252   :  { %8658 = vst [vmem:[#allocation15_spill] sm:$0xff] %v7306_v13  ;;  %v2150_v19 = vld [vmem:[%s8483_s3 + $0xe8] sm:$0xff]  ;;  %v2148_v38 = vld [vmem:[%s8483_s3 + $0xd8] sm:$0xff] }
 0x253   :  { %8659 = vst [vmem:[#allocation20_spill] sm:$0xff] %v7309_v47  ;;  %v7329_v62 = vsel %vm114_vm6, 0.0, %v3003_v3  ;;  %v2151_v3 = vld [vmem:[%s8483_s3 + $0xf0] sm:$0xff]  ;;  %2155 = vmatpush.msrb.mxu2 %v2134_v2  ;;  %v2130_v2 = vld [vmem:[%s8483_s3 + $0x48] sm:$0xff] }
 0x254   :  { %8660 = vst [vmem:[#allocation27_spill] sm:$0xff] %v7315_v41  ;;  %2174 = vmatpush.msrb.mxu3 %v2151_v3  ;;  %v2131_v3 = vld [vmem:[%s8483_s3 + $0x50] sm:$0xff] }
 0x255   :  { %8661 = vst [vmem:[#allocation19_spill] sm:$0xff] %v7326_v6  ;;  %2156 = vmatpush.msrb.mxu2 %v2133_v23  ;;  %v2145_v23 = vld [vmem:[%s8483_s3 + $0xc0] sm:$0xff] }
 0x256   :  { %8662 = vst [vmem:[#allocation10_spill] sm:$0xff] %v7329_v62  ;;  %2175 = vmatpush.msrb.mxu3 %v2150_v19  ;;  %v2146_v19 = vld [vmem:[%s8483_s3 + $0xc8] sm:$0xff] }
 0x257   :  { %8663 = vst [vmem:[#allocation9_spill] sm:$0xff] %v7332_v31  ;;  %2157 = vmatpush.msrb.mxu2 %v2132_v7  ;;  %v2128_v7 = vld [vmem:[%s8483_s3 + $0x38] sm:$0xff] }
 0x258   :  { %8664 = vst [vmem:[#allocation23_spill] sm:$0xff] %v7337_v39  ;;  %2176 = vmatpush.msrb.mxu3 %v2149_v48  ;;  %v2129_v48 = vld [vmem:[%s8483_s3 + $0x40] sm:$0xff] }
 0x259   :  { %2158 = vmatpush.msrb.mxu2 %v2131_v3  ;;  %v2143_v3 = vld [vmem:[%s8483_s3 + $0xb0] sm:$0xff] }
 0x25a   :  { %2177 = vmatpush.msrb.mxu3 %v2148_v38  ;;  %v2144_v38 = vld [vmem:[%s8483_s3 + $0xb8] sm:$0xff] }
 0x25b   :  { %2159 = vmatpush.msrb.mxu2 %v2130_v2  ;;  %v2126_v2 = vld [vmem:[%s8483_s3 + $0x28] sm:$0xff] }
 0x25c   :  { %2178 = vmatpush.msrb.mxu3 %v2147_v1  ;;  %v2127_v1 = vld [vmem:[%s8483_s3 + $0x30] sm:$0xff] }
 0x25d   :  { %2160 = vmatpush.msrb.mxu2 %v2129_v48  ;;  %v2125_v48 = vld [vmem:[%s8483_s3 + $0x20] sm:$0xff] }
 0x25e   :  { %2179 = vmatpush.msrb.mxu3 %v2146_v19  ;;  %v2142_v19 = vld [vmem:[%s8483_s3 + $0xa8] sm:$0xff] }
 0x25f   :  { %2161 = vmatpush.msrb.mxu2 %v2128_v7  ;;  %v2124_v7 = vld [vmem:[%s8483_s3 + $0x18] sm:$0xff] }
 0x260   :  { %2180 = vmatpush.msrb.mxu3 %v2145_v23  ;;  %v2141_v23 = vld [vmem:[%s8483_s3 + $0xa0] sm:$0xff] }
 0x261   :  { %2162 = vmatpush.msrb.mxu2 %v2127_v1  ;;  %v2123_v1 = vld [vmem:[%s8483_s3 + $0x10] sm:$0xff] }
 0x262   :  { %2181 = vmatpush.msrb.mxu3 %v2144_v38  ;;  %v2140_v38 = vld [vmem:[%s8483_s3 + $0x98] sm:$0xff] }
 0x263   :  { %2163 = vmatpush.msrb.mxu2 %v2126_v2  ;;  %v2122_v2 = vld [vmem:[%s8483_s3 + $0x8] sm:$0xff] }
 0x264   :  { %2182 = vmatpush.msrb.mxu3 %v2143_v3  ;;  %v2139_v3 = vld [vmem:[%s8483_s3 + $0x90] sm:$0xff] }
 0x265   :  { %2164 = vmatpush.msrb.mxu2 %v2125_v48  ;;  %v2121_v48 = vld [vmem:[%s8483_s3] sm:$0xff] }
 0x266   :  { %2183 = vmatpush.msrb.mxu3 %v2142_v19  ;;  %v2138_v19 = vld [vmem:[%s8483_s3 + $0x88] sm:$0xff] }
 0x267   :  { %2165 = vmatpush.msrb.mxu2 %v2124_v7 }
 0x268   :  { %2184 = vmatpush.msrb.mxu3 %v2141_v23  ;;  %v2137_v23 = vld [vmem:[%s8483_s3 + $0x80] sm:$0xff] }
 0x269   :  { %2166 = vmatpush.msrb.mxu2 %v2123_v1 }
 0x26a   :  { %2185 = vmatpush.msrb.mxu3 %v2140_v38 }
 0x26b   :  { %2167 = vmatpush.msrb.mxu2 %v2122_v2 }
 0x26c   :  { %2186 = vmatpush.msrb.mxu3 %v2139_v3 }
 0x26d   :  { %2168 = vmatpush.msrb.mxu2 %v2121_v48 }
 0x26e   :  { %2187 = vmatpush.msrb.mxu3 %v2138_v19 }
 0x270   :  { %2188 = vmatpush.msrb.mxu3 %v2137_v23 }
 0x28f   :  { %v4849_v7 = vpop.permute.xlu2 %4848 }
 0x290   :  { %v4851_v3 = vunpack.i.h.bf16 %v4849_v7  ;;  %v4850_v60 = vunpack.i.l.bf16 %v4849_v7 }
 0x292   :  { %v2427_v39 = vsel %vm282_vm7, %v7054_v34, %v4851_v3  ;;  %v2420_v2 = vsel %vm282_vm7, %v7045_v15, %v4850_v60 }
 0x297   :  { %v4864_v38 = vpop.permute.xlu2 %4863 }
 0x298   :  { %v4866_v14 = vunpack.i.h.bf16 %v4864_v38  ;;  %v4865_v34 = vunpack.i.l.bf16 %v4864_v38 }
 0x29f   :  { %v4879_v32 = vpop.permute.xlu2 %4878 }
 0x2a1   :  { %v4854_v1 = vpop.permute.xlu0 %4853 }
 0x2a2   :  { %v4856_v18 = vunpack.i.h.bf16 %v4854_v1  ;;  %v4855_v21 = vunpack.i.l.bf16 %v4854_v1 }
 0x2a4   :  { %v4859_v26 = vpop.permute.xlu1 %4858  ;;  %v2421_v19 = vsel %vm284_vm8, %v2420_v2, %v4855_v21  ;;  %v2428_v48 = vsel %vm284_vm8, %v2427_v39, %v4856_v18 }
 0x2a5   :  { %v4861_v28 = vunpack.i.h.bf16 %v4859_v26  ;;  %v4860_v31 = vunpack.i.l.bf16 %v4859_v26 }
 0x2a7   :  { %v2422_v7 = vsel %vm286_vm9, %v2421_v19, %v4860_v31  ;;  %v2429_v41 = vsel %vm286_vm9, %v2428_v48, %v4861_v28  ;;  %v4881_v19 = vunpack.i.h.bf16 %v4879_v32  ;;  %v4880_v28 = vunpack.i.l.bf16 %v4879_v32  ;;  %v4894_v48 = vpop.permute.xlu2 %4893 }
 0x2a8   :  { %v2423_v18 = vsel %vm288_vm10, %v2422_v7, %v4865_v34  ;;  %v2430_v39 = vsel %vm288_vm10, %v2429_v41, %v4866_v14  ;;  %v4896_v14 = vunpack.i.h.bf16 %v4894_v48  ;;  %v4895_v41 = vunpack.i.l.bf16 %v4894_v48 }
 0x2a9   :  { %v2102_v23 = vpop.f32.mrf.mxu2  ;;  %v2115_v13 = vpop.f32.mrf.mxu3 }
 0x2aa   :  { %v2103_v1 = vadd.f32 %v2102_v23, %v8665_v51  ;;  %v2116_v26 = vadd.f32 %v2115_v13, %v8665_v51  ;;  %v4869_v47 = vpop.permute.xlu0 %4868 }
 0x2ab   :  { %v4871_v3 = vunpack.i.h.bf16 %v4869_v47  ;;  %v4870_v11 = vunpack.i.l.bf16 %v4869_v47 }
 0x2ac   :  { %v2119_v15 = vmax.f32 %v2103_v1, 0.0  ;;  %v2120_v60 = vmax.f32 %v2116_v26, 0.0  ;;  %v4874_v21 = vpop.permute.xlu1 %4873 }
 0x2ad   :  { %v4876_v2 = vunpack.i.h.bf16 %v4874_v21  ;;  %v4875_v31 = vunpack.i.l.bf16 %v4874_v21  ;;  %v2424_v23 = vsel %vm290_vm11, %v2423_v18, %v4870_v11  ;;  %v2431_v51 = vsel %vm290_vm11, %v2430_v39, %v4871_v3 }
 0x2ae   :  { %2169 = vmatmul.f32.vlgmr.msrb.gmra.mxu2 %v2119_v15  ;;  %2189 = vmatmul.f32.vlgmr.msrb.gmra.mxu3 %v2120_v60  ;;  %v2532_v15 = vrot.slane %v4896_v14, 4  ;;  %v2476_v60 = vrot.slane %v4895_v41, 4 }
 0x2af   :  { %v2425_v13 = vsel %vm292_vm12, %v2424_v23, %v4875_v31  ;;  %v2432_v47 = vsel %vm292_vm12, %v2431_v51, %v4876_v2 }
 0x2b0   :  { %v2426_v38 = vsel %vm294_vm13, %v2425_v13, %v4880_v28  ;;  %v2433_v7 = vsel %vm294_vm13, %v2432_v47, %v4881_v19 }
 0x2b1   :  { %v2434_v1 = vpack.c.bf16 %v2433_v7, %v2426_v38  ;;  %v2104_v26 = vpop.f32.mrf.mxu2  ;;  %v2117_v32 = vpop.f32.mrf.mxu3 }
 0x2b2   :  { %v4884_v34 = vpop.permute.xlu0 %4883 }
 0x2b3   :  { %2435 = vst [vmem:[#allocation3] sm:$0x33] %v2434_v1  ;;  %v4886_v11 = vunpack.i.h.bf16 %v4884_v34  ;;  %v4885_v21 = vunpack.i.l.bf16 %v4884_v34 }
 0x2b4   :  { %v4889_v3 = vpop.permute.xlu1 %4888 }
 0x2b5   :  { %v2477_v18 = vsel %vm114_vm6, %v2476_v60, %v4885_v21  ;;  %v2533_v39 = vsel %vm114_vm6, %v2532_v15, %v4886_v11  ;;  %v4891_v2 = vunpack.i.h.bf16 %v4889_v3  ;;  %v4890_v31 = vunpack.i.l.bf16 %v4889_v3 }
 0x2b6   :  { %v2534_v28 = vrot.slane %v4886_v11, 4  ;;  %v2478_v19 = vrot.slane %v4885_v21, 4  ;;  %v2483_v48 = vperm.slane %v2477_v18, %v8651_v42  ;;  %v2539_v23 = vperm.slane %v2533_v39, %v8651_v42 }
 0x2b7   :  { %v2546_v13 = vrot.slane %v4891_v2, 4  ;;  %v2490_v47 = vrot.slane %v4890_v31, 4 }
 0x2b8   :  { %v2479_v15 = vsel %vm114_vm6, %v4895_v41, %v2478_v19  ;;  %v2535_v11 = vsel %vm114_vm6, %v4896_v14, %v2534_v28  ;;  %v2502_v60 = vrot.slane %v2483_v48, 4  ;;  %v2558_v18 = vrot.slane %v2539_v23, 4 }
 0x2b9   :  { %v2487_v41 = vperm.slane %v2479_v15, %v8651_v42  ;;  %v2543_v14 = vperm.slane %v2535_v11, %v8651_v42 }
 0x2ba   :  { %v4899_v51 = vpop.permute.xlu0 %4898 }
 0x2bb   :  { %v4901_v38 = vunpack.i.h.bf16 %v4899_v51  ;;  %v4900_v7 = vunpack.i.l.bf16 %v4899_v51 }
 0x2bd   :  { %v2544_v1 = vrot.slane %v4901_v38, 4  ;;  %v2488_v26 = vrot.slane %v4900_v7, 4  ;;  %v2491_v32 = vsel %vm114_vm6, %v4900_v7, %v2490_v47  ;;  %v2547_v34 = vsel %vm114_vm6, %v4901_v38, %v2546_v13 }
 0x2be   :  { %v2499_v21 = vperm.slane %v2491_v32, %v8651_v42  ;;  %v2555_v3 = vperm.slane %v2547_v34, %v8651_v42 }
 0x2bf   :  { %v2489_v39 = vsel %vm114_vm6, %v2488_v26, %v4890_v31  ;;  %v2545_v51 = vsel %vm114_vm6, %v2544_v1, %v4891_v2 }
 0x2c0   :  { %v2495_v6 = vperm.slane %v2489_v39, %v8651_v42  ;;  %v2512_v62 = vrot.slane %v2499_v21, 4  ;;  %v2551_v47 = vperm.slane %v2545_v51, %v8651_v42  ;;  %v2568_v13 = vrot.slane %v2555_v3, 4 }
 0x2c1   :  { %v2514_v51 = vrot.slane %v2487_v41, 4 }
 0x2c2   :  { %v2500_v28 = vrot.slane %v2495_v6, 4  ;;  %v2556_v19 = vrot.slane %v2551_v47, 4  ;;  %v2503_v38 = vsel %vm114_vm6, %v2495_v6, %v2502_v60  ;;  %v2559_v7 = vsel %vm114_vm6, %v2551_v47, %v2558_v18 }
 0x2c3   :  { %v2511_v31 = vperm.slane %v2503_v38, %v5495_v10  ;;  %v2567_v2 = vperm.slane %v2559_v7, %v5495_v10  ;;  %v2513_v1 = vsel %vm114_vm6, %v2512_v62, %v2487_v41  ;;  %v2569_v26 = vsel %vm114_vm6, %v2568_v13, %v2543_v14 }
 0x2c4   :  { %v2501_v32 = vsel %vm114_vm6, %v2500_v28, %v2483_v48  ;;  %v2557_v34 = vsel %vm114_vm6, %v2556_v19, %v2539_v23  ;;  %v2519_v15 = vperm.slane %v2513_v1, %v5495_v10  ;;  %v2575_v11 = vperm.slane %v2569_v26, %v5495_v10 }
 0x2c5   :  { %v4907_v39 = vpack.i.bf16 %v2567_v2, %v2511_v31  ;;  %v2526_v6 = vrot.slane %v2511_v31, 4  ;;  %v2582_v60 = vrot.slane %v2567_v2, 4  ;;  %v2507_v18 = vperm.slane %v2501_v32, %v5495_v10 }
 0x2c6   :  { %v2563_v47 = vperm.slane %v2557_v34, %v5495_v10  ;;  %v2528_v38 = vrot.slane %v2519_v15, 4  ;;  %v2584_v62 = vrot.slane %v2575_v11, 4  ;;  %v2570_v7 = vrot.slane %v2543_v14, 4 }
 0x2c7   :  { %4908 = vrot.lane.b32.xlu2 %v4907_v39, %s5294_s12  ;;  %v2527_v48 = vsel %vm114_vm6, 0.0, %v2526_v6  ;;  %v2583_v23 = vsel %vm114_vm6, 0.0, %v2582_v60  ;;  %v2524_v13 = vrot.slane %v2507_v18, 4  ;;  %v2515_v2 = vsel %vm114_vm6, %v2499_v21, %v2514_v51 }
 0x2c8   :  { %v4912_v28 = vpack.i.bf16 %v2583_v23, %v2527_v48  ;;  %v2580_v19 = vrot.slane %v2563_v47, 4  ;;  %v2571_v41 = vsel %vm114_vm6, %v2555_v3, %v2570_v7  ;;  %v2529_v14 = vsel %vm114_vm6, 0.0, %v2528_v38 }
 0x2c9   :  { %v2525_v31 = vsel %vm114_vm6, 0.0, %v2524_v13  ;;  %v2585_v26 = vsel %vm114_vm6, 0.0, %v2584_v62  ;;  %v2523_v34 = vperm.slane %v2515_v2, %v5495_v10  ;;  %v2579_v39 = vperm.slane %v2571_v41, %v5495_v10 }
 0x2ca   :  { %4913 = vrot.lane.b32.xlu0 %v4912_v28, %s5296_s14  ;;  %v2581_v1 = vsel %vm114_vm6, 0.0, %v2580_v19  ;;  %v4922_v6 = vpack.i.bf16 %v2585_v26, %v2529_v14  ;;  %v4917_v3 = vpack.i.bf16 %v2575_v11, %v2519_v15 }
 0x2cb   :  { %v4902_v32 = vpack.i.bf16 %v2581_v1, %v2525_v31  ;;  %v4927_v21 = vpack.i.bf16 %v2579_v39, %v2523_v34  ;;  %v2530_v60 = vrot.slane %v2523_v34, 4  ;;  %v2586_v51 = vrot.slane %v2579_v39, 4 }
 0x2cd   :  { %4903 = vrot.lane.b32.xlu1 %v4902_v32, %s5295_s13  ;;  %v2531_v38 = vsel %vm114_vm6, 0.0, %v2530_v60  ;;  %v2587_v62 = vsel %vm114_vm6, 0.0, %v2586_v51 }
 0x2ce   :  { %v4932_v7 = vpack.i.bf16 %v2587_v62, %v2531_v38 }
 0x2cf   :  { %4923 = vrot.lane.b32.xlu2 %v4922_v6, %s5297_s15 }
 0x2d2   :  { %4928 = vrot.lane.b32.xlu0 %v4927_v21, %s5293_s11 }
 0x2d5   :  { %4918 = vrot.lane.b32.xlu1 %v4917_v3, %s5292_s10 }
 0x2d7   :  { %4938 = vrot.lane.b32.xlu2 %v7110_v9, %s5289_s9 }
 0x2da   :  { %4943 = vrot.lane.b32.xlu0 %v7132_v27, %s5289_s9 }
 0x2dd   :  { %4933 = vrot.lane.b32.xlu1 %v4932_v7, %s5298_s16 }
 0x2df   :  { %4953 = vrot.lane.b32.xlu2 %v7144_v45, %s5289_s9 }
 0x2e5   :  { %4948 = vrot.lane.b32.xlu1 %v7156_v61, %s5289_s9 }
 0x321   :  { %v4909_v15 = vpop.permute.xlu2 %4908 }
 0x322   :  { %v4911_v61 = vunpack.i.h.bf16 %v4909_v15  ;;  %v4910_v1 = vunpack.i.l.bf16 %v4909_v15 }
 0x329   :  { %v4924_v23 = vpop.permute.xlu2 %4923 }
 0x32a   :  { %v4926_v62 = vunpack.i.h.bf16 %v4924_v23  ;;  %v4925_v7 = vunpack.i.l.bf16 %v4924_v23 }
 0x331   :  { %v2170_v11 = vpop.f32.mrf.mxu2  ;;  %v2190_v48 = vpop.f32.mrf.mxu3 }
 0x332   :  { %v2191_v9 = vadd.f32 %v2190_v48, %v2170_v11  ;;  %v7505_v31 = vpop.permute.xlu2 %4938 }
 0x334   :  { %2194 = vst.msk [vmem:[#allocation4] sm:$0xff] %vm2193_vm0, %v2191_v9 }
 0x33a   :  { %v7513_v51 = vpop.permute.xlu2 %4953 }
 0x33b   :  { %v4955_v15 = vunpack.i.l.bf16 %v7513_v51 }
 0x33c   :  { %v4914_v13 = vpop.permute.xlu0 %4913 }
 0x33d   :  { %v4916_v6 = vunpack.i.h.bf16 %v4914_v13  ;;  %v4915_v21 = vunpack.i.l.bf16 %v4914_v13 }
 0x33f   :  { %v4904_v28 = vpop.permute.xlu1 %4903 }
 0x340   :  { %v4906_v27 = vunpack.i.h.bf16 %v4904_v28  ;;  %v4905_v19 = vunpack.i.l.bf16 %v4904_v28 }
 0x342   :  { %v2651_v45 = vsel %vm282_vm7, %v2563_v47, %v4906_v27  ;;  %v2644_v41 = vsel %vm282_vm7, %v2507_v18, %v4905_v19 }
 0x343   :  { %v2652_v26 = vsel %vm284_vm8, %v2651_v45, %v4911_v61  ;;  %v2645_v32 = vsel %vm284_vm8, %v2644_v41, %v4910_v1 }
 0x344   :  { %v4929_v2 = vpop.permute.xlu0 %4928  ;;  %v2646_v3 = vsel %vm286_vm9, %v2645_v32, %v4915_v21  ;;  %v2653_v60 = vsel %vm286_vm9, %v2652_v26, %v4916_v6  ;;  %v4940_v26 = vunpack.i.l.bf16 %v7505_v31  ;;  %v2715_v32 = vrot.slane %v4955_v15, 4 }
 0x345   :  { %v4931_v28 = vunpack.i.h.bf16 %v4929_v2  ;;  %v4930_v27 = vunpack.i.l.bf16 %v4929_v2 }
 0x347   :  { %v4919_v14 = vpop.permute.xlu1 %4918 }
 0x348   :  { %v4921_v34 = vunpack.i.h.bf16 %v4919_v14  ;;  %v4920_v39 = vunpack.i.l.bf16 %v4919_v14 }
 0x34a   :  { %v2647_v47 = vsel %vm288_vm10, %v2646_v3, %v4920_v39  ;;  %v2654_v18 = vsel %vm288_vm10, %v2653_v60, %v4921_v34  ;;  %v2705_v3 = vrot.slane %v4940_v26, 4 }
 0x34b   :  { %v2648_v11 = vsel %vm290_vm11, %v2647_v47, %v4925_v7  ;;  %v2655_v48 = vsel %vm290_vm11, %v2654_v18, %v4926_v62 }
 0x34c   :  { %v7517_v38 = vpop.permute.xlu0 %4943  ;;  %v2649_v41 = vsel %vm292_vm12, %v2648_v11, %v4930_v27  ;;  %v2656_v61 = vsel %vm292_vm12, %v2655_v48, %v4931_v28 }
 0x34d   :  { %v4945_v9 = vunpack.i.l.bf16 %v7517_v38 }
 0x34f   :  { %v4934_v13 = vpop.permute.xlu1 %4933  ;;  %v2717_v1 = vrot.slane %v4945_v9, 4  ;;  %v2716_v39 = vsel %vm114_vm6, %v2715_v32, %v4945_v9 }
 0x350   :  { %v4936_v19 = vunpack.i.h.bf16 %v4934_v13  ;;  %v4935_v45 = vunpack.i.l.bf16 %v4934_v13  ;;  %v2722_v47 = vperm.slane %v2716_v39, %v8651_v42 }
 0x351   :  { %v2718_v2 = vsel %vm114_vm6, %v4955_v15, %v2717_v1 }
 0x352   :  { %v2650_v23 = vsel %vm294_vm13, %v2649_v41, %v4935_v45  ;;  %v2657_v14 = vsel %vm294_vm13, %v2656_v61, %v4936_v19  ;;  %v2726_v18 = vperm.slane %v2718_v2, %v8651_v42  ;;  %v2727_v9 = vrot.slane %v2722_v47, 4 }
 0x353   :  { %v2658_v34 = vpack.c.bf16 %v2657_v14, %v2650_v23  ;;  %v4957_v2 = vpack.i.bf16 %v7160_v50, %v7158_v53 }
 0x354   :  { %v2739_v13 = vrot.slane %v2726_v18, 4 }
 0x355   :  { %v2660_v6 = vrot.slane %v2658_v34, 6 }
 0x357   :  { %v7530_v21 = vpop.permute.xlu1 %4948  ;;  %2662 = vst [vmem:[#allocation3] sm:$0xcc] %v2660_v6  ;;  %v8532_v6 = vunpack.i.h.bf16 %v7505_v31 }
 0x358   :  { %v4950_v60 = vunpack.i.l.bf16 %v7530_v21 }
 0x35a   :  { %v2703_v62 = vrot.slane %v4950_v60, 4  ;;  %v2706_v7 = vsel %vm114_vm6, %v4950_v60, %v2705_v3  ;;  %v8534_v3 = vunpack.i.h.bf16 %v7530_v21  ;;  %v2761_v60 = vrot.slane %v8532_v6, 4 }
 0x35b   :  { %v2714_v48 = vperm.slane %v2706_v7, %v8651_v42  ;;  %v4967_v7 = vpack.i.bf16 %v7066_v40, %v7101_v30 }
 0x35c   :  { %v2704_v11 = vsel %vm114_vm6, %v2703_v62, %v4940_v26  ;;  %v2762_v62 = vsel %vm114_vm6, %v8534_v3, %v2761_v60 }
 0x35d   :  { %v2710_v15 = vperm.slane %v2704_v11, %v8651_v42  ;;  %v2740_v45 = vsel %vm114_vm6, %v2739_v13, %v2714_v48  ;;  %v4962_v11 = vpack.i.bf16 %v7148_v12, %v7135_v43  ;;  %v7575_v50 = vperm.slane %v2762_v62, %v8651_v42 }
 0x35e   :  { %v2746_v23 = vperm.slane %v2740_v45, %v5495_v10  ;;  %v2741_v43 = vrot.slane %v2714_v48, 4  ;;  %v4977_v13 = vpack.i.bf16 %v7162_v4, %v7146_v55 }
 0x35f   :  { %v2729_v28 = vrot.slane %v2710_v15, 4  ;;  %v2728_v27 = vsel %vm114_vm6, %v2727_v9, %v2710_v15  ;;  %8666 = vst [vmem:[#allocation25_spill] sm:$0xff] %v7575_v50  ;;  %v4972_v9 = vpack.i.bf16 %v7075_v56, %v7092_v0  ;;  %v8535_v15 = vunpack.i.h.bf16 %v7513_v51 }
 0x360   :  { %v7541_v19 = vperm.slane %v2728_v27, %v5495_v10  ;;  %v2755_v34 = vrot.slane %v2746_v23, 4  ;;  %v2797_v30 = vrot.slane %v7575_v50, 4  ;;  %v2742_v56 = vsel %vm114_vm6, %v2726_v18, %v2741_v43 }
 0x361   :  { %v2730_v41 = vsel %vm114_vm6, %v2722_v47, %v2729_v28  ;;  %v8533_v47 = vunpack.i.h.bf16 %v7517_v38  ;;  %v7597_v28 = vperm.slane %v2742_v56, %v5495_v10  ;;  %v4997_v18 = vpack.i.bf16 %v7068_v8, %v7103_v33 }
 0x362   :  { %v2738_v61 = vperm.slane %v2730_v41, %v5495_v10  ;;  %v2751_v1 = vrot.slane %v7541_v19, 4  ;;  %v2756_v39 = vsel %vm114_vm6, 0.0, %v2755_v34  ;;  %v4992_v41 = vpack.i.bf16 %v7180_v35, %v7114_v63 }
 0x363   :  { %v2773_v53 = vrot.slane %v8533_v47, 4  ;;  %8668 = vst [vmem:[#allocation12_spill] sm:$0xff] %v7597_v28  ;;  %v2757_v27 = vrot.slane %v7597_v28, 4  ;;  %v5022_v8 = vpack.i.bf16 %v7078_v24, %v7094_v44 }
 0x364   :  { %2820 = vrot.lane.b32.xlu1 %v2738_v61, %s5294_s12  ;;  %v2752_v14 = vsel %vm114_vm6, 0.0, %v2751_v1  ;;  %v2753_v26 = vrot.slane %v2738_v61, 4 }
 0x365   :  { %2816 = vrot.lane.b32.xlu0 %v2752_v14, %s5295_s13  ;;  %v2774_v40 = vsel %vm114_vm6, %v8535_v15, %v2773_v53  ;;  %v7610_v45 = vsel %vm114_vm6, 0.0, %v2757_v27 }
 0x366   :  { %v2754_v32 = vsel %vm114_vm6, 0.0, %v2753_v26  ;;  %v7587_v12 = vperm.slane %v2774_v40, %v8651_v42  ;;  %8670 = vst [vmem:[#allocation21_spill] sm:$0xff] %v7610_v45 }
 0x367   :  { %2824 = vrot.lane.b32.xlu2 %v2754_v32, %s5296_s14 }
 0x368   :  { %8667 = vst [vmem:[#allocation26_spill] sm:$0xff] %v7587_v12  ;;  %v2798_v0 = vsel %vm114_vm6, %v7587_v12, %v2797_v30 }
 0x369   :  { %v7600_v48 = vperm.slane %v2798_v0, %v5495_v10 }
 0x36b   :  { %8669 = vst [vmem:[#allocation11_spill] sm:$0xff] %v7600_v48  ;;  %v2813_v55 = vrot.slane %v7600_v48, 4 }
 0x36c   :  { %2832 = vrot.lane.b32.xlu1 %v2756_v39, %s5297_s15 }
 0x36d   :  { %2828 = vrot.lane.b32.xlu0 %v2746_v23, %s5292_s10  ;;  %v7615_v61 = vsel %vm114_vm6, 0.0, %v2813_v55 }
 0x36e   :  { %8671 = vst [vmem:[#allocation28_spill] sm:$0xff] %v7615_v61 }
 0x36f   :  { %4958 = vrot.lane.b32.xlu2 %v4957_v2, %s5289_s9 }
 0x374   :  { %4968 = vrot.lane.b32.xlu1 %v4967_v7, %s5289_s9 }
 0x375   :  { %4963 = vrot.lane.b32.xlu0 %v4962_v11, %s5289_s9 }
 0x377   :  { %4973 = vrot.lane.b32.xlu2 %v4972_v9, %s5289_s9 }
 0x37c   :  { %4983 = vrot.lane.b32.xlu1 %v4957_v2, %s5288_s8 }
 0x37d   :  { %4978 = vrot.lane.b32.xlu0 %v4977_v13, %s5289_s9 }
 0x37f   :  { %4988 = vrot.lane.b32.xlu2 %v4977_v13, %s5288_s8 }
 0x384   :  { %4998 = vrot.lane.b32.xlu1 %v4997_v18, %s5289_s9 }
 0x385   :  { %4993 = vrot.lane.b32.xlu0 %v4992_v41, %s5289_s9 }
 0x387   :  { %5003 = vrot.lane.b32.xlu2 %v4962_v11, %s5288_s8 }
 0x38c   :  { %5013 = vrot.lane.b32.xlu1 %v4992_v41, %s5288_s8 }
 0x38d   :  { %5008 = vrot.lane.b32.xlu0 %v4967_v7, %s5288_s8 }
 0x38f   :  { %5018 = vrot.lane.b32.xlu2 %v4997_v18, %s5288_s8 }
 0x394   :  { %5028 = vrot.lane.b32.xlu1 %v4972_v9, %s5288_s8 }
 0x395   :  { %5023 = vrot.lane.b32.xlu0 %v5022_v8, %s5289_s9 }
 0x397   :  { %5033 = vrot.lane.b32.xlu2 %v5022_v8, %s5288_s8 }
 0x3c1   :  { %v2825_v33 = vpop.permute.xlu2 %2824 }
 0x3c9   :  { %v4959_v63 = vpop.permute.xlu2 %4958 }
 0x3ca   :  { %v4960_v30 = vunpack.i.l.bf16 %v4959_v63  ;;  %v4961_v56 = vunpack.i.h.bf16 %v4959_v63 }
 0x3cc   :  { %v4004_v8 = vrot.slane %v4960_v30, 4 }
 0x3d1   :  { %v4974_v26 = vpop.permute.xlu2 %4973 }
 0x3d2   :  { %v4975_v9 = vunpack.i.l.bf16 %v4974_v26  ;;  %v4976_v43 = vunpack.i.h.bf16 %v4974_v26 }
 0x3d6   :  { %v2821_v35 = vpop.permute.xlu1 %2820 }
 0x3d7   :  { %v2817_v23 = vpop.permute.xlu0 %2816 }
 0x3d8   :  { %v2871_v14 = vsel %vm282_vm7, %v7541_v19, %v2817_v23 }
 0x3d9   :  { %v2872_v32 = vsel %vm284_vm8, %v2871_v14, %v2821_v35  ;;  %v7638_v60 = vpop.permute.xlu2 %4988  ;;  %v4060_v14 = vrot.slane %v4961_v56, 4 }
 0x3da   :  { %v2873_v34 = vsel %vm286_vm9, %v2872_v32, %v2825_v33 }
 0x3de   :  { %v2833_v39 = vpop.permute.xlu1 %2832 }
 0x3df   :  { %v2829_v24 = vpop.permute.xlu0 %2828 }
 0x3e0   :  { %v2874_v44 = vsel %vm288_vm10, %v2873_v34, %v2829_v24  ;;  %v4050_v24 = vrot.slane %v4976_v43, 4 }
 0x3e1   :  { %v7636_v2 = vsel %vm290_vm11, %v2874_v44, %v2833_v39  ;;  %v7641_v0 = vpop.permute.xlu2 %5003  ;;  %v3994_v44 = vrot.slane %v4975_v9, 4 }
 0x3e2   :  { %8672 = vst [vmem:[#allocation22_spill] sm:$0xff] %v7636_v2  ;;  %v8540_v1 = vunpack.i.h.bf16 %v7641_v0  ;;  %v8542_v6 = vunpack.i.l.bf16 %v7641_v0 }
 0x3e6   :  { %v4969_v62 = vpop.permute.xlu1 %4968 }
 0x3e7   :  { %v4971_v7 = vunpack.i.h.bf16 %v4969_v62  ;;  %v4970_v11 = vunpack.i.l.bf16 %v4969_v62  ;;  %v4964_v53 = vpop.permute.xlu0 %4963 }
 0x3e8   :  { %v4965_v55 = vunpack.i.l.bf16 %v4964_v53  ;;  %v4966_v33 = vunpack.i.h.bf16 %v4964_v53  ;;  %v7656_v53 = vperm.slane %v7206_v59, %v5495_v10 }
 0x3e9   :  { %v4048_v19 = vrot.slane %v4971_v7, 4  ;;  %v3992_v40 = vrot.slane %v4970_v11, 4 }
 0x3ea   :  { %v4005_v26 = vsel %vm114_vm6, %v4004_v8, %v4965_v55  ;;  %v4061_v63 = vsel %vm114_vm6, %v4060_v14, %v4966_v33  ;;  %v4062_v34 = vrot.slane %v4966_v33, 4  ;;  %v4006_v39 = vrot.slane %v4965_v55, 4 }
 0x3eb   :  { %v3993_v13 = vsel %vm114_vm6, %v3992_v40, %v4975_v9  ;;  %v4049_v27 = vsel %vm114_vm6, %v4048_v19, %v4976_v43  ;;  %v4011_v19 = vperm.slane %v4005_v26, %v8651_v42  ;;  %v8536_v40 = vunpack.i.h.bf16 %v7638_v60  ;;  %v7671_v26 = vpop.permute.xlu2 %5018 }
 0x3ec   :  { %v3999_v18 = vperm.slane %v3993_v13, %v8651_v42  ;;  %v4055_v23 = vperm.slane %v4049_v27, %v8651_v42  ;;  %v7660_v13 = vperm.slane %v7209_v25, %v5495_v10  ;;  %v3995_v27 = vsel %vm114_vm6, %v4970_v11, %v3994_v44 }
 0x3ed   :  { %v4051_v8 = vsel %vm114_vm6, %v4971_v7, %v4050_v24  ;;  %v4067_v43 = vperm.slane %v4061_v63, %v8651_v42  ;;  %v8537_v33 = vunpack.i.l.bf16 %v7638_v60  ;;  %v4063_v14 = vsel %vm114_vm6, %v4961_v56, %v4062_v34 }
 0x3ee   :  { %v7645_v41 = vpop.permute.xlu1 %4983  ;;  %v4018_v32 = vrot.slane %v3999_v18, 4  ;;  %v4074_v62 = vrot.slane %v4055_v23, 4  ;;  %v4007_v59 = vsel %vm114_vm6, %v4960_v30, %v4006_v39  ;;  %v4016_v11 = vrot.slane %v4011_v19, 4 }
 0x3ef   :  { %v7647_v35 = vpop.permute.xlu0 %4978  ;;  %v8539_v25 = vunpack.i.h.bf16 %v7645_v41  ;;  %v8538_v7 = vunpack.i.l.bf16 %v7645_v41  ;;  %v7680_v24 = vperm.slane %v3995_v27, %v8651_v42  ;;  %v7683_v56 = vperm.slane %v4051_v8, %v8651_v42 }
 0x3f0   :  { %v4019_v9 = vsel %vm114_vm6, %v4011_v19, %v4018_v32  ;;  %v4075_v32 = vsel %vm114_vm6, %v4067_v43, %v4074_v62  ;;  %v7687_v34 = vperm.slane %v4063_v14, %v8651_v42  ;;  %v4072_v39 = vrot.slane %v4067_v43, 4 }
 0x3f1   :  { %v4027_v63 = vperm.slane %v4019_v9, %v5495_v10  ;;  %v4083_v30 = vperm.slane %v4075_v32, %v5495_v10  ;;  %v7690_v44 = vperm.slane %v4007_v59, %v8651_v42  ;;  %v7695_v62 = vrot.slane %v8536_v40, 4 }
 0x3f2   :  { %v3833_v27 = vrot.slane %v8539_v25, 4  ;;  %v7702_v14 = vrot.slane %v8537_v33, 4  ;;  %v8541_v43 = vunpack.i.h.bf16 %v7671_v26  ;;  %v3777_v59 = vrot.slane %v8538_v7, 4 }
 0x3f3   :  { %v5042_v8 = vpack.i.bf16 %v4083_v30, %v4027_v63  ;;  %v4017_v32 = vsel %vm114_vm6, %v4016_v11, %v3999_v18  ;;  %v4030_v47 = vrot.slane %v7680_v24, 4  ;;  %v4084_v15 = vrot.slane %v7687_v34, 4  ;;  %v7737_v11 = vpop.permute.xlu2 %5033 }
 0x3f4   :  { %v4028_v40 = vrot.slane %v7690_v44, 4  ;;  %v7716_v33 = vperm.slane %v4017_v32, %v5495_v10  ;;  %v4073_v7 = vsel %vm114_vm6, %v4072_v39, %v4055_v23  ;;  %v3834_v25 = vsel %vm114_vm6, %v3833_v27, %v8540_v1 }
 0x3f5   :  { %5043 = vrot.lane.b32.xlu1 %v5042_v8, %s5294_s12  ;;  %v7726_v9 = vperm.slane %v4073_v7, %v5495_v10  ;;  %v4042_v8 = vrot.slane %v4027_v63, 4  ;;  %v3178_v32 = vrot.slane %v8541_v43, 4  ;;  %v3778_v23 = vsel %vm114_vm6, %v3777_v59, %v8542_v6 }
 0x3f6   :  { %v7666_v55 = vpop.permute.xlu1 %4998  ;;  %8673 = vst [vmem:[#allocation29_spill] sm:$0xff] %v7716_v33  ;;  %v4040_v27 = vrot.slane %v7716_v33, 4  ;;  %v4098_v1 = vrot.slane %v4083_v30, 4  ;;  %v7743_v2 = vperm.slane %v3834_v25, %v8651_v42  ;;  %v4029_v59 = vsel %vm114_vm6, %v4028_v40, %v7680_v24 }
 0x3f7   :  { %v7674_v4 = vpop.permute.xlu0 %4993  ;;  %8674 = vst [vmem:[#allocation32_spill] sm:$0xff] %v7726_v9  ;;  %v4096_v7 = vrot.slane %v7726_v9, 4  ;;  %v4043_v63 = vsel %vm114_vm6, 0.0, %v4042_v8  ;;  %v4085_v6 = vsel %vm114_vm6, %v4084_v15, %v7683_v56  ;;  %v4035_v8 = vperm.slane %v4029_v59, %v5495_v10 }
 0x3f8   :  { %v4996_v43 = vunpack.i.h.bf16 %v7674_v4  ;;  %v4041_v3 = vsel %vm114_vm6, 0.0, %v4040_v27  ;;  %v4099_v28 = vsel %vm114_vm6, 0.0, %v4098_v1  ;;  %v8550_v30 = vunpack.i.h.bf16 %v7737_v11 }
 0x3f9   :  { %v4097_v39 = vsel %vm114_vm6, 0.0, %v4096_v7  ;;  %v5047_v48 = vpack.i.bf16 %v4099_v28, %v4043_v63  ;;  %v4091_v45 = vperm.slane %v4085_v6, %v5495_v10  ;;  %v8675_v61 = vunpack.i.h.bf16 %v7647_v35 }
 0x3fa   :  { %v5037_v25 = vpack.i.bf16 %v4097_v39, %v4041_v3  ;;  %v8551_v24 = vunpack.i.l.bf16 %v7737_v11  ;;  %v8552_v15 = vunpack.i.h.bf16 %v7666_v55  ;;  %v4044_v27 = vrot.slane %v4035_v8, 4 }
 0x3fb   :  { %v3414_v40 = vrot.slane %v8675_v61, 4  ;;  %v8676_v7 = vunpack.i.l.bf16 %v7671_v26  ;;  %v7763_v1 = vperm.slane %v3778_v23, %v8651_v42  ;;  %v4995_v59 = vunpack.i.l.bf16 %v7674_v4  ;;  %5048 = vrot.lane.b32.xlu2 %v5047_v48, %s5296_s14 }
 0x3fc   :  { %5038 = vrot.lane.b32.xlu0 %v5037_v25, %s5295_s13  ;;  %v4100_v6 = vrot.slane %v4091_v45, 4  ;;  %v8677_v3 = vunpack.i.l.bf16 %v7647_v35  ;;  %v4045_v39 = vsel %vm114_vm6, 0.0, %v4044_v27  ;;  %v3179_v4 = vsel %vm114_vm6, %v3178_v32, %v8550_v30 }
 0x3fd   :  { %v3122_v33 = vrot.slane %v8676_v7, 4  ;;  %v3415_v61 = vsel %vm114_vm6, %v3414_v40, %v4996_v43  ;;  %v3845_v7 = vrot.slane %v7743_v2, 4  ;;  %v3402_v27 = vrot.slane %v8552_v15, 4 }
 0x3fe   :  { %v7719_v18 = vpop.permute.xlu1 %5013  ;;  %v3358_v28 = vrot.slane %v8677_v3, 4  ;;  %v4101_v23 = vsel %vm114_vm6, 0.0, %v4100_v6  ;;  %v3360_v32 = vrot.slane %v4995_v59, 4  ;;  %v7789_v6 = vperm.slane %v3415_v61, %v8651_v42 }
 0x3ff   :  { %v7728_v19 = vpop.permute.xlu0 %5008  ;;  %v3123_v40 = vsel %vm114_vm6, %v3122_v33, %v8551_v24  ;;  %v5057_v63 = vpack.i.bf16 %v4101_v23, %v4045_v39  ;;  %v4031_v30 = vsel %vm114_vm6, %v7690_v44, %v4030_v47  ;;  %v8679_v3 = vrot.slane %v7683_v56, 4 }
 0x400   :  { %v8553_v48 = vunpack.i.l.bf16 %v7728_v19  ;;  %v3359_v50 = vsel %vm114_vm6, %v3358_v28, %v4995_v59  ;;  %v8678_v24 = vunpack.i.h.bf16 %v7728_v19  ;;  %v5052_v61 = vpack.i.bf16 %v4091_v45, %v4035_v8 }
 0x401   :  { %5058 = vrot.lane.b32.xlu1 %v5057_v63, %s5297_s15  ;;  %v4087_v39 = vsel %vm114_vm6, %v7687_v34, %v8679_v3  ;;  %v8558_v63 = vunpack.i.l.bf16 %v7719_v18  ;;  %v4039_v23 = vperm.slane %v4031_v30, %v5495_v10  ;;  %v3789_v34 = vrot.slane %v7763_v1, 4 }
 0x402   :  { %v3821_v15 = vrot.slane %v8678_v24, 4  ;;  %v3765_v28 = vrot.slane %v8553_v48, 4  ;;  %v4095_v24 = vperm.slane %v4087_v39, %v5495_v10  ;;  %v3416_v3 = vrot.slane %v4996_v43, 4 }
 0x403   :  { %v3365_v48 = vperm.slane %v3359_v50, %v8651_v42  ;;  %v7824_v43 = vperm.slane %v3179_v4, %v8651_v42  ;;  %v3426_v50 = vrot.slane %v7789_v6, 4  ;;  %v8683_v12 = vunpack.i.h.bf16 %v7647_v35 }
 0x404   :  { %5053 = vrot.lane.b32.xlu0 %v5052_v61, %s5292_s10  ;;  %v8680_v61 = vunpack.i.l.bf16 %v7666_v55 }
 0x405   :  { %v3417_v52 = vsel %vm114_vm6, %v8683_v12, %v3416_v3 }
 0x406   :  { %v7779_v25 = vpop.permute.xlu1 %5028 }
 0x407   :  { %v5024_v9 = vpop.permute.xlu0 %5023  ;;  %v8554_v59 = vunpack.i.h.bf16 %v7779_v25  ;;  %v8555_v47 = vunpack.i.l.bf16 %v7779_v25 }
 0x408   :  { %v5026_v44 = vunpack.i.h.bf16 %v5024_v9  ;;  %v5025_v8 = vunpack.i.l.bf16 %v5024_v9 }
 0x409   :  { %v3822_v56 = vsel %vm114_vm6, %v3821_v15, %v8554_v59  ;;  %v3766_v45 = vsel %vm114_vm6, %v3765_v28, %v8555_v47  ;;  %v7821_v15 = vperm.slane %v3123_v40, %v8651_v42  ;;  %v3346_v59 = vrot.slane %v8680_v61, 4 }
 0x40a   :  { %v3772_v30 = vperm.slane %v3766_v45, %v8651_v42  ;;  %v3828_v39 = vperm.slane %v3822_v56, %v8651_v42  ;;  %v3403_v33 = vsel %vm114_vm6, %v3402_v27, %v5026_v44  ;;  %v8681_v28 = vunpack.i.l.bf16 %v7647_v35 }
 0x40b   :  { %v3135_v27 = vsel %vm114_vm6, %v7702_v14, %v8558_v63  ;;  %v8682_v40 = vunpack.i.h.bf16 %v7719_v18  ;;  %v5072_v56 = vpack.i.bf16 %v4095_v24, %v4039_v23  ;;  %v3409_v61 = vperm.slane %v3403_v33, %v8651_v42 }
 0x40c   :  { %v3361_v9 = vsel %vm114_vm6, %v8681_v28, %v3360_v32  ;;  %v3790_v45 = vsel %vm114_vm6, %v3789_v34, %v3772_v30  ;;  %v3347_v47 = vsel %vm114_vm6, %v3346_v59, %v5025_v8  ;;  %v4046_v32 = vrot.slane %v4039_v23, 4 }
 0x40d   :  { %v3191_v4 = vsel %vm114_vm6, %v7695_v62, %v8682_v40  ;;  %v3370_v28 = vrot.slane %v3365_v48, 4  ;;  %5073 = vrot.lane.b32.xlu1 %v5072_v56, %s5293_s11  ;;  %v3846_v14 = vsel %vm114_vm6, %v3845_v7, %v3828_v39  ;;  %v3353_v63 = vperm.slane %v3347_v47, %v8651_v42 }
 0x40e   :  { %v7850_v62 = vperm.slane %v3361_v9, %v8651_v42  ;;  %v7853_v34 = vperm.slane %v3191_v4, %v8651_v42  ;;  %v3427_v33 = vsel %vm114_vm6, %v3426_v50, %v3409_v61  ;;  %v4102_v59 = vrot.slane %v4095_v24, 4 }
 0x40f   :  { %v7857_v23 = vperm.slane %v3135_v27, %v8651_v42  ;;  %v3404_v35 = vrot.slane %v5026_v44, 4  ;;  %v3371_v12 = vsel %vm114_vm6, %v3370_v28, %v3353_v63  ;;  %v7861_v3 = vperm.slane %v3790_v45, %v5495_v10 }
 0x410   :  { %v4047_v7 = vsel %vm114_vm6, 0.0, %v4046_v32  ;;  %v4103_v47 = vsel %vm114_vm6, 0.0, %v4102_v59  ;;  %v7866_v9 = vperm.slane %v3846_v14, %v5495_v10  ;;  %v7869_v40 = vperm.slane %v3371_v12, %v5495_v10 }
 0x411   :  { %8684 = vst [vmem:[#allocation33_spill] sm:$0xff] %v7861_v3  ;;  %v3847_v24 = vrot.slane %v3828_v39, 4  ;;  %v3348_v50 = vrot.slane %v5025_v8, 4  ;;  %v3813_v27 = vrot.slane %v7861_v3, 4  ;;  %v7873_v44 = vperm.slane %v3427_v33, %v5495_v10 }
 0x412   :  { %8685 = vst [vmem:[#allocation30_spill] sm:$0xff] %v7866_v9  ;;  %v3791_v4 = vrot.slane %v3772_v30, 4  ;;  %v3428_v56 = vrot.slane %v3409_v61, 4  ;;  %v3869_v45 = vrot.slane %v7866_v9, 4  ;;  %v3394_v32 = vrot.slane %v7869_v40, 4 }
 0x413   :  { %8686 = vst [vmem:[#allocation31_spill] sm:$0xff] %v7869_v40  ;;  %v3372_v28 = vrot.slane %v3353_v63, 4  ;;  %v5087_v59 = vpack.i.bf16 %v4103_v47, %v4047_v7  ;;  %v3814_v14 = vsel %vm114_vm6, 0.0, %v3813_v27  ;;  %v3450_v12 = vrot.slane %v7873_v44, 4 }
 0x414   :  { %v3146_v39 = vrot.slane %v7857_v23, 4  ;;  %v3202_v8 = vrot.slane %v7853_v34, 4  ;;  %v3870_v3 = vsel %vm114_vm6, 0.0, %v3869_v45  ;;  %v3395_v33 = vsel %vm114_vm6, 0.0, %v3394_v32 }
 0x415   :  { %v8687_v30 = vunpack.i.h.bf16 %v7666_v55  ;;  %v8688_v9 = vunpack.i.l.bf16 %v7666_v55  ;;  %5088 = vrot.lane.b32.xlu1 %v5087_v59, %s5298_s16  ;;  %v5067_v7 = vpack.i.bf16 %v3870_v3, %v3814_v14  ;;  %v3451_v47 = vsel %vm114_vm6, 0.0, %v3450_v12 }
 0x416   :  { %v7892_v27 = vperm.slane %v3417_v52, %v8651_v42  ;;  %v5062_v40 = vpack.i.bf16 %v3451_v47, %v3395_v33  ;;  %v3792_v45 = vsel %vm114_vm6, %v7763_v1, %v3791_v4  ;;  %v3848_v32 = vsel %vm114_vm6, %v7743_v2, %v3847_v24 }
 0x417   :  { %v3405_v61 = vsel %vm114_vm6, %v8687_v30, %v3404_v35  ;;  %v3349_v63 = vsel %vm114_vm6, %v8688_v9, %v3348_v50  ;;  %5068 = vrot.lane.b32.xlu0 %v5067_v7, %s5295_s13  ;;  %v8689_v55 = vrot.slane %v7656_v53, 4  ;;  %v8690_v3 = vrot.slane %v7660_v13, 4 }
 0x418   :  { %v3373_v52 = vsel %vm114_vm6, %v3365_v48, %v3372_v28  ;;  %v3429_v50 = vsel %vm114_vm6, %v7789_v6, %v3428_v56  ;;  %v7909_v1 = vperm.slane %v3405_v61, %v8651_v42  ;;  %v7912_v2 = vperm.slane %v3349_v63, %v8651_v42  ;;  %5063 = vrot.lane.b32.xlu2 %v5062_v40, %s5295_s13 }
 0x419   :  { %v3590_v35 = vsel %vm114_vm6, 0.0, %v8689_v55  ;;  %v3646_v9 = vsel %vm114_vm6, 0.0, %v8690_v3  ;;  %v3147_v24 = vsel %vm114_vm6, %v3146_v39, %v7821_v15  ;;  %v3203_v4 = vsel %vm114_vm6, %v3202_v8, %v7824_v43 }
 0x41a   :  { %v7920_v59 = vperm.slane %v3792_v45, %v5495_v10  ;;  %v7923_v48 = vperm.slane %v3848_v32, %v5495_v10  ;;  %v3382_v6 = vrot.slane %v7850_v62, 4  ;;  %v3438_v56 = vrot.slane %v7892_v27, 4 }
 0x41b   :  { %v3381_v28 = vperm.slane %v3373_v52, %v5495_v10  ;;  %v3437_v40 = vperm.slane %v3429_v50, %v5495_v10  ;;  %v5102_v14 = vpack.i.bf16 %v3646_v9, %v3590_v35  ;;  %v7930_v12 = vperm.slane %v3147_v24, %v5495_v10 }
 0x41c   :  { %v7933_v39 = vperm.slane %v3203_v4, %v5495_v10  ;;  %v3383_v8 = vsel %vm114_vm6, %v3382_v6, %v7912_v2  ;;  %v3439_v33 = vsel %vm114_vm6, %v3438_v56, %v7909_v1  ;;  %v5082_v30 = vpack.i.bf16 %v7923_v48, %v7920_v59 }
 0x41d   :  { %5103 = vrot.lane.b32.xlu1 %v5102_v14, %s5295_s13  ;;  %v7944_v61 = vperm.slane %v7216_v17, %v5495_v10  ;;  %v5077_v63 = vpack.i.bf16 %v3437_v40, %v3381_v28  ;;  %v3396_v7 = vrot.slane %v3381_v28, 4  ;;  %v3452_v47 = vrot.slane %v3437_v40, 4 }
 0x41e   :  { %v7948_v45 = vperm.slane %v3383_v8, %v5495_v10  ;;  %v7951_v32 = vperm.slane %v3439_v33, %v5495_v10  ;;  %v3170_v55 = vrot.slane %v7930_v12, 4  ;;  %v3226_v35 = vrot.slane %v7933_v39, 4 }
 0x41f   :  { %5083 = vrot.lane.b32.xlu0 %v5082_v30, %s5294_s12  ;;  %v7958_v17 = vperm.slane %v7197_v22, %v5495_v10  ;;  %v8691_v3 = vunpack.i.h.bf16 %v7641_v0  ;;  %v2999_v52 = vrot.slane %v7944_v61, 4  ;;  %v8692_v50 = vunpack.i.l.bf16 %v7641_v0 }
 0x420   :  { %5078 = vrot.lane.b32.xlu2 %v5077_v63, %s5294_s12  ;;  %v8693_v4 = vunpack.i.h.bf16 %v7779_v25  ;;  %v3397_v56 = vsel %vm114_vm6, 0.0, %v3396_v7  ;;  %v3453_v28 = vsel %vm114_vm6, 0.0, %v3452_v47  ;;  %v8694_v40 = vunpack.i.l.bf16 %v7779_v25 }
 0x421   :  { %v3835_v9 = vrot.slane %v8691_v3, 4  ;;  %v3779_v24 = vrot.slane %v8692_v50, 4  ;;  %v5117_v22 = vpack.i.bf16 %v7951_v32, %v7948_v45  ;;  %v3171_v8 = vsel %vm114_vm6, 0.0, %v3170_v55 }
 0x422   :  { %v3823_v6 = vrot.slane %v8693_v4, 4  ;;  %v3767_v14 = vrot.slane %v8694_v40, 4  ;;  %v3227_v33 = vsel %vm114_vm6, 0.0, %v3226_v35  ;;  %v8695_v0 = vunpack.i.h.bf16 %v7645_v41 }
 0x423   :  { %v3148_v63 = vrot.slane %v7821_v15, 4  ;;  %v3204_v7 = vrot.slane %v7824_v43, 4  ;;  %v2943_v47 = vrot.slane %v7958_v17, 4  ;;  %v8696_v25 = vunpack.i.l.bf16 %v7645_v41 }
 0x424   :  { %v3836_v30 = vsel %vm114_vm6, %v8695_v0, %v3835_v9  ;;  %v8697_v50 = vunpack.i.h.bf16 %v7719_v18  ;;  %v8698_v55 = vunpack.i.l.bf16 %v7719_v18  ;;  %v5097_v40 = vpack.i.bf16 %v3453_v28, %v3397_v56 }
 0x425   :  { %v3780_v3 = vsel %vm114_vm6, %v8696_v25, %v3779_v24  ;;  %5118 = vrot.lane.b32.xlu1 %v5117_v22, %s5292_s10  ;;  %v3000_v9 = vsel %vm114_vm6, 0.0, %v2999_v52  ;;  %v5092_v15 = vpack.i.bf16 %v3227_v33, %v3171_v8  ;;  %v3149_v43 = vsel %vm114_vm6, %v7857_v23, %v3148_v63 }
 0x426   :  { %v3192_v4 = vrot.slane %v8697_v50, 4  ;;  %v3136_v35 = vrot.slane %v8698_v55, 4  ;;  %v3205_v41 = vsel %vm114_vm6, %v7853_v34, %v3204_v7  ;;  %v8699_v24 = vunpack.i.l.bf16 %v7728_v19 }
 0x427   :  { %v8700_v25 = vunpack.i.h.bf16 %v7728_v19  ;;  %5098 = vrot.lane.b32.xlu0 %v5097_v40, %s5296_s14  ;;  %v3815_v56 = vrot.slane %v7920_v59, 4  ;;  %v3871_v52 = vrot.slane %v7923_v48, 4  ;;  %v3788_v28 = vperm.slane %v3780_v3, %v8651_v42 }
 0x428   :  { %v3768_v0 = vsel %vm114_vm6, %v8699_v24, %v3767_v14  ;;  %v3844_v23 = vperm.slane %v3836_v30, %v8651_v42  ;;  %v2944_v34 = vsel %vm114_vm6, 0.0, %v2943_v47  ;;  %5093 = vrot.lane.b32.xlu2 %v5092_v15, %s5295_s13  ;;  %v8701_v14 = vunpack.i.l.bf16 %v7638_v60 }
 0x429   :  { %v3824_v18 = vsel %vm114_vm6, %v8700_v25, %v3823_v6  ;;  %v8702_v6 = vunpack.i.h.bf16 %v7638_v60  ;;  %v3157_v59 = vperm.slane %v3149_v43, %v5495_v10  ;;  %v3213_v48 = vperm.slane %v3205_v41, %v5495_v10 }
 0x42a   :  { %v3137_v19 = vsel %vm114_vm6, %v8701_v14, %v3136_v35  ;;  %v3776_v8 = vperm.slane %v3768_v0, %v8651_v42  ;;  %v3832_v33 = vperm.slane %v3824_v18, %v8651_v42  ;;  %v5132_v30 = vpack.i.bf16 %v3000_v9, %v2944_v34 }
 0x42b   :  { %v3193_v22 = vsel %vm114_vm6, %v8702_v6, %v3192_v4  ;;  %v8703_v63 = vunpack.i.h.bf16 %v7737_v11  ;;  %v8704_v47 = vunpack.i.l.bf16 %v7737_v11  ;;  %v3816_v50 = vsel %vm114_vm6, 0.0, %v3815_v56 }
 0x42c   :  { %v3872_v60 = vsel %vm114_vm6, 0.0, %v3871_v52  ;;  %v3801_v4 = vrot.slane %v3788_v28, 4  ;;  %v3857_v55 = vrot.slane %v3844_v23, 4  ;;  %v8024_v35 = vperm.slane %v3137_v19, %v8651_v42 }
 0x42d   :  { %v3180_v7 = vrot.slane %v8703_v63, 4  ;;  %v3124_v3 = vrot.slane %v8704_v47, 4  ;;  %v8027_v40 = vperm.slane %v3193_v22, %v8651_v42  ;;  %5133 = vrot.lane.b32.xlu1 %v5132_v30, %s5295_s13  ;;  %v5112_v9 = vpack.i.bf16 %v3213_v48, %v3157_v59 }
 0x42e   :  { %v5107_v15 = vpack.i.bf16 %v3872_v60, %v3816_v50  ;;  %v3802_v43 = vsel %vm114_vm6, %v3801_v4, %v3776_v8  ;;  %v3858_v11 = vsel %vm114_vm6, %v3857_v55, %v3832_v33  ;;  %v8705_v41 = vunpack.i.l.bf16 %v7671_v26 }
 0x42f   :  { %v8706_v0 = vunpack.i.h.bf16 %v7671_v26  ;;  %5113 = vrot.lane.b32.xlu0 %v5112_v9, %s5294_s12  ;;  %v3158_v18 = vrot.slane %v8024_v35, 4  ;;  %v3214_v56 = vrot.slane %v8027_v40, 4  ;;  %v3808_v52 = vperm.slane %v3802_v43, %v5495_v10 }
 0x430   :  { %v3125_v24 = vsel %vm114_vm6, %v8705_v41, %v3124_v3  ;;  %5108 = vrot.lane.b32.xlu2 %v5107_v15, %s5296_s14  ;;  %v3864_v34 = vperm.slane %v3858_v11, %v5495_v10  ;;  %v8707_v22 = vpack.i.bf16 %v7237_v20, %v7229_v29  ;;  %v3398_v63 = vrot.slane %v7948_v45, 4 }
 0x431   :  { %v3181_v25 = vsel %vm114_vm6, %v8706_v0, %v3180_v7  ;;  %v8045_v14 = vperm.slane %v3125_v24, %v8651_v42  ;;  %v3454_v7 = vrot.slane %v7951_v32, 4  ;;  %v3172_v50 = vrot.slane %v3157_v59, 4 }
 0x432   :  { %v8048_v19 = vperm.slane %v3181_v25, %v8651_v42  ;;  %v5127_v30 = vpack.i.bf16 %v3864_v34, %v3808_v52  ;;  %v3228_v60 = vrot.slane %v3213_v48, 4  ;;  %v3803_v4 = vrot.slane %v3776_v8, 4 }
 0x433   :  { %v3159_v26 = vsel %vm114_vm6, %v3158_v18, %v8045_v14  ;;  %v3859_v55 = vrot.slane %v3832_v33, 4  ;;  %v8708_v29 = vpack.i.bf16 %v7203_v37, %v7200_v49  ;;  %v3399_v20 = vsel %vm114_vm6, 0.0, %v3398_v63 }
 0x434   :  { %v3215_v6 = vsel %vm114_vm6, %v3214_v56, %v8048_v19  ;;  %v3165_v47 = vperm.slane %v3159_v26, %v5495_v10  ;;  %v3455_v45 = vsel %vm114_vm6, 0.0, %v3454_v7  ;;  %v3173_v9 = vsel %vm114_vm6, 0.0, %v3172_v50 }
 0x435   :  { %5148 = vrot.lane.b32.xlu1 %v8707_v22, %s5296_s14  ;;  %v3221_v3 = vperm.slane %v3215_v6, %v5495_v10  ;;  %v3229_v15 = vsel %vm114_vm6, 0.0, %v3228_v60  ;;  %v3804_v43 = vsel %vm114_vm6, %v3788_v28, %v3803_v4  ;;  %v3860_v59 = vsel %vm114_vm6, %v3844_v23, %v3859_v55 }
 0x436   :  { %v5142_v48 = vpack.i.bf16 %v3455_v45, %v3399_v20  ;;  %v5137_v8 = vpack.i.bf16 %v3229_v15, %v3173_v9  ;;  %v3812_v49 = vperm.slane %v3804_v43, %v5495_v10  ;;  %v3868_v37 = vperm.slane %v3860_v59, %v5495_v10 }
 0x437   :  { %5128 = vrot.lane.b32.xlu0 %v5127_v30, %s5292_s10  ;;  %v5162_v32 = vpack.i.bf16 %v3221_v3, %v3165_v47  ;;  %v3817_v33 = vrot.slane %v3808_v52, 4  ;;  %v3873_v11 = vrot.slane %v3864_v34, 4  ;;  %v8709_v41 = vunpack.i.h.bf16 %v7513_v51 }
 0x438   :  { %5123 = vrot.lane.b32.xlu2 %v8708_v29, %s5294_s12  ;;  %v8710_v0 = vunpack.i.h.bf16 %v7530_v21  ;;  %v8711_v23 = vunpack.i.h.bf16 %v7517_v38  ;;  %v3440_v18 = vrot.slane %v7909_v1, 4  ;;  %v3384_v56 = vrot.slane %v7912_v2, 4 }
 0x439   :  { %v2771_v24 = vrot.slane %v8709_v41, 4  ;;  %v5177_v26 = vpack.i.bf16 %v3868_v37, %v3812_v49  ;;  %v3818_v52 = vsel %vm114_vm6, 0.0, %v3817_v33  ;;  %v3874_v34 = vsel %vm114_vm6, 0.0, %v3873_v11  ;;  %v8718_v41 = vld [vmem:[#allocation10_spill] sm:$0xff] }
 0x43a   :  { %v2759_v28 = vrot.slane %v8710_v0, 4  ;;  %v8712_v51 = vunpack.i.h.bf16 %v7505_v31  ;;  %v3174_v6 = vrot.slane %v3165_v47, 4  ;;  %v3230_v22 = vrot.slane %v3221_v3, 4 }
 0x43b   :  { %v2772_v25 = vsel %vm114_vm6, %v2771_v24, %v8711_v23  ;;  %v5152_v38 = vpack.i.bf16 %v3874_v34, %v3818_v52  ;;  %v8713_v2 = vpack.i.bf16 %v7240_v58, %v7232_v36  ;;  %v3385_v63 = vsel %vm114_vm6, %v7850_v62, %v3384_v56  ;;  %v8719_v24 = vld [vmem:[#allocation19_spill] sm:$0xff]  ;;  %v8723_v56 = vld [vmem:[#allocation17_spill] sm:$0xff] }
 0x43c   :  { %v2760_v21 = vsel %vm114_vm6, %v2759_v28, %v8712_v51  ;;  %v2778_v30 = vperm.slane %v2772_v25, %v8651_v42  ;;  %v3441_v31 = vsel %vm114_vm6, %v7892_v27, %v3440_v18  ;;  %v3175_v7 = vsel %vm114_vm6, 0.0, %v3174_v6  ;;  %v8721_v28 = vld [vmem:[#allocation26_spill] sm:$0xff] }
 0x43d   :  { %5163 = vrot.lane.b32.xlu1 %v5162_v32, %s5292_s10  ;;  %v2766_v1 = vperm.slane %v2760_v21, %v8651_v42  ;;  %v3231_v47 = vsel %vm114_vm6, 0.0, %v3230_v22  ;;  %v3393_v42 = vperm.slane %v3385_v63, %v5495_v10  ;;  %v3449_v50 = vperm.slane %v3441_v31, %v5495_v10  ;;  %v8722_v18 = vld [vmem:[#allocation14_spill] sm:$0xff] }
 0x43e   :  { %v2783_v3 = vrot.slane %v2778_v30, 4  ;;  %v5187_v60 = vpack.i.bf16 %v3231_v47, %v3175_v7  ;;  %v3819_v58 = vrot.slane %v3812_v49, 4  ;;  %v3875_v4 = vrot.slane %v3868_v37, 4 }
 0x43f   :  { %5143 = vrot.lane.b32.xlu0 %v5142_v48, %s5297_s15  ;;  %v5167_v62 = vpack.i.bf16 %v3449_v50, %v3393_v42  ;;  %v8714_v55 = vpack.i.bf16 %v7267_v16, %v7250_v54  ;;  %v3160_v45 = vrot.slane %v8045_v14, 4  ;;  %v3216_v32 = vrot.slane %v8048_v19, 4 }
 0x440   :  { %5138 = vrot.lane.b32.xlu2 %v5137_v8, %s5296_s14  ;;  %v2784_v36 = vsel %vm114_vm6, %v2783_v3, %v2766_v1  ;;  %v3820_v29 = vsel %vm114_vm6, 0.0, %v3819_v58  ;;  %v3876_v20 = vsel %vm114_vm6, 0.0, %v3875_v4  ;;  %v8715_v59 = vpack.i.bf16 %v7263_v46, %v7260_v57  ;;  %v8716_v57 = vld [vmem:[#allocation24_spill] sm:$0xff]  ;;  %v8729_v3 = vld [vmem:[#allocation27_spill] sm:$0xff]  ;;  %v8733_v4 = vld [vmem:[#allocation9_spill] sm:$0xff] }
 0x441   :  { %v8111_v27 = vperm.slane %v2784_v36, %v5495_v10  ;;  %v5202_v15 = vpack.i.bf16 %v3876_v20, %v3820_v29  ;;  %v3161_v43 = vsel %vm114_vm6, %v8024_v35, %v3160_v45  ;;  %v3217_v54 = vsel %vm114_vm6, %v8027_v40, %v3216_v32  ;;  %v8732_v58 = vld [vmem:[#allocation23_spill] sm:$0xff]  ;;  %v8735_v32 = vld [vmem:[#allocation32_spill] sm:$0xff] }
 0x442   :  { %v3169_v14 = vperm.slane %v3161_v43, %v5495_v10  ;;  %v3225_v19 = vperm.slane %v3217_v54, %v5495_v10  ;;  %v3400_v48 = vrot.slane %v3393_v42, 4  ;;  %v3456_v8 = vrot.slane %v3449_v50, 4  ;;  %v8730_v42 = vld [vmem:[#allocation15_spill] sm:$0xff] }
 0x443   :  { %v2807_v9 = vrot.slane %v8111_v27, 4  ;;  %v2785_v33 = vrot.slane %v2766_v1, 4  ;;  %v8717_v46 = vpack.i.bf16 %v7296_v5, %v8716_v57  ;;  %v8720_v0 = vpack.i.bf16 %v8718_v41, %v8719_v24  ;;  %v8725_v5 = vld [vmem:[#allocation25_spill] sm:$0xff]  ;;  %v8726_v1 = vld [vmem:[#allocation20_spill] sm:$0xff] }
 0x444   :  { %v5212_v35 = vpack.i.bf16 %v3225_v19, %v3169_v14  ;;  %v3401_v40 = vsel %vm114_vm6, 0.0, %v3400_v48  ;;  %v3457_v49 = vsel %vm114_vm6, 0.0, %v3456_v8  ;;  %v2795_v23 = vrot.slane %v8721_v28, 4  ;;  %v8737_v48 = vld [vmem:[#allocation13_spill] sm:$0xff]  ;;  %v8738_v8 = vld [vmem:[#allocation18_spill] sm:$0xff] }
 0x445   :  { %5178 = vrot.lane.b32.xlu1 %v5177_v26, %s5293_s11  ;;  %v2808_v16 = vsel %vm114_vm6, 0.0, %v2807_v9  ;;  %v5192_v37 = vpack.i.bf16 %v3457_v49, %v3401_v40  ;;  %v2786_v11 = vsel %vm114_vm6, %v2778_v30, %v2785_v33  ;;  %v8724_v26 = vpack.i.bf16 %v8722_v18, %v8723_v56 }
 0x446   :  { %v2794_v25 = vperm.slane %v2786_v11, %v5495_v10  ;;  %v2796_v52 = vsel %vm114_vm6, %v2795_v23, %v8725_v5  ;;  %v3176_v30 = vrot.slane %v3169_v14, 4  ;;  %v8731_v50 = vpack.i.bf16 %v8729_v3, %v8730_v42  ;;  %v8740_v5 = vld [vmem:[#allocation28_spill] sm:$0xff] }
 0x447   :  { %5158 = vrot.lane.b32.xlu0 %v8713_v2, %s5294_s12  ;;  %v2802_v21 = vperm.slane %v2796_v52, %v5495_v10  ;;  %v8727_v2 = vld [vmem:[#allocation16_spill] sm:$0xff]  ;;  %v8741_v52 = vld [vmem:[#allocation21_spill] sm:$0xff] }
 0x448   :  { %5153 = vrot.lane.b32.xlu2 %v5152_v38, %s5297_s15  ;;  %v2809_v51 = vrot.slane %v2794_v25, 4  ;;  %v3232_v38 = vrot.slane %v3225_v19, 4  ;;  %v8728_v63 = vpack.i.bf16 %v8726_v1, %v8727_v2  ;;  %v3177_v7 = vsel %vm114_vm6, 0.0, %v3176_v30  ;;  %v8743_v30 = vld [vmem:[#allocation11_spill] sm:$0xff] }
 0x449   :  { %v2811_v45 = vrot.slane %v2802_v21, 4 }
 0x44a   :  { %v2810_v22 = vsel %vm114_vm6, 0.0, %v2809_v51  ;;  %v3233_v10 = vsel %vm114_vm6, 0.0, %v3232_v38  ;;  %v8742_v51 = vpack.i.bf16 %v8740_v5, %v8741_v52  ;;  %v8744_v38 = vld [vmem:[#allocation12_spill] sm:$0xff] }
 0x44b   :  { %v8745_v1 = vpack.i.bf16 %v8743_v30, %v8744_v38 }
 0x44d   :  { %5188 = vrot.lane.b32.xlu1 %v5187_v60, %s5297_s15  ;;  %v5227_v60 = vpack.i.bf16 %v3233_v10, %v3177_v7 }
 0x44f   :  { %5173 = vrot.lane.b32.xlu0 %v8714_v55, %s5292_s10 }
 0x450   :  { %5168 = vrot.lane.b32.xlu2 %v5167_v62, %s5293_s11  ;;  %v8734_v62 = vpack.i.bf16 %v8732_v58, %v8733_v4 }
 0x455   :  { %5203 = vrot.lane.b32.xlu1 %v5202_v15, %s5298_s16  ;;  %v5049_v34 = vpop.permute.xlu2 %5048  ;;  %v8736_v15 = vld [vmem:[#allocation29_spill] sm:$0xff] }
 0x456   :  { %v5051_v57 = vunpack.i.h.bf16 %v5049_v34 }
 0x457   :  { %5183 = vrot.lane.b32.xlu0 %v8715_v59, %s5296_s14 }
 0x458   :  { %2844 = vrot.lane.b32.xlu2 %v2808_v16, %s5295_s13  ;;  %v2812_v16 = vsel %vm114_vm6, 0.0, %v2811_v45 }
 0x45d   :  { %5213 = vrot.lane.b32.xlu1 %v5212_v35, %s5293_s11  ;;  %v8739_v35 = vpack.i.bf16 %v8737_v48, %v8738_v8 }
 0x45f   :  { %5198 = vrot.lane.b32.xlu0 %v8717_v46, %s5297_s15  ;;  %v5050_v46 = vunpack.i.l.bf16 %v5049_v34 }
 0x460   :  { %5193 = vrot.lane.b32.xlu2 %v5192_v37, %s5298_s16 }
 0x465   :  { %5223 = vrot.lane.b32.xlu1 %v8720_v0, %s5297_s15 }
 0x467   :  { %5208 = vrot.lane.b32.xlu0 %v8724_v26, %s5292_s10  ;;  %v5044_v6 = vpop.permute.xlu1 %5043 }
 0x468   :  { %2848 = vrot.lane.b32.xlu2 %v2794_v25, %s5294_s12  ;;  %v5046_v59 = vunpack.i.h.bf16 %v5044_v6  ;;  %v5045_v14 = vunpack.i.l.bf16 %v5044_v6 }
 0x46d   :  { %2856 = vrot.lane.b32.xlu1 %v2802_v21, %s5292_s10 }
 0x46e   :  { %v5039_v47 = vpop.permute.xlu0 %5038 }
 0x46f   :  { %2852 = vrot.lane.b32.xlu0 %v2810_v22, %s5296_s14  ;;  %v5041_v55 = vunpack.i.h.bf16 %v5039_v47  ;;  %v5040_v29 = vunpack.i.l.bf16 %v5039_v47 }
 0x470   :  { %5218 = vrot.lane.b32.xlu2 %v8728_v63, %s5293_s11 }
 0x471   :  { %v4167_v9 = vsel %vm282_vm7, %v8735_v32, %v5041_v55  ;;  %v4160_v43 = vsel %vm282_vm7, %v8736_v15, %v5040_v29 }
 0x472   :  { %v8166_v31 = vpop.permute.xlu2 %5063  ;;  %v4168_v40 = vsel %vm284_vm8, %v4167_v9, %v5046_v59  ;;  %v4161_v49 = vsel %vm284_vm8, %v4160_v43, %v5045_v14 }
 0x473   :  { %v5059_v36 = vpop.permute.xlu1 %5058  ;;  %v4162_v41 = vsel %vm286_vm9, %v4161_v49, %v5050_v46  ;;  %v4169_v24 = vsel %vm286_vm9, %v4168_v40, %v5051_v57  ;;  %v5066_v57 = vunpack.i.h.bf16 %v8166_v31  ;;  %v5065_v46 = vunpack.i.l.bf16 %v8166_v31 }
 0x474   :  { %v5061_v18 = vunpack.i.h.bf16 %v5059_v36  ;;  %v5060_v56 = vunpack.i.l.bf16 %v5059_v36 }
 0x475   :  { %5243 = vrot.lane.b32.xlu1 %v8731_v50, %s5298_s16 }
 0x476   :  { %v5054_v54 = vpop.permute.xlu0 %5053 }
 0x477   :  { %5233 = vrot.lane.b32.xlu0 %v8734_v62, %s5298_s16  ;;  %v5056_v37 = vunpack.i.h.bf16 %v5054_v54  ;;  %v5055_v33 = vunpack.i.l.bf16 %v5054_v54 }
 0x478   :  { %5228 = vrot.lane.b32.xlu2 %v5227_v60, %s5298_s16 }
 0x479   :  { %v4163_v0 = vsel %vm288_vm10, %v4162_v41, %v5055_v33  ;;  %v4170_v28 = vsel %vm288_vm10, %v4169_v24, %v5056_v37 }
 0x47a   :  { %v8179_v20 = vpop.permute.xlu2 %5078  ;;  %v4164_v34 = vsel %vm290_vm11, %v4163_v0, %v5060_v56  ;;  %v4171_v21 = vsel %vm290_vm11, %v4170_v28, %v5061_v18  ;;  %v3521_v56 = vsel %vm282_vm7, %v7873_v44, %v5066_v57 }
 0x47b   :  { %v5081_v24 = vunpack.i.h.bf16 %v8179_v20  ;;  %v5080_v0 = vunpack.i.l.bf16 %v8179_v20 }
 0x47d   :  { %v3522_v31 = vsel %vm284_vm8, %v3521_v56, %v5081_v24 }
 0x47f   :  { %v5074_v19 = vpop.permute.xlu1 %5073  ;;  %2860 = vrot.lane.b32.xlu0 %v2812_v16, %s5297_s15 }
 0x480   :  { %5238 = vrot.lane.b32.xlu2 %v8739_v35, %s5293_s11  ;;  %v5076_v23 = vunpack.i.h.bf16 %v5074_v19  ;;  %v5075_v25 = vunpack.i.l.bf16 %v5074_v19 }
 0x482   :  { %v8193_v11 = vpop.permute.xlu2 %5093  ;;  %v4165_v2 = vsel %vm292_vm12, %v4164_v34, %v5075_v25  ;;  %v4172_v63 = vsel %vm292_vm12, %v4171_v21, %v5076_v23 }
 0x487   :  { %v5089_v26 = vpop.permute.xlu1 %5088  ;;  %5253 = vrot.lane.b32.xlu0 %v8742_v51, %s5298_s16 }
 0x488   :  { %v5091_v6 = vunpack.i.h.bf16 %v5089_v26  ;;  %v5090_v22 = vunpack.i.l.bf16 %v5089_v26  ;;  %5248 = vrot.lane.b32.xlu2 %v8745_v1, %s5293_s11  ;;  %v8746_v26 = vld [vmem:[#allocation31_spill] sm:$0xff] }
 0x489   :  { %v8211_v7 = vpop.permute.xlu0 %5068  ;;  %v3514_v5 = vsel %vm282_vm7, %v8746_v26, %v5065_v46 }
 0x48a   :  { %v4166_v10 = vsel %vm294_vm13, %v4165_v2, %v5090_v22  ;;  %v4173_v47 = vsel %vm294_vm13, %v4172_v63, %v5091_v6  ;;  %v8215_v3 = vpop.permute.xlu2 %5108  ;;  %v3515_v52 = vsel %vm284_vm8, %v3514_v5, %v5080_v0 }
 0x48b   :  { %v4174_v42 = vpack.c.bf16 %v4173_v47, %v4166_v10  ;;  %v5111_v24 = vunpack.i.h.bf16 %v8215_v3  ;;  %v5110_v0 = vunpack.i.l.bf16 %v8215_v3 }
 0x48d   :  { %4175 = vst [vmem:[#allocation3 + $0x20] sm:$0x33] %v4174_v42 }
 0x48f   :  { %v5104_v50 = vpop.permute.xlu1 %5103 }
 0x490   :  { %v5106_v60 = vunpack.i.h.bf16 %v5104_v50  ;;  %v5105_v36 = vunpack.i.l.bf16 %v5104_v50 }
 0x491   :  { %v8217_v58 = vpop.permute.xlu0 %5083 }
 0x492   :  { %v5124_v4 = vpop.permute.xlu2 %5123  ;;  %v3716_v29 = vsel %vm282_vm7, %v7660_v13, %v5106_v60  ;;  %v3709_v45 = vsel %vm282_vm7, %v7656_v53, %v5105_v36  ;;  %v5071_v36 = vunpack.i.h.bf16 %v8211_v7 }
 0x493   :  { %v5126_v62 = vunpack.i.h.bf16 %v5124_v4  ;;  %v5125_v55 = vunpack.i.l.bf16 %v5124_v4  ;;  %v5070_v4 = vunpack.i.l.bf16 %v8211_v7 }
 0x494   :  { %v4181_v32 = vld [vmem:[#allocation3 + $0x20] sm:$0x33] }
 0x495   :  { %v8224_v9 = vsel %vm284_vm8, %v3716_v29, %v5126_v62  ;;  %v8227_v15 = vsel %vm284_vm8, %v3709_v45, %v5125_v55  ;;  %v4201_v43 = vunpack.c.l.b16 %v4181_v32  ;;  %v4202_v54 = vunpack.c.h.b16 %v4181_v32 }
 0x496   :  { %v5086_v29 = vunpack.i.h.bf16 %v8217_v58  ;;  %v5085_v45 = vunpack.i.l.bf16 %v8217_v58 }
 0x497   :  { %v5119_v16 = vpop.permute.xlu1 %5118  ;;  %v4207_v59 = vpack.c.b16 %v4201_v43, %v4201_v43  ;;  %v4208_v14 = vpack.c.b16 %v4202_v54, %v4202_v54 }
 0x498   :  { %v5121_v6 = vunpack.i.h.bf16 %v5119_v16  ;;  %v5120_v22 = vunpack.i.l.bf16 %v5119_v16 }
 0x499   :  { %v4217_v19 = vsel %vm2086_vm14, %v4207_v59, 0  ;;  %v4220_v48 = vsel %vm2086_vm14, %v4208_v14, 0  ;;  %v5099_v13 = vpop.permute.xlu0 %5098  ;;  %v8747_v59 = vld [vmem:[#allocation30_spill] sm:$0xff] }
 0x49a   :  { %4227 = vmatpush.bf16.msra.mxu0 %v4217_v19  ;;  %4240 = vmatpush.bf16.msra.mxu1 %v4220_v48  ;;  %v8231_v53 = vpop.permute.xlu2 %5138  ;;  %v5101_v28 = vunpack.i.h.bf16 %v5099_v13  ;;  %v5100_v23 = vunpack.i.l.bf16 %v5099_v13  ;;  %v3940_v14 = vsel %vm282_vm7, %v8747_v59, %v5071_v36  ;;  %v8748_v19 = vld [vmem:[#allocation33_spill] sm:$0xff] }
 0x49b   :  { %v3933_v7 = vsel %vm282_vm7, %v8748_v19, %v5070_v4 }
 0x49c   :  { %v3523_v51 = vsel %vm286_vm9, %v3522_v31, %v5101_v28  ;;  %v3516_v34 = vsel %vm286_vm9, %v3515_v52, %v5100_v23  ;;  %v3934_v13 = vsel %vm284_vm8, %v3933_v7, %v5085_v45 }
 0x49d   :  { %v3517_v38 = vsel %vm288_vm10, %v3516_v34, %v5120_v22  ;;  %v3524_v44 = vsel %vm288_vm10, %v3523_v51, %v5121_v6  ;;  %v3935_v23 = vsel %vm286_vm9, %v3934_v13, %v5110_v0  ;;  %v5096_v6 = vunpack.i.h.bf16 %v8193_v11 }
 0x49e   :  { %v5095_v22 = vunpack.i.l.bf16 %v8193_v11 }
 0x49f   :  { %v8233_v8 = vpop.permute.xlu1 %5133 }
 0x4a0   :  { %v3290_v11 = vsel %vm282_vm7, %v7930_v12, %v5095_v22 }
 0x4a1   :  { %v8235_v35 = vpop.permute.xlu0 %5113 }
 0x4a2   :  { %v8237_v40 = vpop.permute.xlu2 %5153 }
 0x4a3   :  { %v5155_v31 = vunpack.i.l.bf16 %v8237_v40 }
 0x4a7   :  { %v8239_v49 = vpop.permute.xlu1 %5148 }
 0x4a9   :  { %v5129_v37 = vpop.permute.xlu0 %5128 }
 0x4aa   :  { %v5169_v33 = vpop.permute.xlu2 %5168  ;;  %v5131_v57 = vunpack.i.h.bf16 %v5129_v37  ;;  %v5130_v46 = vunpack.i.l.bf16 %v5129_v37  ;;  %v5156_v37 = vunpack.i.h.bf16 %v8237_v40  ;;  %v5115_v40 = vunpack.i.l.bf16 %v8235_v35 }
 0x4ab   :  { %v5171_v10 = vunpack.i.h.bf16 %v5169_v33  ;;  %v5170_v47 = vunpack.i.l.bf16 %v5169_v33  ;;  %v3941_v33 = vsel %vm284_vm8, %v3940_v14, %v5086_v29  ;;  %v5140_v29 = vunpack.i.l.bf16 %v8231_v53 }
 0x4ac   :  { %v3936_v56 = vsel %vm288_vm10, %v3935_v23, %v5130_v46  ;;  %v3291_v4 = vsel %vm284_vm8, %v3290_v11, %v5115_v40 }
 0x4ad   :  { %v3937_v3 = vsel %vm290_vm11, %v3936_v56, %v5155_v31  ;;  %v3292_v12 = vsel %vm286_vm9, %v3291_v4, %v5140_v29  ;;  %v5136_v56 = vunpack.i.h.bf16 %v8233_v8 }
 0x4af   :  { %v8243_v41 = vpop.permute.xlu1 %5163 }
 0x4b1   :  { %v5144_v25 = vpop.permute.xlu0 %5143 }
 0x4b2   :  { %v8247_v18 = vpop.permute.xlu2 %2844  ;;  %v5146_v20 = vunpack.i.h.bf16 %v5144_v25  ;;  %v5145_v21 = vunpack.i.l.bf16 %v5144_v25  ;;  %v3942_v25 = vsel %vm286_vm9, %v3941_v33, %v5111_v24 }
 0x4b3   :  { %v3943_v26 = vsel %vm288_vm10, %v3942_v25, %v5131_v57 }
 0x4b4   :  { %v3518_v1 = vsel %vm290_vm11, %v3517_v38, %v5145_v21  ;;  %v3525_v2 = vsel %vm290_vm11, %v3524_v44, %v5146_v20  ;;  %v3944_v34 = vsel %vm290_vm11, %v3943_v26, %v5156_v37  ;;  %v5135_v26 = vunpack.i.l.bf16 %v8233_v8 }
 0x4b5   :  { %v3519_v62 = vsel %vm292_vm12, %v3518_v1, %v5170_v47  ;;  %v3526_v55 = vsel %vm292_vm12, %v3525_v2, %v5171_v10  ;;  %v5116_v1 = vunpack.i.h.bf16 %v8235_v35  ;;  %v5166_v35 = vunpack.i.h.bf16 %v8243_v41 }
 0x4b7   :  { %v5179_v30 = vpop.permute.xlu1 %5178 }
 0x4b8   :  { %v5181_v5 = vunpack.i.h.bf16 %v5179_v30  ;;  %v5180_v52 = vunpack.i.l.bf16 %v5179_v30 }
 0x4b9   :  { %v8261_v63 = vpop.permute.xlu0 %5158 }
 0x4ba   :  { %v5194_v42 = vpop.permute.xlu2 %5193  ;;  %v3938_v38 = vsel %vm292_vm12, %v3937_v3, %v5180_v52  ;;  %v3945_v44 = vsel %vm292_vm12, %v3944_v34, %v5181_v5  ;;  %v5161_v5 = vunpack.i.h.bf16 %v8261_v63  ;;  %v5160_v52 = vunpack.i.l.bf16 %v8261_v63 }
 0x4bb   :  { %v5196_v50 = vunpack.i.h.bf16 %v5194_v42  ;;  %v5195_v60 = vunpack.i.l.bf16 %v5194_v42  ;;  %v5150_v63 = vunpack.i.l.bf16 %v8239_v49 }
 0x4bd   :  { %v3520_v32 = vsel %vm294_vm13, %v3519_v62, %v5195_v60  ;;  %v3527_v43 = vsel %vm294_vm13, %v3526_v55, %v5196_v50  ;;  %v3297_v50 = vsel %vm282_vm7, %v7933_v39, %v5096_v6  ;;  %v5165_v62 = vunpack.i.l.bf16 %v8243_v41 }
 0x4be   :  { %v3528_v54 = vpack.c.bf16 %v3527_v43, %v3520_v32  ;;  %v3298_v36 = vsel %vm284_vm8, %v3297_v50, %v5116_v1  ;;  %v5141_v55 = vunpack.i.h.bf16 %v8231_v53 }
 0x4bf   :  { %v5189_v16 = vpop.permute.xlu1 %5188  ;;  %v3293_v19 = vsel %vm288_vm10, %v3292_v12, %v5165_v62 }
 0x4c0   :  { %v3530_v48 = vrot.slane %v3528_v54, 6  ;;  %v5191_v45 = vunpack.i.h.bf16 %v5189_v16  ;;  %v5190_v32 = vunpack.i.l.bf16 %v5189_v16  ;;  %v3299_v59 = vsel %vm286_vm9, %v3298_v36, %v5141_v55 }
 0x4c1   :  { %v8277_v58 = vpop.permute.xlu0 %5173  ;;  %v3300_v7 = vsel %vm288_vm10, %v3299_v59, %v5166_v35 }
 0x4c2   :  { %3532 = vst [vmem:[#allocation3 + $0x10] sm:$0xcc] %v3530_v48  ;;  %v8281_v28 = vpop.permute.xlu2 %2848  ;;  %v3294_v48 = vsel %vm290_vm11, %v3293_v19, %v5190_v32  ;;  %v3301_v53 = vsel %vm290_vm11, %v3300_v7, %v5191_v45  ;;  %v5176_v40 = vunpack.i.h.bf16 %v8277_v58 }
 0x4c7   :  { %v5204_v51 = vpop.permute.xlu1 %5203 }
 0x4c8   :  { %v5206_v20 = vunpack.i.h.bf16 %v5204_v51  ;;  %v5205_v21 = vunpack.i.l.bf16 %v5204_v51 }
 0x4c9   :  { %v5184_v30 = vpop.permute.xlu0 %5183 }
 0x4ca   :  { %v3939_v2 = vsel %vm294_vm13, %v3938_v38, %v5205_v21  ;;  %v3946_v10 = vsel %vm294_vm13, %v3945_v44, %v5206_v20  ;;  %v8299_v47 = vpop.permute.xlu2 %5218  ;;  %v5186_v37 = vunpack.i.h.bf16 %v5184_v30  ;;  %v5185_v31 = vunpack.i.l.bf16 %v5184_v30 }
 0x4cb   :  { %v3947_v42 = vpack.c.bf16 %v3946_v10, %v3939_v2  ;;  %v3070_v20 = vsel %vm282_vm7, %v7944_v61, %v5136_v56  ;;  %v3063_v21 = vsel %vm282_vm7, %v7958_v17, %v5135_v26  ;;  %v5151_v38 = vunpack.i.h.bf16 %v8239_v49 }
 0x4cc   :  { %v3071_v6 = vsel %vm284_vm8, %v3070_v20, %v5161_v5  ;;  %v3064_v22 = vsel %vm284_vm8, %v3063_v21, %v5160_v52  ;;  %v5175_v61 = vunpack.i.l.bf16 %v8277_v58  ;;  %v3711_v49 = vsel %vm286_vm9, %v8227_v15, %v5150_v63 }
 0x4cd   :  { %v3949_v60 = vrot.slane %v3947_v42, 6  ;;  %v3065_v44 = vsel %vm286_vm9, %v3064_v22, %v5185_v31  ;;  %v3072_v30 = vsel %vm286_vm9, %v3071_v6, %v5186_v37  ;;  %v3718_v4 = vsel %vm286_vm9, %v8224_v9, %v5151_v38 }
 0x4ce   :  { %v3719_v62 = vsel %vm288_vm10, %v3718_v4, %v5176_v40  ;;  %v3712_v55 = vsel %vm288_vm10, %v3711_v49, %v5175_v61  ;;  %v5221_v15 = vunpack.i.h.bf16 %v8299_v47  ;;  %v4390_v40 = vld [vmem:[#allocation3 + $0x4] sm:$0xf]  ;;  %v4279_v49 = vld [vmem:[%s8483_s3 + $0xe8] sm:$0xff] }
 0x4cf   :  { %3951 = vst [vmem:[#allocation3 + $0x18] sm:$0xcc] %v3949_v60  ;;  %v5214_v39 = vpop.permute.xlu1 %5213  ;;  %v4262_v4 = vld [vmem:[%s8483_s3 + $0x60] sm:$0xff] }
 0x4d0   :  { %v5216_v43 = vunpack.i.h.bf16 %v5214_v39  ;;  %v5215_v54 = vunpack.i.l.bf16 %v5214_v39 }
 0x4d1   :  { %v5199_v14 = vpop.permute.xlu0 %5198 }
 0x4d2   :  { %v5229_v41 = vpop.permute.xlu2 %5228  ;;  %v3295_v33 = vsel %vm292_vm12, %v3294_v48, %v5215_v54  ;;  %v3302_v57 = vsel %vm292_vm12, %v3301_v53, %v5216_v43  ;;  %v5201_v10 = vunpack.i.h.bf16 %v5199_v14  ;;  %v5200_v42 = vunpack.i.l.bf16 %v5199_v14 }
 0x4d3   :  { %v5231_v13 = vunpack.i.h.bf16 %v5229_v41  ;;  %v5230_v16 = vunpack.i.l.bf16 %v5229_v41  ;;  %v5220_v54 = vunpack.i.l.bf16 %v8299_v47 }
 0x4d4   :  { %v3713_v45 = vsel %vm290_vm11, %v3712_v55, %v5200_v42  ;;  %v3720_v32 = vsel %vm290_vm11, %v3719_v62, %v5201_v10  ;;  %v4265_v10 = vld [vmem:[%s8483_s3 + $0x78] sm:$0xff]  ;;  %v4260_v55 = vld [vmem:[%s8483_s3 + $0x50] sm:$0xff] }
 0x4d5   :  { %v3296_v46 = vsel %vm294_vm13, %v3295_v33, %v5230_v16  ;;  %v3303_v24 = vsel %vm294_vm13, %v3302_v57, %v5231_v13  ;;  %v3714_v53 = vsel %vm292_vm12, %v3713_v45, %v5220_v54  ;;  %v3721_v13 = vsel %vm292_vm12, %v3720_v32, %v5221_v15  ;;  %v4182_v33 = vld [vmem:[%s8482_s2] sm:$0xff]  ;;  %v4281_v42 = vld [vmem:[%s8483_s3 + $0xf8] sm:$0xff]  ;;  %v4259_v45 = vld [vmem:[%s8483_s3 + $0x48] sm:$0xff] }
 0x4d6   :  { %v3304_v0 = vpack.c.bf16 %v3303_v24, %v3296_v46  ;;  %4185 = vperm.xlu1 %5257, %v4182_v33   ;;  %v4277_v62 = vld [vmem:[%s8483_s3 + $0xd8] sm:$0xff]  ;;  %v4275_v32 = vld [vmem:[%s8483_s3 + $0xc8] sm:$0xff]  ;;  %v4250_v33 = vld [vmem:[%s8483_s3] sm:$0xff] }
 0x4d7   :  { %v5224_v23 = vpop.permute.xlu1 %5223  ;;  %v4257_v15 = vld [vmem:[%s8483_s3 + $0x38] sm:$0xff] }
 0x4d8   :  { %3305 = vst [vmem:[#allocation3 + $0x10] sm:$0x33] %v3304_v0  ;;  %v5226_v50 = vunpack.i.h.bf16 %v5224_v23  ;;  %v5225_v11 = vunpack.i.l.bf16 %v5224_v23  ;;  %v2878_v0 = vsel %vm282_vm7, %v8111_v27, %v8247_v18  ;;  %v4273_v54 = vld [vmem:[%s8483_s3 + $0xb8] sm:$0xff] }
 0x4d9   :  { %v5209_v25 = vpop.permute.xlu0 %5208  ;;  %v2879_v23 = vsel %vm284_vm8, %v2878_v0, %v8281_v28  ;;  %v8749_v28 = vld [vmem:[#allocation22_spill] sm:$0xff] }
 0x4da   :  { %v5211_v51 = vunpack.i.h.bf16 %v5209_v25  ;;  %v5210_v3 = vunpack.i.l.bf16 %v5209_v25  ;;  %v5239_v1 = vpop.permute.xlu2 %5238 }
 0x4db   :  { %v5241_v60 = vunpack.i.h.bf16 %v5239_v1  ;;  %v5240_v36 = vunpack.i.l.bf16 %v5239_v1 }
 0x4dc   :  { %v3066_v17 = vsel %vm288_vm10, %v3065_v44, %v5210_v3  ;;  %v3073_v2 = vsel %vm288_vm10, %v3072_v30, %v5211_v51  ;;  %v4370_v30 = vld [vmem:[#allocation3] sm:$0xf] }
 0x4dd   :  { %v3067_v35 = vsel %vm290_vm11, %v3066_v17, %v5225_v11  ;;  %v3074_v58 = vsel %vm290_vm11, %v3073_v2, %v5226_v50  ;;  %v4176_v50 = vld [vmem:[%s8481_s1] sm:$0xf]  ;;  %v4264_v11 = vld [vmem:[%s8483_s3 + $0x70] sm:$0xff]  ;;  %s5301_s1 = smov 8  }
 0x4de   :  { %v3068_v9 = vsel %vm292_vm12, %v3067_v35, %v5240_v36  ;;  %v3075_v12 = vsel %vm292_vm12, %v3074_v58, %v5241_v60  ;;  %v4280_v60 = vld [vmem:[%s8483_s3 + $0xf0] sm:$0xff]  ;;  %v4263_v36 = vld [vmem:[%s8483_s3 + $0x68] sm:$0xff]  ;;  %v4278_v35 = vld [vmem:[%s8483_s3 + $0xe0] sm:$0xff] }
 0x4df   :  { %v2857_v34 = vpop.permute.xlu1 %2856  ;;  %v4378_v26 = vld [vmem:[#allocation3 + $0x10] sm:$0xf]  ;;  %v4392_v31 = vld [vmem:[#allocation3 + $0x14] sm:$0xf]  ;;  %v4261_v58 = vld [vmem:[%s8483_s3 + $0x58] sm:$0xff] }
 0x4e1   :  { %v2853_v8 = vpop.permute.xlu0 %2852 }
 0x4e2   :  { %v2880_v25 = vsel %vm286_vm9, %v2879_v23, %v2853_v8  ;;  %v5249_v56 = vpop.permute.xlu2 %5248 }
 0x4e3   :  { %v5250_v5 = vunpack.i.l.bf16 %v5249_v56  ;;  %v2881_v52 = vsel %vm288_vm10, %v2880_v25, %v2857_v34  ;;  %v5251_v6 = vunpack.i.h.bf16 %v5249_v56 }
 0x4e5   :  { %v2876_v8 = vsel %vm292_vm12, %v8749_v28, %v5250_v5 }
 0x4e7   :  { %v5244_v29 = vpop.permute.xlu1 %5243 }
 0x4e8   :  { %v5246_v39 = vunpack.i.h.bf16 %v5244_v29  ;;  %v5245_v43 = vunpack.i.l.bf16 %v5244_v29  ;;  %v4276_v29 = vld [vmem:[%s8483_s3 + $0xd0] sm:$0xff] }
 0x4e9   :  { %v5234_v59 = vpop.permute.xlu0 %5233 }
 0x4ea   :  { %v3069_v14 = vsel %vm294_vm13, %v3068_v9, %v5245_v43  ;;  %v3076_v19 = vsel %vm294_vm13, %v3075_v12, %v5246_v39  ;;  %v5236_v7 = vunpack.i.h.bf16 %v5234_v59  ;;  %v5235_v41 = vunpack.i.l.bf16 %v5234_v59  ;;  %v4258_v39 = vld [vmem:[%s8483_s3 + $0x40] sm:$0xff]  ;;  %v4256_v9 = vld [vmem:[%s8483_s3 + $0x30] sm:$0xff]  ;;  %v4255_v59 = vld [vmem:[%s8483_s3 + $0x28] sm:$0xff] }
 0x4eb   :  { %v3077_v48 = vpack.c.bf16 %v3076_v19, %v3069_v14  ;;  %v4274_v43 = vld [vmem:[%s8483_s3 + $0xc0] sm:$0xff]  ;;  %v4272_v12 = vld [vmem:[%s8483_s3 + $0xb0] sm:$0xff]  ;;  %v4271_v14 = vld [vmem:[%s8483_s3 + $0xa8] sm:$0xff] }
 0x4ec   :  { %v3715_v16 = vsel %vm294_vm13, %v3714_v53, %v5235_v41  ;;  %v3722_v47 = vsel %vm294_vm13, %v3721_v13, %v5236_v7  ;;  %v4254_v19 = vld [vmem:[%s8483_s3 + $0x20] sm:$0xff]  ;;  %v4253_v41 = vld [vmem:[%s8483_s3 + $0x18] sm:$0xff]  ;;  %v4252_v53 = vld [vmem:[%s8483_s3 + $0x10] sm:$0xff] }
 0x4ed   :  { %v3079_v57 = vrot.slane %v3077_v48, 6  ;;  %v3723_v46 = vpack.c.bf16 %v3722_v47, %v3715_v16  ;;  %v4270_v7 = vld [vmem:[%s8483_s3 + $0xa0] sm:$0xff]  ;;  %v4269_v48 = vld [vmem:[%s8483_s3 + $0x98] sm:$0xff]  ;;  %v4268_v13 = vld [vmem:[%s8483_s3 + $0x90] sm:$0xff] }
 0x4ee   :  { %v4251_v16 = vld [vmem:[%s8483_s3 + $0x8] sm:$0xff] }
 0x4ef   :  { %3081 = vst [vmem:[#allocation3 + $0x8] sm:$0xcc] %v3079_v57  ;;  %v4267_v47 = vld [vmem:[%s8483_s3 + $0x88] sm:$0xff]  ;;  %v4266_v57 = vld [vmem:[%s8483_s3 + $0x80] sm:$0xff]  ;;  %s4330_s3 = sshll.u32 %s8484_s4, 4  ;;  %s4331_s3 = int_to_ptr.hbm [resolvable:$true] %s4330_s3 }
 0x4f0   :  { %3724 = vst [vmem:[#allocation3 + $0x18] sm:$0x33] %v3723_v46 }
 0x4f1   :  { %v2861_v24 = vpop.permute.xlu0 %2860 }
 0x4f2   :  { %v2882_v3 = vsel %vm290_vm11, %v2881_v52, %v2861_v24 }
 0x4f3   :  { %v2883_v38 = vsel %vm292_vm12, %v2882_v3, %v5251_v6 }
 0x4f7   :  { %v4393_v37 = vld [vmem:[#allocation3 + $0x14] sm:$0xf0]  ;;  %v4380_v51 = vld [vmem:[#allocation3 + $0x18] sm:$0xf0] }
 0x4f8   :  { %v4379_v20 = vor.u32 %v4393_v37, %v4378_v26  ;;  %v4383_v21 = vor.u32 %v4392_v31, %v4380_v51 }
 0x4f9   :  { %v5254_v22 = vpop.permute.xlu0 %5253 }
 0x4fa   :  { %v5256_v27 = vunpack.i.h.bf16 %v5254_v22  ;;  %v5255_v18 = vunpack.i.l.bf16 %v5254_v22  ;;  %4228 = vmatpush.bf16.msra.mxu0 %v4379_v20  ;;  %4241 = vmatpush.bf16.msra.mxu1 %v4383_v21 }
 0x4fc   :  { %v2884_v34 = vsel %vm294_vm13, %v2883_v38, %v5256_v27  ;;  %v2877_v63 = vsel %vm294_vm13, %v2876_v8, %v5255_v18 }
 0x4fd   :  { %v2885_v44 = vpack.c.bf16 %v2884_v34, %v2877_v63 }
 0x4ff   :  { %2886 = vst [vmem:[#allocation3 + $0x8] sm:$0x33] %v2885_v44 }
 0x506   :  { %v4391_v1 = vld [vmem:[#allocation3 + $0x4] sm:$0xf0]  ;;  %v4372_v61 = vld [vmem:[#allocation3 + $0x8] sm:$0xf0] }
 0x507   :  { %v4371_v17 = vor.u32 %v4391_v1, %v4370_v30  ;;  %v4375_v2 = vor.u32 %v4390_v40, %v4372_v61 }
 0x509   :  { %4229 = vmatpush.bf16.msra.mxu0 %v4371_v17  ;;  %4242 = vmatpush.bf16.msra.mxu1 %v4375_v2 }
 0x50c   :  { %4384 = vmatmul.msk.bf16.vlgmr.msra.gmra.mxu0 %vm2082_vm15, %v4176_v50  ;;  %4385 = vmatmul.msk.bf16.vlgmr.msra.gmra.mxu1 %vm2082_vm15, %v4176_v50 }
 0x50d   :  { %4282 = vmatpush.msrb.mxu0 %v4265_v10  ;;  %4302 = vmatpush.msrb.mxu1 %v4281_v42 }
 0x50f   :  { %4283 = vmatpush.msrb.mxu0 %v4264_v11  ;;  %4303 = vmatpush.msrb.mxu1 %v4280_v60 }
 0x511   :  { %4284 = vmatpush.msrb.mxu0 %v4263_v36  ;;  %4304 = vmatpush.msrb.mxu1 %v4279_v49 }
 0x513   :  { %4285 = vmatpush.msrb.mxu0 %v4262_v4  ;;  %4305 = vmatpush.msrb.mxu1 %v4278_v35 }
 0x515   :  { %4286 = vmatpush.msrb.mxu0 %v4261_v58  ;;  %4306 = vmatpush.msrb.mxu1 %v4277_v62 }
 0x517   :  { %4287 = vmatpush.msrb.mxu0 %v4260_v55  ;;  %4307 = vmatpush.msrb.mxu1 %v4276_v29 }
 0x519   :  { %4288 = vmatpush.msrb.mxu0 %v4259_v45  ;;  %4308 = vmatpush.msrb.mxu1 %v4275_v32 }
 0x51b   :  { %4289 = vmatpush.msrb.mxu0 %v4258_v39  ;;  %4309 = vmatpush.msrb.mxu1 %v4274_v43 }
 0x51d   :  { %4290 = vmatpush.msrb.mxu0 %v4257_v15  ;;  %4310 = vmatpush.msrb.mxu1 %v4273_v54 }
 0x51f   :  { %4291 = vmatpush.msrb.mxu0 %v4256_v9  ;;  %4311 = vmatpush.msrb.mxu1 %v4272_v12 }
 0x521   :  { %4292 = vmatpush.msrb.mxu0 %v4255_v59  ;;  %4312 = vmatpush.msrb.mxu1 %v4271_v14 }
 0x523   :  { %4293 = vmatpush.msrb.mxu0 %v4254_v19  ;;  %4313 = vmatpush.msrb.mxu1 %v4270_v7 }
 0x525   :  { %4294 = vmatpush.msrb.mxu0 %v4253_v41  ;;  %4314 = vmatpush.msrb.mxu1 %v4269_v48 }
 0x527   :  { %4295 = vmatpush.msrb.mxu0 %v4252_v53  ;;  %4315 = vmatpush.msrb.mxu1 %v4268_v13 }
 0x529   :  { %4296 = vmatpush.msrb.mxu0 %v4251_v16  ;;  %4316 = vmatpush.msrb.mxu1 %v4267_v47 }
 0x52b   :  { %4297 = vmatpush.msrb.mxu0 %v4250_v33  ;;  %4317 = vmatpush.msrb.mxu1 %v4266_v57 }
 0x548   :  { %v4186_v46 = vpop.permute.xlu1 %4185 }
 0x589   :  { %v4231_v24 = vpop.f32.mrf.mxu0  ;;  %v4244_v0 = vpop.f32.mrf.mxu1 }
 0x58a   :  { %v4232_v23 = vadd.f32 %v4231_v24, %v4186_v46  ;;  %v4245_v25 = vadd.f32 %v4244_v0, %v4186_v46 }
 0x58c   :  { %v4248_v56 = vmax.f32 %v4232_v23, 0.0  ;;  %v4249_v26 = vmax.f32 %v4245_v25, 0.0 }
 0x58e   :  { %4298 = vmatmul.f32.vlgmr.msrb.gmra.mxu0 %v4248_v56  ;;  %4318 = vmatmul.f32.vlgmr.msrb.gmra.mxu1 %v4249_v26 }
 0x591   :  { %v4233_v5 = vpop.f32.mrf.mxu0  ;;  %v4246_v52 = vpop.f32.mrf.mxu1 }
 0x60b   :  { %v4299_v37 = vpop.f32.mrf.mxu0  ;;  %v4319_v31 = vpop.f32.mrf.mxu1 }
 0x60c   :  { %v4320_v51 = vadd.f32 %v4319_v31, %v4299_v37 }
 0x60e   :  { %4323 = vst.msk [vmem:[#allocation4 + $0x8] sm:$0xff] %vm2193_vm0, %v4320_v51 }
 0x60f   :  { %4336 = dma.vmem_to_hbm [thread:$0]  %s4329_s29, 256, %s4331_s3, [#allocation5], %s5300_s6, %s5300_s6, %s5301_s1  }
 0x610   :  { %5283 = dma.done.wait [#allocation5], 256  }
 0x611   :  { %5284 = vsyncadd [#allocation5], 4294967040 }
 0x612   :  { %4341 = vsyncpa [#allocation5], 1 }

</bundles_post_ra>
